<compile_context>
chip_gen: v7x
topology: tpu7x:2x2x1
jax: 0.10.0
libtpu: 0.0.40
codegen_flags: <defaults>
</compile_context>

<pallas_src>
import functools

import jax
import jax.numpy as jnp
from jax.experimental import pallas as pl
from jax.experimental.pallas import tpu as pltpu


# ----------------------------- Pallas kernel --------------------------------
def _fno_kernel(xin_ref,               # (Bt, S*4)                     f32
                T0_ref, b0_ref,        # (S*4, S*W) bf16, (1, S*W) f32  fc0 folded into layer 0
                T_ref, cb_ref,         # (L-1, S*W, S*W) bf16, (L-1, 1, S*W) f32
                fc1_ref, fc1b_ref,     # (128, P*128) bf16, (1, P*128) f32,  P = 128 // W
                fc2_ref, fc2b_ref,     # (P*128, P*2) bf16, (1, P*2)  f32
                out_ref):              # (G, Bt, P*2) f32,  G = S*W // 128
    x = xin_ref[...].astype(jnp.bfloat16)                      # (Bt, S*4)

    # fc0 + Fourier layer 0 (folded offline into one operator) + relu.
    h = jnp.dot(x, T0_ref[...],
                preferred_element_type=jnp.float32) + b0_ref[...]
    h = jnp.maximum(h, 0.0)

    # Fourier layers 1..3: fused (spectral conv + 1x1 conv) operator per layer.
    n_rest = T_ref.shape[0]
    for l in range(n_rest):
        h = jnp.dot(h.astype(jnp.bfloat16), T_ref[l],
                    preferred_element_type=jnp.float32) + cb_ref[l]
        if l < n_rest - 1:                         # last Fourier layer: no relu
            h = jnp.maximum(h, 0.0)

    # Projection head: fc1/fc2 act per grid point.  Instead of streaming the
    # (S*W, S*128) block-diagonal lift, apply kron(I_{128/W}, fc1_w) to each
    # 128-lane group of grid points (aligned whole-vreg column slices only).
    fc1_w = fc1_ref[...]
    fc1_b = fc1b_ref[...]
    fc2_w = fc2_ref[...]
    fc2_b = fc2b_ref[...]
    n_groups = out_ref.shape[0]
    for g in range(n_groups):
        seg = h[:, g * 128:(g + 1) * 128].astype(jnp.bfloat16)   # (Bt, 128)
        h1 = jnp.maximum(
            jnp.dot(seg, fc1_w, preferred_element_type=jnp.float32) + fc1_b,
            0.0)                                                 # (Bt, P*128)
        og = jnp.dot(h1.astype(jnp.bfloat16), fc2_w,
                     preferred_element_type=jnp.float32) + fc2_b  # (Bt, P*2)
        out_ref[g] = og


# --------------------- offline operator construction ------------------------
def build_operators(params, S, modes, n_layers=4):
    """Fold DFT matrices + spectral weights + 1x1 convs + fc0/fc1/fc2 into
    MXU-ready operators.  Call once and reuse for every forward pass."""
    M = modes
    W = params['fc0_w'].shape[1]
    assert M <= S // 2 + 1, "modes must be <= S//2 + 1"
    assert (S * W) % 128 == 0 and 128 % W == 0, \
        "projection-head grouping assumes 128 % width == 0 and (S*width) % 128 == 0"

    f32 = jnp.float32
    n = jnp.arange(S, dtype=f32)
    k = jnp.arange(M, dtype=f32)
    ang = 2.0 * jnp.pi * jnp.outer(n, k) / S                     # (S, M)
    frt = jnp.cos(ang).T                                         # (M, S) Re rfft
    fit = (-jnp.sin(ang)).T                                      # (M, S) Im rfft
    ki = jnp.arange(M)
    c = jnp.where((ki == 0) | (2 * ki == S), 1.0, 2.0).astype(f32)
    gr = c[None, :] * jnp.cos(ang) / S                           # (S, M) irfft Re
    gi = -c[None, :] * jnp.sin(ang) / S                          # (S, M) irfft Im

    # (inverse DFT) o (forward DFT) composition per retained mode: (M, S, S)
    A = jnp.einsum('nk,km->knm', gr, frt) + jnp.einsum('nk,km->knm', gi, fit)
    Bm = jnp.einsum('nk,km->knm', gi, frt) - jnp.einsum('nk,km->knm', gr, fit)

    eye = jnp.eye(S, dtype=f32)
    # Fused per-layer operator on flattened (grid-major, channel-minor) acts:
    #   T[(m,i),(n,o)] = spectral path + delta(m,n) * conv_w[i,o]
    T = (jnp.einsum('knm,lkio->lmino', A, params['spec_wr'])
         + jnp.einsum('knm,lkio->lmino', Bm, params['spec_wi'])
         + jnp.einsum('mn,lio->lmino', eye, params['conv_w']))
    T = T.reshape(n_layers, S * W, S * W)
    conv_b = jnp.tile(params['conv_b'], (1, 1, S))               # (L, 1, S*W)

    # Fold fc0 into T_0 (no nonlinearity between fc0 and layer 0); propagate bias.
    fc0_bd = jnp.einsum('nm,io->nimo', eye,
                        params['fc0_w']).reshape(S * 4, S * W)   # (S*4, S*W)
    fc0_b_bd = jnp.tile(params['fc0_b'], (1, S))                 # (1, S*W)
    hi = jax.lax.Precision.HIGHEST
    T0 = jnp.dot(fc0_bd, T[0], precision=hi)                     # (S*4, S*W)
    b0 = jnp.dot(fc0_b_bd, T[0], precision=hi) + conv_b[0]       # (1, S*W)

    # Per-128-lane-group projection head (128//W grid points per group).
    P = 128 // W
    fc1_g = jnp.kron(jnp.eye(P, dtype=f32), params['fc1_w'])     # (128, P*128)
    fc2_g = jnp.kron(jnp.eye(P, dtype=f32), params['fc2_w'])     # (P*128, P*2)

    bf16 = jnp.bfloat16
    return dict(
        T0=T0.astype(bf16), b0=b0,
        T=T[1:].astype(bf16), conv_b=conv_b[1:],
        fc1_w=fc1_g.astype(bf16), fc1_b=jnp.tile(params['fc1_b'], (1, P)),
        fc2_w=fc2_g.astype(bf16), fc2_b=jnp.tile(params['fc2_b'], (1, P)),
    )


# ------------------------------- wrapper -------------------------------------
@functools.partial(jax.jit, static_argnames=('block_b',))
def fno1d_forward(x, t, ops, block_b=None):
    """x: (B, S, 3) f32, t: (B,) f32 -> (B, S) complex64."""
    B, S, _ = x.shape
    SW = ops['b0'].shape[1]          # S * width
    G = SW // 128                    # 128-lane groups of grid points
    Pout = ops['fc2_w'].shape[1]     # (128 // width) * 2
    P = Pout // 2
    assert G * P == S

    if block_b is None:
        # One grid step if the whole batch fits MXU-friendly row counts
        # (best on single-TC v5e/v6e); otherwise the largest divisor <= 256.
        Bt = B if B <= 256 else next(
            (c for c in (256, 128, 64, 32, 16, 8) if B % c == 0), B)
    else:
        Bt = min(block_b, B)
    assert B % Bt == 0, "batch must be divisible by the batch block size"
    # TODO(synk): pad/mask the tail block for batch sizes not divisible by Bt.

    # glue: concat t as the 4th input channel, flatten per sample.
    tcol = jnp.broadcast_to(t.reshape(B, 1, 1).astype(x.dtype), (B, S, 1))
    xin = jnp.concatenate([x, tcol], axis=2).reshape(B, S * 4)   # (B, S*4) f32

    names = ('T0', 'b0', 'T', 'conv_b', 'fc1_w', 'fc1_b', 'fc2_w', 'fc2_b')
    weights = [ops[nm] for nm in names]

    in_specs = [pl.BlockSpec((Bt, S * 4), lambda b: (b, 0))]
    for w in weights:
        nd = w.ndim
        # Grid-invariant weights: full block at index 0.  If S*W grows, add
        # pipeline_mode=pl.Buffered(1) here to single-buffer the constants.
        in_specs.append(pl.BlockSpec(w.shape, lambda b, _nd=nd: (0,) * _nd))

    n_rest = ops['T'].shape[0]
    flops = (2 * B * (S * 4 * SW + n_rest * SW * SW)
             + 2 * B * G * (128 * P * 128 + P * 128 * P * 2))
    w_bytes = sum(int(w.size) * w.dtype.itemsize for w in weights)
    cost = pl.CostEstimate(
        flops=int(flops), transcendentals=0,
        bytes_accessed=int(xin.size * 4 + w_bytes + G * B * Pout * 4))

    out = pl.pallas_call(
        _fno_kernel,
        out_shape=jax.ShapeDtypeStruct((G, B, Pout), jnp.float32),
        grid=(B // Bt,),
        in_specs=in_specs,
        out_specs=pl.BlockSpec((G, Bt, Pout), lambda b: (0, b, 0)),
        compiler_params=pltpu.CompilerParams(
            dimension_semantics=("parallel",)),
        cost_estimate=cost,
    )(xin, *weights)

    # (G, B, P*2): group g holds grid points g*P .. g*P+P-1, channel-minor.
    out = jnp.transpose(out, (1, 0, 2)).reshape(B, S, 2)
    return out[..., 0] + 1j * out[..., 1]


# ------------------------- deterministic parameters ---------------------------
def init_params(key, modes, width):
    ks = jax.random.split(key, 10)

    def u(k, shape, scale):
        return scale * jax.random.uniform(k, shape, dtype=jnp.float32,
                                          minval=-1.0, maxval=1.0)

    spec_scale = 1.0 / (width * width)
    return dict(
        fc0_w=u(ks[0], (4, width), 0.5),
        fc0_b=u(ks[1], (1, width), 0.5),
        # stored as (layer, mode, in_ch, out_ch) — matches torch weights1[i,o,k]
        spec_wr=spec_scale * jax.random.uniform(ks[2], (4, modes, width, width),
                                                dtype=jnp.float32),
        spec_wi=spec_scale * jax.random.uniform(ks[3], (4, modes, width, width),
                                                dtype=jnp.float32),
        conv_w=u(ks[4], (4, width, width), 0.2),     # (layer, in_ch, out_ch)
        conv_b=u(ks[5], (4, 1, width), 0.2),
        fc1_w=u(ks[6], (width, 128), 0.2),
        fc1_b=u(ks[7], (1, 128), 0.2),
        fc2_w=u(ks[8], (128, 2), 0.2),
        fc2_b=u(ks[9], (1, 2), 0.2),
    )


# --------------------------- pure-JAX reference --------------------------------
def fno_ref(x, t, params, modes):
    B, S, _ = x.shape
    tcol = jnp.broadcast_to(t.reshape(B, 1, 1), (B, S, 1))
    h = jnp.concatenate([x, tcol], axis=2) @ params['fc0_w'] + params['fc0_b'][0]
    h = jnp.transpose(h, (0, 2, 1))                                   # (B, W, S)
    for l in range(4):
        wc = (params['spec_wr'][l] + 1j * params['spec_wi'][l]).transpose(1, 2, 0)
        ft = jnp.fft.rfft(h, axis=-1)
        out_ft = jnp.zeros((B, h.shape[1], S // 2 + 1), dtype=jnp.complex64)
        out_ft = out_ft.at[:, :, :modes].set(
            jnp.einsum('bix,iox->box', ft[:, :, :modes], wc))
        x1 = jnp.fft.irfft(out_ft, n=S, axis=-1).astype(jnp.float32)
        x2 = (jnp.einsum('bis,io->bos', h, params['conv_w'][l])
              + params['conv_b'][l][0][None, :, None])
        h = x1 + x2
        if l < 3:
            h = jax.nn.relu(h)
    h = jnp.transpose(h, (0, 2, 1))
    h = jax.nn.relu(h @ params['fc1_w'] + params['fc1_b'][0])
    out = h @ params['fc2_w'] + params['fc2_b'][0]
    return out[..., 0] + 1j * out[..., 1]


# ---------------------------------- main ---------------------------------------
if __name__ == "__main__":
    modes, width = 8, 32
    B, S = 16, 16

    key = jax.random.PRNGKey(0)
    kx, kt, kp = jax.random.split(key, 3)
    x = jax.random.normal(kx, (B, S, 3), dtype=jnp.float32)
    t = jax.random.uniform(kt, (B,), dtype=jnp.float32)
    params = init_params(kp, modes, width)

    ops = build_operators(params, S, modes)       # precompute once, reuse per call

    # Default: whole batch in one grid step (best for single-TC v5e/v6e).
    out = jax.block_until_ready(fno1d_forward(x, t, ops))
    # Explicit batch tiling: grid=(2,) "parallel" -> both v7x TensorCores.
    out2 = jax.block_until_ready(fno1d_forward(x, t, ops, block_b=8))

    ref = fno_ref(x, t, params, modes)
    scale = float(jnp.max(jnp.abs(ref))) + 1.0
    err = float(jnp.max(jnp.abs(out - ref)))
    err2 = float(jnp.max(jnp.abs(out2 - ref)))

    assert out.shape == (B, S) and jnp.iscomplexobj(out)
    # bf16 MXU operands with f32 accumulation across ~6 chained matmuls -> ~2%.
    if err < 2e-2 * scale and err2 < 2e-2 * scale:
        print("KERNEL_OK")
    else:
        print(f"MISMATCH max_abs_err={err} (tiled: {err2})")
</pallas_src>

<mosaic_0001>
module attributes {stable_mosaic.version = 11 : i64} {
  func.func @_fno_kernel(%arg0: i32, %arg1: memref<16x64xf32, #tpu.memory_space<vmem>>, %arg2: memref<64x512xbf16, #tpu.memory_space<vmem>>, %arg3: memref<1x512xf32, #tpu.memory_space<vmem>>, %arg4: memref<3x512x512xbf16, #tpu.memory_space<vmem>>, %arg5: memref<3x1x512xf32, #tpu.memory_space<vmem>>, %arg6: memref<128x512xbf16, #tpu.memory_space<vmem>>, %arg7: memref<1x512xf32, #tpu.memory_space<vmem>>, %arg8: memref<512x8xbf16, #tpu.memory_space<vmem>>, %arg9: memref<1x8xf32, #tpu.memory_space<vmem>>, %arg10: memref<4x16x8xf32, #tpu.memory_space<vmem>>) attributes {dimension_semantics = [#tpu.dimension_semantics<parallel>], iteration_bounds = array<i64: 1>, scalar_prefetch = 0 : i64, scratch_operands = 0 : i64, tpu.core_type = #tpu.core_type<tc>, window_params = [{transform_indices = @transform_0, window_bounds = array<i64: 16, 64>}, {pipeline_mode = #tpu.pipeline_mode<synchronous>, transform_indices = @transform_1, window_bounds = array<i64: 64, 512>}, {pipeline_mode = #tpu.pipeline_mode<synchronous>, transform_indices = @transform_2, window_bounds = array<i64: 1, 512>}, {pipeline_mode = #tpu.pipeline_mode<synchronous>, transform_indices = @transform_3, window_bounds = array<i64: 3, 512, 512>}, {pipeline_mode = #tpu.pipeline_mode<synchronous>, transform_indices = @transform_4, window_bounds = array<i64: 3, 1, 512>}, {pipeline_mode = #tpu.pipeline_mode<synchronous>, transform_indices = @transform_5, window_bounds = array<i64: 128, 512>}, {pipeline_mode = #tpu.pipeline_mode<synchronous>, transform_indices = @transform_6, window_bounds = array<i64: 1, 512>}, {pipeline_mode = #tpu.pipeline_mode<synchronous>, transform_indices = @transform_7, window_bounds = array<i64: 512, 8>}, {pipeline_mode = #tpu.pipeline_mode<synchronous>, transform_indices = @transform_8, window_bounds = array<i64: 1, 8>}, {transform_indices = @transform_9, window_bounds = array<i64: 4, 16, 8>}]} {
    %c0 = arith.constant 0 : index
    %c0_0 = arith.constant 0 : index
    %0 = vector.load %arg1[%c0, %c0_0] : memref<16x64xf32, #tpu.memory_space<vmem>>, vector<16x64xf32>
    %1 = arith.truncf %0 : vector<16x64xf32> to vector<16x64xbf16>
    %c0_1 = arith.constant 0 : index
    %c0_2 = arith.constant 0 : index
    %2 = vector.load %arg2[%c0_1, %c0_2] : memref<64x512xbf16, #tpu.memory_space<vmem>>, vector<64x512xbf16>
    %cst = arith.constant dense<0.000000e+00> : vector<16x512xf32>
    %3 = tpu.matmul %1, %2, %cst {dimension_numbers = #tpu.dot_dimension_numbers<[1], [0], [0], [1], [0, 0, 1, 1], [], []>} : vector<16x64xbf16>, vector<64x512xbf16>, vector<16x512xf32> -> vector<16x512xf32>
    %c0_3 = arith.constant 0 : index
    %c0_4 = arith.constant 0 : index
    %4 = vector.load %arg3[%c0_3, %c0_4] : memref<1x512xf32, #tpu.memory_space<vmem>>, vector<1x512xf32>
    %5 = vector.broadcast %4 : vector<1x512xf32> to vector<16x512xf32>
    %6 = arith.addf %3, %5 : vector<16x512xf32>
    %cst_5 = arith.constant 0.000000e+00 : f32
    %7 = vector.broadcast %cst_5 : f32 to vector<16x512xf32>
    %8 = arith.maximumf %6, %7 : vector<16x512xf32>
    %9 = arith.truncf %8 : vector<16x512xf32> to vector<16x512xbf16>
    %c0_6 = arith.constant 0 : index
    %c0_7 = arith.constant 0 : index
    %c0_8 = arith.constant 0 : index
    %10 = vector.load %arg4[%c0_6, %c0_7, %c0_8] : memref<3x512x512xbf16, #tpu.memory_space<vmem>>, vector<1x512x512xbf16>
    %11 = vector.shape_cast %10 : vector<1x512x512xbf16> to vector<512x512xbf16>
    %cst_9 = arith.constant dense<0.000000e+00> : vector<16x512xf32>
    %12 = tpu.matmul %9, %11, %cst_9 {dimension_numbers = #tpu.dot_dimension_numbers<[1], [0], [0], [1], [0, 0, 1, 1], [], []>} : vector<16x512xbf16>, vector<512x512xbf16>, vector<16x512xf32> -> vector<16x512xf32>
    %c0_10 = arith.constant 0 : index
    %c0_11 = arith.constant 0 : index
    %c0_12 = arith.constant 0 : index
    %13 = vector.load %arg5[%c0_10, %c0_11, %c0_12] : memref<3x1x512xf32, #tpu.memory_space<vmem>>, vector<1x1x512xf32>
    %14 = vector.shape_cast %13 : vector<1x1x512xf32> to vector<1x512xf32>
    %15 = vector.broadcast %14 : vector<1x512xf32> to vector<16x512xf32>
    %16 = arith.addf %12, %15 : vector<16x512xf32>
    %cst_13 = arith.constant 0.000000e+00 : f32
    %17 = vector.broadcast %cst_13 : f32 to vector<16x512xf32>
    %18 = arith.maximumf %16, %17 : vector<16x512xf32>
    %19 = arith.truncf %18 : vector<16x512xf32> to vector<16x512xbf16>
    %c1 = arith.constant 1 : index
    %c0_14 = arith.constant 0 : index
    %c0_15 = arith.constant 0 : index
    %20 = vector.load %arg4[%c1, %c0_14, %c0_15] : memref<3x512x512xbf16, #tpu.memory_space<vmem>>, vector<1x512x512xbf16>
    %21 = vector.shape_cast %20 : vector<1x512x512xbf16> to vector<512x512xbf16>
    %cst_16 = arith.constant dense<0.000000e+00> : vector<16x512xf32>
    %22 = tpu.matmul %19, %21, %cst_16 {dimension_numbers = #tpu.dot_dimension_numbers<[1], [0], [0], [1], [0, 0, 1, 1], [], []>} : vector<16x512xbf16>, vector<512x512xbf16>, vector<16x512xf32> -> vector<16x512xf32>
    %c1_17 = arith.constant 1 : index
    %c0_18 = arith.constant 0 : index
    %c0_19 = arith.constant 0 : index
    %23 = vector.load %arg5[%c1_17, %c0_18, %c0_19] : memref<3x1x512xf32, #tpu.memory_space<vmem>>, vector<1x1x512xf32>
    %24 = vector.shape_cast %23 : vector<1x1x512xf32> to vector<1x512xf32>
    %25 = vector.broadcast %24 : vector<1x512xf32> to vector<16x512xf32>
    %26 = arith.addf %22, %25 : vector<16x512xf32>
    %cst_20 = arith.constant 0.000000e+00 : f32
    %27 = vector.broadcast %cst_20 : f32 to vector<16x512xf32>
    %28 = arith.maximumf %26, %27 : vector<16x512xf32>
    %29 = arith.truncf %28 : vector<16x512xf32> to vector<16x512xbf16>
    %c2 = arith.constant 2 : index
    %c0_21 = arith.constant 0 : index
    %c0_22 = arith.constant 0 : index
    %30 = vector.load %arg4[%c2, %c0_21, %c0_22] : memref<3x512x512xbf16, #tpu.memory_space<vmem>>, vector<1x512x512xbf16>
    %31 = vector.shape_cast %30 : vector<1x512x512xbf16> to vector<512x512xbf16>
    %cst_23 = arith.constant dense<0.000000e+00> : vector<16x512xf32>
    %32 = tpu.matmul %29, %31, %cst_23 {dimension_numbers = #tpu.dot_dimension_numbers<[1], [0], [0], [1], [0, 0, 1, 1], [], []>} : vector<16x512xbf16>, vector<512x512xbf16>, vector<16x512xf32> -> vector<16x512xf32>
    %c2_24 = arith.constant 2 : index
    %c0_25 = arith.constant 0 : index
    %c0_26 = arith.constant 0 : index
    %33 = vector.load %arg5[%c2_24, %c0_25, %c0_26] : memref<3x1x512xf32, #tpu.memory_space<vmem>>, vector<1x1x512xf32>
    %34 = vector.shape_cast %33 : vector<1x1x512xf32> to vector<1x512xf32>
    %35 = vector.broadcast %34 : vector<1x512xf32> to vector<16x512xf32>
    %36 = arith.addf %32, %35 : vector<16x512xf32>
    %c0_27 = arith.constant 0 : index
    %c0_28 = arith.constant 0 : index
    %37 = vector.load %arg6[%c0_27, %c0_28] : memref<128x512xbf16, #tpu.memory_space<vmem>>, vector<128x512xbf16>
    %c0_29 = arith.constant 0 : index
    %c0_30 = arith.constant 0 : index
    %38 = vector.load %arg7[%c0_29, %c0_30] : memref<1x512xf32, #tpu.memory_space<vmem>>, vector<1x512xf32>
    %c0_31 = arith.constant 0 : index
    %c0_32 = arith.constant 0 : index
    %39 = vector.load %arg8[%c0_31, %c0_32] : memref<512x8xbf16, #tpu.memory_space<vmem>>, vector<512x8xbf16>
    %c0_33 = arith.constant 0 : index
    %c0_34 = arith.constant 0 : index
    %40 = vector.load %arg9[%c0_33, %c0_34] : memref<1x8xf32, #tpu.memory_space<vmem>>, vector<1x8xf32>
    %41 = vector.extract_strided_slice %36 {offsets = [0, 0], sizes = [16, 128], strides = [1, 1]} : vector<16x512xf32> to vector<16x128xf32>
    %42 = arith.truncf %41 : vector<16x128xf32> to vector<16x128xbf16>
    %cst_35 = arith.constant dense<0.000000e+00> : vector<16x512xf32>
    %43 = tpu.matmul %42, %37, %cst_35 {dimension_numbers = #tpu.dot_dimension_numbers<[1], [0], [0], [1], [0, 0, 1, 1], [], []>} : vector<16x128xbf16>, vector<128x512xbf16>, vector<16x512xf32> -> vector<16x512xf32>
    %44 = vector.broadcast %38 : vector<1x512xf32> to vector<16x512xf32>
    %45 = arith.addf %43, %44 : vector<16x512xf32>
    %cst_36 = arith.constant 0.000000e+00 : f32
    %46 = vector.broadcast %cst_36 : f32 to vector<16x512xf32>
    %47 = arith.maximumf %45, %46 : vector<16x512xf32>
    %48 = arith.truncf %47 : vector<16x512xf32> to vector<16x512xbf16>
    %cst_37 = arith.constant dense<0.000000e+00> : vector<16x8xf32>
    %49 = tpu.matmul %48, %39, %cst_37 {dimension_numbers = #tpu.dot_dimension_numbers<[1], [0], [0], [1], [0, 0, 1, 1], [], []>} : vector<16x512xbf16>, vector<512x8xbf16>, vector<16x8xf32> -> vector<16x8xf32>
    %50 = vector.broadcast %40 : vector<1x8xf32> to vector<16x8xf32>
    %51 = arith.addf %49, %50 : vector<16x8xf32>
    %c0_38 = arith.constant 0 : index
    %c0_39 = arith.constant 0 : index
    %c0_40 = arith.constant 0 : index
    %52 = vector.load %arg10[%c0_38, %c0_39, %c0_40] : memref<4x16x8xf32, #tpu.memory_space<vmem>>, vector<1x16x8xf32>
    %53 = vector.shape_cast %52 : vector<1x16x8xf32> to vector<16x8xf32>
    %54 = vector.shape_cast %51 : vector<16x8xf32> to vector<1x16x8xf32>
    tpu.vector_store %arg10[%c0_38, %c0_39, %c0_40], %54 {strides = array<i32>} : memref<4x16x8xf32, #tpu.memory_space<vmem>>, vector<1x16x8xf32>,
    %55 = vector.extract_strided_slice %36 {offsets = [0, 128], sizes = [16, 128], strides = [1, 1]} : vector<16x512xf32> to vector<16x128xf32>
    %56 = arith.truncf %55 : vector<16x128xf32> to vector<16x128xbf16>
    %cst_41 = arith.constant dense<0.000000e+00> : vector<16x512xf32>
    %57 = tpu.matmul %56, %37, %cst_41 {dimension_numbers = #tpu.dot_dimension_numbers<[1], [0], [0], [1], [0, 0, 1, 1], [], []>} : vector<16x128xbf16>, vector<128x512xbf16>, vector<16x512xf32> -> vector<16x512xf32>
    %58 = vector.broadcast %38 : vector<1x512xf32> to vector<16x512xf32>
    %59 = arith.addf %57, %58 : vector<16x512xf32>
    %cst_42 = arith.constant 0.000000e+00 : f32
    %60 = vector.broadcast %cst_42 : f32 to vector<16x512xf32>
    %61 = arith.maximumf %59, %60 : vector<16x512xf32>
    %62 = arith.truncf %61 : vector<16x512xf32> to vector<16x512xbf16>
    %cst_43 = arith.constant dense<0.000000e+00> : vector<16x8xf32>
    %63 = tpu.matmul %62, %39, %cst_43 {dimension_numbers = #tpu.dot_dimension_numbers<[1], [0], [0], [1], [0, 0, 1, 1], [], []>} : vector<16x512xbf16>, vector<512x8xbf16>, vector<16x8xf32> -> vector<16x8xf32>
    %64 = vector.broadcast %40 : vector<1x8xf32> to vector<16x8xf32>
    %65 = arith.addf %63, %64 : vector<16x8xf32>
    %c1_44 = arith.constant 1 : index
    %c0_45 = arith.constant 0 : index
    %c0_46 = arith.constant 0 : index
    %66 = vector.load %arg10[%c1_44, %c0_45, %c0_46] : memref<4x16x8xf32, #tpu.memory_space<vmem>>, vector<1x16x8xf32>
    %67 = vector.shape_cast %66 : vector<1x16x8xf32> to vector<16x8xf32>
    %68 = vector.shape_cast %65 : vector<16x8xf32> to vector<1x16x8xf32>
    tpu.vector_store %arg10[%c1_44, %c0_45, %c0_46], %68 {strides = array<i32>} : memref<4x16x8xf32, #tpu.memory_space<vmem>>, vector<1x16x8xf32>,
    %69 = vector.extract_strided_slice %36 {offsets = [0, 256], sizes = [16, 128], strides = [1, 1]} : vector<16x512xf32> to vector<16x128xf32>
    %70 = arith.truncf %69 : vector<16x128xf32> to vector<16x128xbf16>
    %cst_47 = arith.constant dense<0.000000e+00> : vector<16x512xf32>
    %71 = tpu.matmul %70, %37, %cst_47 {dimension_numbers = #tpu.dot_dimension_numbers<[1], [0], [0], [1], [0, 0, 1, 1], [], []>} : vector<16x128xbf16>, vector<128x512xbf16>, vector<16x512xf32> -> vector<16x512xf32>
    %72 = vector.broadcast %38 : vector<1x512xf32> to vector<16x512xf32>
    %73 = arith.addf %71, %72 : vector<16x512xf32>
    %cst_48 = arith.constant 0.000000e+00 : f32
    %74 = vector.broadcast %cst_48 : f32 to vector<16x512xf32>
    %75 = arith.maximumf %73, %74 : vector<16x512xf32>
    %76 = arith.truncf %75 : vector<16x512xf32> to vector<16x512xbf16>
    %cst_49 = arith.constant dense<0.000000e+00> : vector<16x8xf32>
    %77 = tpu.matmul %76, %39, %cst_49 {dimension_numbers = #tpu.dot_dimension_numbers<[1], [0], [0], [1], [0, 0, 1, 1], [], []>} : vector<16x512xbf16>, vector<512x8xbf16>, vector<16x8xf32> -> vector<16x8xf32>
    %78 = vector.broadcast %40 : vector<1x8xf32> to vector<16x8xf32>
    %79 = arith.addf %77, %78 : vector<16x8xf32>
    %c2_50 = arith.constant 2 : index
    %c0_51 = arith.constant 0 : index
    %c0_52 = arith.constant 0 : index
    %80 = vector.load %arg10[%c2_50, %c0_51, %c0_52] : memref<4x16x8xf32, #tpu.memory_space<vmem>>, vector<1x16x8xf32>
    %81 = vector.shape_cast %80 : vector<1x16x8xf32> to vector<16x8xf32>
    %82 = vector.shape_cast %79 : vector<16x8xf32> to vector<1x16x8xf32>
    tpu.vector_store %arg10[%c2_50, %c0_51, %c0_52], %82 {strides = array<i32>} : memref<4x16x8xf32, #tpu.memory_space<vmem>>, vector<1x16x8xf32>,
    %83 = vector.extract_strided_slice %36 {offsets = [0, 384], sizes = [16, 128], strides = [1, 1]} : vector<16x512xf32> to vector<16x128xf32>
    %84 = arith.truncf %83 : vector<16x128xf32> to vector<16x128xbf16>
    %cst_53 = arith.constant dense<0.000000e+00> : vector<16x512xf32>
    %85 = tpu.matmul %84, %37, %cst_53 {dimension_numbers = #tpu.dot_dimension_numbers<[1], [0], [0], [1], [0, 0, 1, 1], [], []>} : vector<16x128xbf16>, vector<128x512xbf16>, vector<16x512xf32> -> vector<16x512xf32>
    %86 = vector.broadcast %38 : vector<1x512xf32> to vector<16x512xf32>
    %87 = arith.addf %85, %86 : vector<16x512xf32>
    %cst_54 = arith.constant 0.000000e+00 : f32
    %88 = vector.broadcast %cst_54 : f32 to vector<16x512xf32>
    %89 = arith.maximumf %87, %88 : vector<16x512xf32>
    %90 = arith.truncf %89 : vector<16x512xf32> to vector<16x512xbf16>
    %cst_55 = arith.constant dense<0.000000e+00> : vector<16x8xf32>
    %91 = tpu.matmul %90, %39, %cst_55 {dimension_numbers = #tpu.dot_dimension_numbers<[1], [0], [0], [1], [0, 0, 1, 1], [], []>} : vector<16x512xbf16>, vector<512x8xbf16>, vector<16x8xf32> -> vector<16x8xf32>
    %92 = vector.broadcast %40 : vector<1x8xf32> to vector<16x8xf32>
    %93 = arith.addf %91, %92 : vector<16x8xf32>
    %c3 = arith.constant 3 : index
    %c0_56 = arith.constant 0 : index
    %c0_57 = arith.constant 0 : index
    %94 = vector.load %arg10[%c3, %c0_56, %c0_57] : memref<4x16x8xf32, #tpu.memory_space<vmem>>, vector<1x16x8xf32>
    %95 = vector.shape_cast %94 : vector<1x16x8xf32> to vector<16x8xf32>
    %96 = vector.shape_cast %93 : vector<16x8xf32> to vector<1x16x8xf32>
    tpu.vector_store %arg10[%c3, %c0_56, %c0_57], %96 {strides = array<i32>} : memref<4x16x8xf32, #tpu.memory_space<vmem>>, vector<1x16x8xf32>,
    return
  }
  func.func @transform_0(%arg0: i32) -> (i32, i32) {
    %c0_i32 = arith.constant 0 : i32
    %c0_i32_0 = arith.constant 0 : i32
    return %arg0, %c0_i32 : i32, i32
  }
  func.func @transform_1(%arg0: i32) -> (i32, i32) {
    %c0_i32 = arith.constant 0 : i32
    %c0_i32_0 = arith.constant 0 : i32
    %c0_i32_1 = arith.constant 0 : i32
    return %c0_i32, %c0_i32_0 : i32, i32
  }
  func.func @transform_2(%arg0: i32) -> (i32, i32) {
    %c0_i32 = arith.constant 0 : i32
    %c0_i32_0 = arith.constant 0 : i32
    %c0_i32_1 = arith.constant 0 : i32
    return %c0_i32, %c0_i32_0 : i32, i32
  }
  func.func @transform_3(%arg0: i32) -> (i32, i32, i32) {
    %c0_i32 = arith.constant 0 : i32
    %c0_i32_0 = arith.constant 0 : i32
    %c0_i32_1 = arith.constant 0 : i32
    %c0_i32_2 = arith.constant 0 : i32
    return %c0_i32, %c0_i32_0, %c0_i32_1 : i32, i32, i32
  }
  func.func @transform_4(%arg0: i32) -> (i32, i32, i32) {
    %c0_i32 = arith.constant 0 : i32
    %c0_i32_0 = arith.constant 0 : i32
    %c0_i32_1 = arith.constant 0 : i32
    %c0_i32_2 = arith.constant 0 : i32
    return %c0_i32, %c0_i32_0, %c0_i32_1 : i32, i32, i32
  }
  func.func @transform_5(%arg0: i32) -> (i32, i32) {
    %c0_i32 = arith.constant 0 : i32
    %c0_i32_0 = arith.constant 0 : i32
    %c0_i32_1 = arith.constant 0 : i32
    return %c0_i32, %c0_i32_0 : i32, i32
  }
  func.func @transform_6(%arg0: i32) -> (i32, i32) {
    %c0_i32 = arith.constant 0 : i32
    %c0_i32_0 = arith.constant 0 : i32
    %c0_i32_1 = arith.constant 0 : i32
    return %c0_i32, %c0_i32_0 : i32, i32
  }
  func.func @transform_7(%arg0: i32) -> (i32, i32) {
    %c0_i32 = arith.constant 0 : i32
    %c0_i32_0 = arith.constant 0 : i32
    %c0_i32_1 = arith.constant 0 : i32
    return %c0_i32, %c0_i32_0 : i32, i32
  }
  func.func @transform_8(%arg0: i32) -> (i32, i32) {
    %c0_i32 = arith.constant 0 : i32
    %c0_i32_0 = arith.constant 0 : i32
    %c0_i32_1 = arith.constant 0 : i32
    return %c0_i32, %c0_i32_0 : i32, i32
  }
  func.func @transform_9(%arg0: i32) -> (i32, i32, i32) {
    %c0_i32 = arith.constant 0 : i32
    %c0_i32_0 = arith.constant 0 : i32
    %c0_i32_1 = arith.constant 0 : i32
    return %c0_i32, %arg0, %c0_i32_0 : i32, i32, i32
  }
}

</mosaic_0001>

<bundles_post_ra>
// kernel: custom-call
= control target key start
LH: loop header
LB: loop body
LE: loop exit
PB: predicated region body
PF: predicated region fallthrough
CT: control target
= control target key end

     0   :  { %s62_s0 = inlined_call_operand.vmem [shape: f32[16,16], index: 0, kind: input, shape index: {}]   ;;  %s63_s1 = inlined_call_operand.vmem [shape: f32[16,16], index: 1, kind: input, shape index: {}]   ;;  %s64_s2 = inlined_call_operand.vmem [shape: c64[16,16], index: 2, kind: output, shape index: {}]  }
   0x1   :  { %v5_v0 = vld [vmem:[%s62_s0] sm:$0xff]  ;;  %v18_v1 = vld [vmem:[%s62_s0 + $0x8] sm:$0xff] }
   0x2   :  { %v11_v2 = vld [vmem:[%s63_s1] sm:$0xff]  ;;  %6 = vst [vmem:[%s64_s2] sm:$0xff] %v5_v0  ;;  %19 = vst [vmem:[%s64_s2 + $0x8] sm:$0xff] %v18_v1  ;;  %v21_v3 = vld [vmem:[%s63_s1 + $0x8] sm:$0xff] }
   0x3   :  { %20 = vst [vmem:[%s64_s2 + $0x10] sm:$0xff] %v11_v2  ;;  %22 = vst [vmem:[%s64_s2 + $0x18] sm:$0xff] %v21_v3 }

// kernel: fno1d_forward.1
= control target key start
LH: loop header
LB: loop body
LE: loop exit
PB: predicated region body
PF: predicated region fallthrough
CT: control target
= control target key end

     0   :  { %14 = vsyncpa [#allocation3], 0  ;;  %s6839_s0 = inlined_call_operand.vmem [shape: f32[16,64], index: 0, kind: input, shape index: {}]   ;;  %s6840_s1 = inlined_call_operand.hbm [shape: bf16[64,512], index: 1, kind: input, shape index: {}]   ;;  %s6841_s2 = inlined_call_operand.hbm [shape: f32[1,512], index: 2, kind: input, shape index: {}]   ;;  %s6842_s3 = inlined_call_operand.hbm [shape: bf16[3,512,512], index: 3, kind: input, shape index: {}]   ;;  %s6843_s4 = inlined_call_operand.hbm [shape: f32[3,1,512], index: 4, kind: input, shape index: {}]   ;;  %s6844_s5 = inlined_call_operand.hbm [shape: bf16[128,512], index: 5, kind: input, shape index: {}]   ;;  %s6845_s6 = inlined_call_operand.hbm [shape: f32[1,512], index: 6, kind: input, shape index: {}]   ;;  %s6846_s7 = inlined_call_operand.vmem [shape: bf16[512,8], index: 7, kind: input, shape index: {}]   ;;  %s6847_s8 = inlined_call_operand.hbm [shape: f32[1,8], index: 8, kind: input, shape index: {}]   ;;  %s6848_s9 = inlined_call_operand.vmem [shape: f32[4,16,8], index: 9, kind: output, shape index: {}]  }
   0x1   :  { %15 = vsyncpa [#allocation5], 0 }
   0x2   :  { %16 = vsyncpa [#allocation8], 0 }
   0x3   :  { %17 = vsyncpa [#allocation11], 0  ;;  %s6031_s30 = smov [#allocation4]   ;;  %s6032_s11 = smov [#allocation7]  }
   0x4   :  { %s38_s10 = sshll.u32 %s6031_s30, 4  ;;  %s59_s12 = sshll.u32 %s6032_s11, 4  ;;  %s39_s10 = int_to_ptr.vmem [resolvable:$true] %s38_s10  ;;  %s6093_s12 = int_to_ptr.vmem [resolvable:$true] %s59_s12 }
   0x5   :  { %s5869_s15 = scalar_lea.hbm %s6841_s2, 64 }
   0x6   :  { %p5870_p0 = scmp.ne.s32.totalorder %s6841_s2, %s5869_s15  ;;  %p5873_p1 = scmp.lt.u32.totalorder %s5869_s15, %s6841_s2 }
   0x8   :  { %p5875_p2 = pnand %p5873_p1, %p5870_p0 }
   0xa   :  { %5878 = shalt.err (!%p5875_p2)
}
   0xb   :  { %s5879_s20 = scalar_lea.vmem %s39_s10, 64  ;;  %p5884_p4 = scmp.lt.s32.totalorder %s39_s10, %s39_s10 }
   0xc   :  { %p5880_p3 = scmp.ne.s32.totalorder %s39_s10, %s5879_s20  ;;  %p5885_p5 = scmp.lt.s32.totalorder %s5879_s20, %s5879_s20 }
   0xe   :  { %p5886_p6 = por %p5885_p5, %p5884_p4 }
  0x10   :  { %p5887_p7 = pnand %p5886_p6, %p5880_p3 }
  0x12   :  { %5890 = shalt.err (!%p5887_p7)
}
  0x13   :  { %41 = dma.hbm_to_vmem [thread:$0]  %s6841_s2, 64, %s39_s10, [#allocation5]  }
  0x14   :  { %s5891_s25 = scalar_lea.hbm %s6843_s4, 192 }
  0x15   :  { %p5892_p8 = scmp.ne.s32.totalorder %s6843_s4, %s5891_s25  ;;  %p5895_p9 = scmp.lt.u32.totalorder %s5891_s25, %s6843_s4 }
  0x17   :  { %p5897_p10 = pnand %p5895_p9, %p5892_p8 }
  0x19   :  { %5900 = shalt.err (!%p5897_p10)
}
  0x1a   :  { %s5901_s30 = scalar_lea.vmem %s6093_s12, 192  ;;  %p5906_p12 = scmp.lt.s32.totalorder %s6093_s12, %s6093_s12 }
  0x1b   :  { %p5902_p11 = scmp.ne.s32.totalorder %s6093_s12, %s5901_s30  ;;  %p5907_p13 = scmp.lt.s32.totalorder %s5901_s30, %s5901_s30 }
  0x1d   :  { %p5908_p0 = por %p5907_p13, %p5906_p12 }
  0x1f   :  { %p5909_p1 = pnand %p5908_p0, %p5902_p11 }
  0x21   :  { %5912 = shalt.err (!%p5909_p1)
}
  0x22   :  { %s6033_s2 = smov 64   ;;  %s6034_s10 = smov 4  }
  0x23   :  { %65 = dma.hbm_to_vmem [thread:$0]  %s6843_s4, 192, %s6093_s12, [#allocation8], %s6033_s2, %s6033_s2, %s6034_s10  }
  0x24   :  { %s6035_s14 = smov [#allocation10]   ;;  %s6036_s16 = smov [#allocation2]  }
  0x25   :  { %s84_s15 = sshll.u32 %s6035_s14, 4  ;;  %s25_s17 = sshll.u32 %s6036_s16, 4  ;;  %s85_s15 = int_to_ptr.vmem [resolvable:$true] %s84_s15  ;;  %s6124_s17 = int_to_ptr.vmem [resolvable:$true] %s25_s17 }
  0x26   :  { %s5913_s20 = scalar_lea.hbm %s6845_s6, 64 }
  0x27   :  { %p5914_p2 = scmp.ne.s32.totalorder %s6845_s6, %s5913_s20  ;;  %p5917_p3 = scmp.lt.u32.totalorder %s5913_s20, %s6845_s6 }
  0x29   :  { %p5919_p4 = pnand %p5917_p3, %p5914_p2 }
  0x2b   :  { %5922 = shalt.err (!%p5919_p4)
}
  0x2c   :  { %s5923_s4 = scalar_lea.vmem %s85_s15, 64  ;;  %p5928_p6 = scmp.lt.s32.totalorder %s85_s15, %s85_s15 }
  0x2d   :  { %p5924_p5 = scmp.ne.s32.totalorder %s85_s15, %s5923_s4  ;;  %p5929_p7 = scmp.lt.s32.totalorder %s5923_s4, %s5923_s4 }
  0x2f   :  { %p5930_p8 = por %p5929_p7, %p5928_p6 }
  0x31   :  { %p5931_p9 = pnand %p5930_p8, %p5924_p5 }
  0x33   :  { %5934 = shalt.err (!%p5931_p9)
}
  0x34   :  { %87 = dma.hbm_to_vmem [thread:$0]  %s6845_s6, 64, %s85_s15, [#allocation11]  }
  0x35   :  { %s5935_s28 = scalar_lea.hbm %s6840_s1, 2048 }
  0x36   :  { %p5936_p10 = scmp.ne.s32.totalorder %s6840_s1, %s5935_s28  ;;  %p5939_p11 = scmp.lt.u32.totalorder %s5935_s28, %s6840_s1 }
  0x38   :  { %p5941_p12 = pnand %p5939_p11, %p5936_p10 }
  0x3a   :  { %5944 = shalt.err (!%p5941_p12)
}
  0x3b   :  { %s5945_s11 = scalar_lea.vmem %s6124_s17, 2048  ;;  %p5950_p0 = scmp.lt.s32.totalorder %s6124_s17, %s6124_s17 }
  0x3c   :  { %p5946_p13 = scmp.ne.s32.totalorder %s6124_s17, %s5945_s11  ;;  %p5951_p1 = scmp.lt.s32.totalorder %s5945_s11, %s5945_s11 }
  0x3e   :  { %p5952_p2 = por %p5951_p1, %p5950_p0 }
  0x40   :  { %p5953_p3 = pnand %p5952_p2, %p5946_p13 }
  0x42   :  { %5956 = shalt.err (!%p5953_p3)
}
  0x43   :  { %s6037_s6 = smov 256   ;;  %s6038_s13 = smov 16  }
  0x44   :  { %31 = dma.hbm_to_vmem [thread:$0]  %s6840_s1, 2048, %s6124_s17, [#allocation3], %s6037_s6, %s6037_s6, %s6038_s13  }
  0x45   :  { %s6039_s16 = smov [#allocation6]   ;;  %s6040_s19 = smov [#allocation9]  }
  0x46   :  { %s47_s18 = sshll.u32 %s6039_s16, 4  ;;  %s71_s20 = sshll.u32 %s6040_s19, 4  ;;  %s48_s18 = int_to_ptr.vmem [resolvable:$true] %s47_s18  ;;  %s6158_s20 = int_to_ptr.vmem [resolvable:$true] %s71_s20 }
  0x47   :  { %s5957_s23 = scalar_lea.hbm %s6842_s3, 49152 }
  0x48   :  { %p5958_p4 = scmp.ne.s32.totalorder %s6842_s3, %s5957_s23  ;;  %p5961_p5 = scmp.lt.u32.totalorder %s5957_s23, %s6842_s3 }
  0x4a   :  { %p5963_p6 = pnand %p5961_p5, %p5958_p4 }
  0x4c   :  { %5966 = shalt.err (!%p5963_p6)
}
  0x4d   :  { %s5967_s1 = scalar_lea.vmem %s48_s18, 49152  ;;  %p5972_p8 = scmp.lt.s32.totalorder %s48_s18, %s48_s18 }
  0x4e   :  { %p5968_p7 = scmp.ne.s32.totalorder %s48_s18, %s5967_s1  ;;  %p5973_p9 = scmp.lt.s32.totalorder %s5967_s1, %s5967_s1 }
  0x50   :  { %p5974_p10 = por %p5973_p9, %p5972_p8 }
  0x52   :  { %p5975_p11 = pnand %p5974_p10, %p5968_p7 }
  0x54   :  { %5978 = shalt.err (!%p5975_p11)
}
  0x55   :  { %53 = dma.hbm_to_vmem [thread:$0]  %s6842_s3, 49152, %s48_s18, [#allocation5], %s6037_s6, %s6037_s6, %s6038_s13  }
  0x56   :  { %s5979_s29 = scalar_lea.hbm %s6844_s5, 4096 }
  0x57   :  { %p5980_p12 = scmp.ne.s32.totalorder %s6844_s5, %s5979_s29  ;;  %p5983_p13 = scmp.lt.u32.totalorder %s5979_s29, %s6844_s5 }
  0x59   :  { %p5985_p0 = pnand %p5983_p13, %p5980_p12 }
  0x5b   :  { %5988 = shalt.err (!%p5985_p0)
}
  0x5c   :  { %s5989_s14 = scalar_lea.vmem %s6158_s20, 4096  ;;  %p5994_p2 = scmp.lt.s32.totalorder %s6158_s20, %s6158_s20 }
  0x5d   :  { %p5990_p1 = scmp.ne.s32.totalorder %s6158_s20, %s5989_s14  ;;  %p5995_p3 = scmp.lt.s32.totalorder %s5989_s14, %s5989_s14 }
  0x5f   :  { %p5996_p4 = por %p5995_p3, %p5994_p2 }
  0x61   :  { %p5997_p5 = pnand %p5996_p4, %p5990_p1 }
  0x63   :  { %6000 = shalt.err (!%p5997_p5)
}
  0x64   :  { %77 = dma.hbm_to_vmem [thread:$0]  %s6844_s5, 4096, %s6158_s20, [#allocation8], %s6037_s6, %s6037_s6, %s6038_s13  }
  0x65   :  { %s6041_s16 = smov [#allocation12]   ;;  %s6001_s22 = scalar_lea.hbm %s6847_s8, 16 }
  0x66   :  { %s96_s18 = sshll.u32 %s6041_s16, 4  ;;  %p6002_p6 = scmp.ne.s32.totalorder %s6847_s8, %s6001_s22  ;;  %s97_s18 = int_to_ptr.vmem [resolvable:$true] %s96_s18 }
  0x67   :  { %p6005_p7 = scmp.lt.u32.totalorder %s6001_s22, %s6847_s8 }
  0x69   :  { %p6007_p8 = pnand %p6005_p7, %p6002_p6 }
  0x6b   :  { %6010 = shalt.err (!%p6007_p8)
}
  0x6c   :  { %s6011_s25 = scalar_lea.vmem %s97_s18, 16  ;;  %s6015_s5 = scalar_lea.vmem %s97_s18, 32 }
  0x6d   :  { %p6012_p9 = scmp.ne.s32.totalorder %s97_s18, %s6011_s25  ;;  %p6016_p10 = scmp.lt.s32.totalorder %s97_s18, %s97_s18 }
  0x6e   :  { %p6017_p11 = scmp.lt.s32.totalorder %s6015_s5, %s6011_s25 }
  0x70   :  { %p6018_p12 = por %p6017_p11, %p6016_p10 }
  0x72   :  { %p6019_p13 = pnand %p6018_p12, %p6012_p9 }
  0x74   :  { %6022 = shalt.err (!%p6019_p13)
}
  0x75   :  { %99 = dma.hbm_to_vmem [thread:$0]  %s6847_s8, 16, %s97_s18, [#allocation11]  }
  0x76   :  { %6023 = dma.done.wait [#allocation3], 2048  }
  0x77   :  { %6024 = vsyncadd [#allocation3], 4294965248 }
  0x78   :  { %6025 = dma.done.wait [#allocation5], 49216  }
  0x79   :  { %6026 = vsyncadd [#allocation5], 4294918080 }
  0x7a   :  { %6027 = dma.done.wait [#allocation8], 4288  }
  0x7b   :  { %6028 = vsyncadd [#allocation8], 4294963008 }
  0x7c   :  { %6029 = dma.done.wait [#allocation11], 80  }
  0x7d   :  { %6030 = vsyncadd [#allocation11], 4294967216  ;;  %v6849_v0 = vmov 0   ;;  %v5189_v1 = vld [vmem:[#allocation2 + $0x4] ss:$16 sps:$4 sm:$0xff]   ;;  %v123_v15 = vld [vmem:[%s6839_s0 + $0x8] sm:$0xff] }
  0x7e   :  { %279 = vmatprep.mubr.bf16.mxu0 %v6849_v0  ;;  %322 = vmatprep.mubr.bf16.mxu1 %v6849_v0  ;;  %v5191_v2 = vld [vmem:[#allocation2] ss:$16 sps:$4 sm:$0xff]   ;;  %v5192_v3 = vld [vmem:[#allocation2 + $0x24] ss:$16 sps:$4 sm:$0xff]   ;;  %v5201_v7 = vld [vmem:[#allocation2 + $0xc] ss:$16 sps:$4 sm:$0xff]  }
  0x7f   :  { %247 = vmatprep.subr.bf16.mxu0 %v5189_v1  ;;  %v5194_v4 = vld [vmem:[#allocation2 + $0x20] ss:$16 sps:$4 sm:$0xff]   ;;  %v5195_v5 = vld [vmem:[#allocation2 + $0x44] ss:$16 sps:$4 sm:$0xff]   ;;  %v5203_v8 = vld [vmem:[#allocation2 + $0x8] ss:$16 sps:$4 sm:$0xff]   ;;  %290 = vmatprep.subr.bf16.mxu1 %v5201_v7 }
  0x80   :  { %248 = vmatpush1.bf16.msra.mxu0 %v5191_v2  ;;  %v5197_v6 = vld [vmem:[#allocation2 + $0x40] ss:$16 sps:$4 sm:$0xff]   ;;  %v5198_v9 = vld [vmem:[#allocation2 + $0x64] ss:$16 sps:$4 sm:$0xff]   ;;  %v5204_v10 = vld [vmem:[#allocation2 + $0x2c] ss:$16 sps:$4 sm:$0xff]   ;;  %291 = vmatpush1.bf16.msra.mxu1 %v5203_v8 }
  0x81   :  { %249 = vmatprep.subr.bf16.mxu0 %v5192_v3  ;;  %v5200_v11 = vld [vmem:[#allocation2 + $0x60] ss:$16 sps:$4 sm:$0xff]   ;;  %v5206_v13 = vld [vmem:[#allocation2 + $0x28] ss:$16 sps:$4 sm:$0xff]   ;;  %292 = vmatprep.subr.bf16.mxu1 %v5204_v10  ;;  %v5207_v14 = vld [vmem:[#allocation2 + $0x4c] ss:$16 sps:$4 sm:$0xff]  }
  0x82   :  { %v122_v12 = vld [vmem:[%s6839_s0] sm:$0xff]  ;;  %v5215_v16 = vld [vmem:[#allocation6 + $0x4] ss:$16 sps:$4 sm:$0xff]   ;;  %v5210_v19 = vld [vmem:[#allocation2 + $0x6c] ss:$16 sps:$4 sm:$0xff]   ;;  %vm243_vm0 = vcmask 523264  }
  0x83   :  { %v5209_v17 = vld [vmem:[#allocation2 + $0x48] ss:$16 sps:$4 sm:$0xff]   ;;  %v124_v18 = vpack.c.bf16 %v123_v15, %v122_v12  ;;  %v5213_v20 = vld [vmem:[#allocation6] ss:$16 sps:$4 sm:$0xff]   ;;  %v5218_v23 = vld [vmem:[#allocation6 + $0xc] ss:$16 sps:$4 sm:$0xff]  }
  0x84   :  { %250 = vmatpush1.bf16.msra.mxu0 %v5194_v4  ;;  %293 = vmatpush1.bf16.msra.mxu1 %v5206_v13  ;;  %v5221_v21 = vld [vmem:[#allocation6 + $0x24] ss:$16 sps:$4 sm:$0xff]   ;;  %v5219_v24 = vld [vmem:[#allocation6 + $0x20] ss:$16 sps:$4 sm:$0xff]   ;;  %v5216_v26 = vld [vmem:[#allocation6 + $0x8] ss:$16 sps:$4 sm:$0xff]  }
  0x85   :  { %251 = vmatprep.subr.bf16.mxu0 %v5195_v5  ;;  %294 = vmatprep.subr.bf16.mxu1 %v5207_v14  ;;  %v5212_v22 = vld [vmem:[#allocation2 + $0x68] ss:$16 sps:$4 sm:$0xff]   ;;  %v5224_v27 = vld [vmem:[#allocation6 + $0x2c] ss:$16 sps:$4 sm:$0xff]   ;;  %v5225_v28 = vld [vmem:[#allocation6 + $0x40] ss:$16 sps:$4 sm:$0xff]  }
  0x86   :  { %v5227_v25 = vld [vmem:[#allocation6 + $0x44] ss:$16 sps:$4 sm:$0xff]   ;;  %v5222_v30 = vld [vmem:[#allocation6 + $0x28] ss:$16 sps:$4 sm:$0xff]   ;;  %v5230_v31 = vld [vmem:[#allocation6 + $0x4c] ss:$16 sps:$4 sm:$0xff]  }
  0x87   :  { %v5233_v29 = vld [vmem:[#allocation6 + $0x64] ss:$16 sps:$4 sm:$0xff]   ;;  %v5231_v32 = vld [vmem:[#allocation6 + $0x60] ss:$16 sps:$4 sm:$0xff]   ;;  %v5228_v34 = vld [vmem:[#allocation6 + $0x48] ss:$16 sps:$4 sm:$0xff]  }
  0x88   :  { %252 = vmatpush1.bf16.msra.mxu0 %v5197_v6  ;;  %295 = vmatpush1.bf16.msra.mxu1 %v5209_v17  ;;  %v5239_v33 = vld [vmem:[#allocation6 + $0x84] ss:$16 sps:$4 sm:$0xff]   ;;  %v5236_v35 = vld [vmem:[#allocation6 + $0x6c] ss:$16 sps:$4 sm:$0xff]   ;;  %v5237_v36 = vld [vmem:[#allocation6 + $0x80] ss:$16 sps:$4 sm:$0xff]  }
  0x89   :  { %253 = vmatprep.subr.bf16.mxu0 %v5198_v9  ;;  %296 = vmatprep.subr.bf16.mxu1 %v5210_v19  ;;  %v5245_v37 = vld [vmem:[#allocation6 + $0xa4] ss:$16 sps:$4 sm:$0xff]   ;;  %v5234_v38 = vld [vmem:[#allocation6 + $0x68] ss:$16 sps:$4 sm:$0xff]   ;;  %v5242_v39 = vld [vmem:[#allocation6 + $0x8c] ss:$16 sps:$4 sm:$0xff]  }
  0x8a   :  { %v5243_v40 = vld [vmem:[#allocation6 + $0xa0] ss:$16 sps:$4 sm:$0xff]   ;;  %v5251_v41 = vld [vmem:[#allocation6 + $0xc4] ss:$16 sps:$4 sm:$0xff]   ;;  %v5240_v42 = vld [vmem:[#allocation6 + $0x88] ss:$16 sps:$4 sm:$0xff]  }
  0x8b   :  { %v5248_v43 = vld [vmem:[#allocation6 + $0xac] ss:$16 sps:$4 sm:$0xff]   ;;  %v5249_v44 = vld [vmem:[#allocation6 + $0xc0] ss:$16 sps:$4 sm:$0xff]   ;;  %v5257_v45 = vld [vmem:[#allocation6 + $0xe4] ss:$16 sps:$4 sm:$0xff]  }
  0x8c   :  { %254 = vmatpush1.bf16.msra.mxu0 %v5200_v11  ;;  %297 = vmatpush1.bf16.msra.mxu1 %v5212_v22  ;;  %v5246_v46 = vld [vmem:[#allocation6 + $0xa8] ss:$16 sps:$4 sm:$0xff]   ;;  %v5254_v47 = vld [vmem:[#allocation6 + $0xcc] ss:$16 sps:$4 sm:$0xff]   ;;  %v5255_v48 = vld [vmem:[#allocation6 + $0xe0] ss:$16 sps:$4 sm:$0xff]  }
  0x8d   :  { %1135 = vmatprep.subr.bf16.mxu0 %v5215_v16  ;;  %1221 = vmatprep.subr.bf16.mxu1 %v5218_v23  ;;  %v5263_v49 = vld [vmem:[#allocation6 + $0x104] ss:$16 sps:$4 sm:$0xff]   ;;  %v5252_v50 = vld [vmem:[#allocation6 + $0xc8] ss:$16 sps:$4 sm:$0xff]   ;;  %v5260_v51 = vld [vmem:[#allocation6 + $0xec] ss:$16 sps:$4 sm:$0xff]   ;;  %v143_v23 = vlaneseq }
  0x8e   :  { %v5261_v52 = vld [vmem:[#allocation6 + $0x100] ss:$16 sps:$4 sm:$0xff]   ;;  %v5258_v53 = vld [vmem:[#allocation6 + $0xe8] ss:$16 sps:$4 sm:$0xff]   ;;  %v5266_v54 = vld [vmem:[#allocation6 + $0x10c] ss:$16 sps:$4 sm:$0xff]  }
  0x8f   :  { %4496 = vmatmul.mubr.msk.bf16.vlgmr.msra.gmra.mrb[0].mxu0 %vm243_vm0, %v124_v18  ;;  %4497 = vmatmul.mubr.msk.bf16.vlgmr.msra.gmra.mrb[0].mxu1 %vm243_vm0, %v124_v18  ;;  %v5269_v55 = vld [vmem:[#allocation6 + $0x124] ss:$16 sps:$4 sm:$0xff]   ;;  %v5267_v56 = vld [vmem:[#allocation6 + $0x120] ss:$16 sps:$4 sm:$0xff]   ;;  %v5264_v58 = vld [vmem:[#allocation6 + $0x108] ss:$16 sps:$4 sm:$0xff]  }
  0x90   :  { %1136 = vmatpush1.bf16.msra.mxu0 %v5213_v20  ;;  %1222 = vmatpush1.bf16.msra.mxu1 %v5216_v26  ;;  %v5275_v57 = vld [vmem:[#allocation6 + $0x144] ss:$16 sps:$4 sm:$0xff]   ;;  %v5272_v59 = vld [vmem:[#allocation6 + $0x12c] ss:$16 sps:$4 sm:$0xff]   ;;  %v5273_v60 = vld [vmem:[#allocation6 + $0x140] ss:$16 sps:$4 sm:$0xff]  }
  0x91   :  { %1137 = vmatprep.subr.bf16.mxu0 %v5221_v21  ;;  %1223 = vmatprep.subr.bf16.mxu1 %v5224_v27  ;;  %v5281_v61 = vld [vmem:[#allocation6 + $0x164] ss:$16 sps:$4 sm:$0xff]   ;;  %v5270_v62 = vld [vmem:[#allocation6 + $0x128] ss:$16 sps:$4 sm:$0xff]   ;;  %v5278_v63 = vld [vmem:[#allocation6 + $0x14c] ss:$16 sps:$4 sm:$0xff]  }
  0x92   :  { %v5279_v1 = vld [vmem:[#allocation6 + $0x160] ss:$16 sps:$4 sm:$0xff]   ;;  %v5287_v2 = vld [vmem:[#allocation6 + $0x184] ss:$16 sps:$4 sm:$0xff]   ;;  %v5276_v3 = vld [vmem:[#allocation6 + $0x148] ss:$16 sps:$4 sm:$0xff]  }
  0x93   :  { %v5284_v4 = vld [vmem:[#allocation6 + $0x16c] ss:$16 sps:$4 sm:$0xff]   ;;  %v5285_v5 = vld [vmem:[#allocation6 + $0x180] ss:$16 sps:$4 sm:$0xff]   ;;  %v5293_v6 = vld [vmem:[#allocation6 + $0x1a4] ss:$16 sps:$4 sm:$0xff]  }
  0x94   :  { %1138 = vmatpush1.bf16.msra.mxu0 %v5219_v24  ;;  %1224 = vmatpush1.bf16.msra.mxu1 %v5222_v30  ;;  %v5282_v7 = vld [vmem:[#allocation6 + $0x168] ss:$16 sps:$4 sm:$0xff]   ;;  %v5290_v8 = vld [vmem:[#allocation6 + $0x18c] ss:$16 sps:$4 sm:$0xff]   ;;  %v5291_v9 = vld [vmem:[#allocation6 + $0x1a0] ss:$16 sps:$4 sm:$0xff]  }
  0x95   :  { %1139 = vmatprep.subr.bf16.mxu0 %v5227_v25  ;;  %1225 = vmatprep.subr.bf16.mxu1 %v5230_v31  ;;  %v5288_v10 = vld [vmem:[#allocation6 + $0x188] ss:$16 sps:$4 sm:$0xff]   ;;  %v5296_v11 = vld [vmem:[#allocation6 + $0x1ac] ss:$16 sps:$4 sm:$0xff]   ;;  %v5299_v13 = vld [vmem:[#allocation6 + $0x1c4] ss:$16 sps:$4 sm:$0xff]  }
  0x96   :  { %v5294_v12 = vld [vmem:[#allocation6 + $0x1a8] ss:$16 sps:$4 sm:$0xff]   ;;  %v5302_v14 = vld [vmem:[#allocation6 + $0x1cc] ss:$16 sps:$4 sm:$0xff]   ;;  %v5297_v15 = vld [vmem:[#allocation6 + $0x1c0] ss:$16 sps:$4 sm:$0xff]  }
  0x97   :  { %v5300_v16 = vld [vmem:[#allocation6 + $0x1c8] ss:$16 sps:$4 sm:$0xff]   ;;  %v5305_v17 = vld [vmem:[#allocation6 + $0x1e4] ss:$16 sps:$4 sm:$0xff]   ;;  %v5308_v18 = vld [vmem:[#allocation6 + $0x1ec] ss:$16 sps:$4 sm:$0xff]  }
  0x98   :  { %1140 = vmatpush1.bf16.msra.mxu0 %v5225_v28  ;;  %1226 = vmatpush1.bf16.msra.mxu1 %v5228_v34  ;;  %v5303_v19 = vld [vmem:[#allocation6 + $0x1e0] ss:$16 sps:$4 sm:$0xff]   ;;  %v5306_v20 = vld [vmem:[#allocation6 + $0x1e8] ss:$16 sps:$4 sm:$0xff]   ;;  %v5311_v21 = vld [vmem:[#allocation6 + $0x204] ss:$16 sps:$4 sm:$0xff]  }
  0x99   :  { %1141 = vmatprep.subr.bf16.mxu0 %v5233_v29  ;;  %1227 = vmatprep.subr.bf16.mxu1 %v5236_v35  ;;  %v5314_v22 = vld [vmem:[#allocation6 + $0x20c] ss:$16 sps:$4 sm:$0xff]   ;;  %v144_v24 = vshrl.u32 %v143_v23, 7  ;;  %v5345_v23 = vld [vmem:[#allocation6 + $0x2c0] ss:$16 sps:$4 sm:$0xff]   ;;  %vm3917_vm1 = vcmask 64512  }
  0x9a   :  { %v141_v25 = vld [vmem:[#allocation4] sm:$0xf] }
  0x9b   :  { %v6217_v26 = vsub.s32 0, %v144_v24  ;;  %v6219_v27 = vsub.s32 1, %v144_v24  ;;  %v6222_v29 = vsub.s32 2, %v144_v24 }
  0x9c   :  { %1142 = vmatpush1.bf16.msra.mxu0 %v5231_v32  ;;  %1228 = vmatpush1.bf16.msra.mxu1 %v5234_v38  ;;  %v6225_v32 = vsub.s32 3, %v144_v24  ;;  %v5348_v24 = vld [vmem:[#allocation6 + $0x2c8] ss:$16 sps:$4 sm:$0xff]  }
  0x9d   :  { %1143 = vmatprep.subr.bf16.mxu0 %v5239_v33  ;;  %1229 = vmatprep.subr.bf16.mxu1 %v5242_v39  ;;  %v146_v28 = vrot.slane %v141_v25, %v6217_v26  ;;  %v150_v30 = vrot.slane %v141_v25, %v6219_v27  ;;  %v154_v39 = vrot.slane %v141_v25, %v6222_v29 }
  0xa0   :  { %1144 = vmatpush1.bf16.msra.mxu0 %v5237_v36  ;;  %1230 = vmatpush1.bf16.msra.mxu1 %v5240_v42  ;;  %v158_v42 = vrot.slane %v141_v25, %v6225_v32  ;;  %v5353_v25 = vld [vmem:[#allocation6 + $0x2e4] ss:$16 sps:$4 sm:$0xff]  }
  0xa1   :  { %1145 = vmatprep.subr.bf16.mxu0 %v5245_v37  ;;  %1231 = vmatprep.subr.bf16.mxu1 %v5248_v43 }
  0xa4   :  { %1146 = vmatpush1.bf16.msra.mxu0 %v5243_v40  ;;  %1232 = vmatpush1.bf16.msra.mxu1 %v5246_v46 }
  0xa5   :  { %1147 = vmatprep.subr.bf16.mxu0 %v5251_v41  ;;  %1233 = vmatprep.subr.bf16.mxu1 %v5254_v47 }
  0xa8   :  { %1148 = vmatpush1.bf16.msra.mxu0 %v5249_v44  ;;  %1234 = vmatpush1.bf16.msra.mxu1 %v5252_v50 }
  0xa9   :  { %1149 = vmatprep.subr.bf16.mxu0 %v5257_v45  ;;  %1235 = vmatprep.subr.bf16.mxu1 %v5260_v51  ;;  %v5309_v51 = vld [vmem:[#allocation6 + $0x200] ss:$16 sps:$4 sm:$0xff]  }
  0xac   :  { %1150 = vmatpush1.bf16.msra.mxu0 %v5255_v48  ;;  %1236 = vmatpush1.bf16.msra.mxu1 %v5258_v53 }
  0xad   :  { %1151 = vmatprep.subr.bf16.mxu0 %v5263_v49  ;;  %1237 = vmatprep.subr.bf16.mxu1 %v5266_v54 }
  0xb0   :  { %1152 = vmatpush1.bf16.msra.mxu0 %v5261_v52  ;;  %1238 = vmatpush1.bf16.msra.mxu1 %v5264_v58  ;;  %v5312_v52 = vld [vmem:[#allocation6 + $0x208] ss:$16 sps:$4 sm:$0xff]  }
  0xb1   :  { %1153 = vmatprep.subr.bf16.mxu0 %v5269_v55  ;;  %1239 = vmatprep.subr.bf16.mxu1 %v5272_v59  ;;  %v5317_v55 = vld [vmem:[#allocation6 + $0x224] ss:$16 sps:$4 sm:$0xff]  }
  0xb4   :  { %1154 = vmatpush1.bf16.msra.mxu0 %v5267_v56  ;;  %1240 = vmatpush1.bf16.msra.mxu1 %v5270_v62  ;;  %v5320_v56 = vld [vmem:[#allocation6 + $0x22c] ss:$16 sps:$4 sm:$0xff]  }
  0xb5   :  { %1155 = vmatprep.subr.bf16.mxu0 %v5275_v57  ;;  %1241 = vmatprep.subr.bf16.mxu1 %v5278_v63  ;;  %v5315_v63 = vld [vmem:[#allocation6 + $0x220] ss:$16 sps:$4 sm:$0xff]  }
  0xb8   :  { %1156 = vmatpush1.bf16.msra.mxu0 %v5273_v60  ;;  %1242 = vmatpush1.bf16.msra.mxu1 %v5276_v3  ;;  %v5323_v3 = vld [vmem:[#allocation6 + $0x244] ss:$16 sps:$4 sm:$0xff]  }
  0xb9   :  { %1157 = vmatprep.subr.bf16.mxu0 %v5281_v61  ;;  %1243 = vmatprep.subr.bf16.mxu1 %v5284_v4  ;;  %v5326_v4 = vld [vmem:[#allocation6 + $0x24c] ss:$16 sps:$4 sm:$0xff]  }
  0xbc   :  { %1158 = vmatpush1.bf16.msra.mxu0 %v5279_v1  ;;  %1244 = vmatpush1.bf16.msra.mxu1 %v5282_v7  ;;  %v5318_v1 = vld [vmem:[#allocation6 + $0x228] ss:$16 sps:$4 sm:$0xff]   ;;  %v5321_v7 = vld [vmem:[#allocation6 + $0x240] ss:$16 sps:$4 sm:$0xff]  }
  0xbd   :  { %1159 = vmatprep.subr.bf16.mxu0 %v5287_v2  ;;  %1245 = vmatprep.subr.bf16.mxu1 %v5290_v8  ;;  %v5324_v8 = vld [vmem:[#allocation6 + $0x248] ss:$16 sps:$4 sm:$0xff]  }
  0xc0   :  { %1160 = vmatpush1.bf16.msra.mxu0 %v5285_v5  ;;  %1246 = vmatpush1.bf16.msra.mxu1 %v5288_v10  ;;  %v5332_v10 = vld [vmem:[#allocation6 + $0x26c] ss:$16 sps:$4 sm:$0xff]  }
  0xc1   :  { %1161 = vmatprep.subr.bf16.mxu0 %v5293_v6  ;;  %1247 = vmatprep.subr.bf16.mxu1 %v5296_v11  ;;  %v5327_v11 = vld [vmem:[#allocation6 + $0x260] ss:$16 sps:$4 sm:$0xff]  }
  0xc4   :  { %1162 = vmatpush1.bf16.msra.mxu0 %v5291_v9  ;;  %1248 = vmatpush1.bf16.msra.mxu1 %v5294_v12  ;;  %v5329_v9 = vld [vmem:[#allocation6 + $0x264] ss:$16 sps:$4 sm:$0xff]   ;;  %v5330_v12 = vld [vmem:[#allocation6 + $0x268] ss:$16 sps:$4 sm:$0xff]  }
  0xc5   :  { %1163 = vmatprep.subr.bf16.mxu0 %v5299_v13  ;;  %1249 = vmatprep.subr.bf16.mxu1 %v5302_v14  ;;  %v5335_v13 = vld [vmem:[#allocation6 + $0x284] ss:$16 sps:$4 sm:$0xff]   ;;  %v5338_v14 = vld [vmem:[#allocation6 + $0x28c] ss:$16 sps:$4 sm:$0xff]  }
  0xc8   :  { %1164 = vmatpush1.bf16.msra.mxu0 %v5297_v15  ;;  %1250 = vmatpush1.bf16.msra.mxu1 %v5300_v16  ;;  %v5333_v15 = vld [vmem:[#allocation6 + $0x280] ss:$16 sps:$4 sm:$0xff]   ;;  %v5336_v16 = vld [vmem:[#allocation6 + $0x288] ss:$16 sps:$4 sm:$0xff]  }
  0xc9   :  { %1165 = vmatprep.subr.bf16.mxu0 %v5305_v17  ;;  %1251 = vmatprep.subr.bf16.mxu1 %v5308_v18  ;;  %v5341_v17 = vld [vmem:[#allocation6 + $0x2a4] ss:$16 sps:$4 sm:$0xff]   ;;  %v5344_v18 = vld [vmem:[#allocation6 + $0x2ac] ss:$16 sps:$4 sm:$0xff]  }
  0xcc   :  { %1166 = vmatpush1.bf16.msra.mxu0 %v5303_v19  ;;  %1252 = vmatpush1.bf16.msra.mxu1 %v5306_v20  ;;  %v5339_v19 = vld [vmem:[#allocation6 + $0x2a0] ss:$16 sps:$4 sm:$0xff]   ;;  %v5342_v20 = vld [vmem:[#allocation6 + $0x2a8] ss:$16 sps:$4 sm:$0xff]  }
  0xcd   :  { %1178 = vmatprep.subr.bf16.mxu0 %v5311_v21  ;;  %1264 = vmatprep.subr.bf16.mxu1 %v5314_v22  ;;  %v5347_v21 = vld [vmem:[#allocation6 + $0x2c4] ss:$16 sps:$4 sm:$0xff]   ;;  %v5350_v22 = vld [vmem:[#allocation6 + $0x2cc] ss:$16 sps:$4 sm:$0xff]  }
 0x162   :  { %v281_v31 = vpop.f32.mrb[0].mxu0  ;;  %v324_v46 = vpop.f32.mrb[0].mxu1 }
 0x163   :  { %v282_v33 = vadd.f32 %v281_v31, %v146_v28  ;;  %v283_v34 = vpop.f32.mrb[1].mxu0  ;;  %v325_v48 = vadd.f32 %v324_v46, %v154_v39  ;;  %v326_v49 = vpop.f32.mrb[1].mxu1  ;;  %v5354_v31 = vld [vmem:[#allocation6 + $0x2e8] ss:$16 sps:$4 sm:$0xff]   ;;  %v5380_v46 = vld [vmem:[#allocation6 + $0x36c] ss:$16 sps:$4 sm:$0xff]  }
 0x164   :  { %v284_v35 = vadd.f32 %v283_v34, %v150_v30  ;;  %v285_v36 = vpop.f32.mrb[2].mxu0  ;;  %v327_v53 = vadd.f32 %v326_v49, %v158_v42  ;;  %v328_v54 = vpop.f32.mrb[2].mxu1  ;;  %v5362_v34 = vld [vmem:[#allocation6 + $0x30c] ss:$16 sps:$4 sm:$0xff]   ;;  %v5383_v49 = vld [vmem:[#allocation6 + $0x384] ss:$16 sps:$4 sm:$0xff]  }
 0x165   :  { %v286_v37 = vadd.f32 %v285_v36, %v146_v28  ;;  %v287_v38 = vpop.f32.mrb[3].mxu0  ;;  %v333_v40 = vmax.f32 %v282_v33, 0.0  ;;  %v335_v57 = vmax.f32 %v325_v48, 0.0  ;;  %v329_v58 = vadd.f32 %v328_v54, %v154_v39  ;;  %v330_v59 = vpop.f32.mrb[3].mxu1  ;;  %v5356_v28 = vld [vmem:[#allocation6 + $0x2ec] ss:$16 sps:$4 sm:$0xff]  }
 0x166   :  { %v288_v41 = vadd.f32 %v287_v38, %v150_v30  ;;  %v334_v43 = vmax.f32 %v284_v35, 0.0  ;;  %v336_v60 = vmax.f32 %v327_v53, 0.0  ;;  %v331_v61 = vadd.f32 %v330_v59, %v158_v42  ;;  %v5351_v30 = vld [vmem:[#allocation6 + $0x2e0] ss:$16 sps:$4 sm:$0xff]   ;;  %v5359_v33 = vld [vmem:[#allocation6 + $0x304] ss:$16 sps:$4 sm:$0xff]  }
 0x167   :  { %v337_v44 = vmax.f32 %v286_v37, 0.0  ;;  %v339_v62 = vmax.f32 %v329_v58, 0.0  ;;  %v5357_v35 = vld [vmem:[#allocation6 + $0x300] ss:$16 sps:$4 sm:$0xff]   ;;  %v5360_v36 = vld [vmem:[#allocation6 + $0x308] ss:$16 sps:$4 sm:$0xff]  }
 0x168   :  { %v338_v45 = vmax.f32 %v288_v41, 0.0  ;;  %v340_v2 = vmax.f32 %v331_v61, 0.0  ;;  %v5365_v37 = vld [vmem:[#allocation6 + $0x324] ss:$16 sps:$4 sm:$0xff]   ;;  %v5368_v38 = vld [vmem:[#allocation6 + $0x32c] ss:$16 sps:$4 sm:$0xff]  }
 0x169   :  { %v341_v47 = vpack.c.bf16 %v337_v44, %v333_v40  ;;  %v6229_v5 = vpack.c.bf16 %v339_v62, %v335_v57  ;;  %v5363_v39 = vld [vmem:[#allocation6 + $0x320] ss:$16 sps:$4 sm:$0xff]   ;;  %v5366_v40 = vld [vmem:[#allocation6 + $0x328] ss:$16 sps:$4 sm:$0xff]   ;;  %v5371_v41 = vld [vmem:[#allocation6 + $0x344] ss:$16 sps:$4 sm:$0xff]  }
 0x16a   :  { %v342_v50 = vpack.c.bf16 %v338_v45, %v334_v43  ;;  %v344_v6 = vpack.c.bf16 %v340_v2, %v336_v60  ;;  %v5374_v42 = vld [vmem:[#allocation6 + $0x34c] ss:$16 sps:$4 sm:$0xff]   ;;  %v5369_v43 = vld [vmem:[#allocation6 + $0x340] ss:$16 sps:$4 sm:$0xff]   ;;  %v5372_v44 = vld [vmem:[#allocation6 + $0x348] ss:$16 sps:$4 sm:$0xff]  }
 0x16b   :  { %v5377_v45 = vld [vmem:[#allocation6 + $0x364] ss:$16 sps:$4 sm:$0xff]   ;;  %v5378_v48 = vld [vmem:[#allocation6 + $0x368] ss:$16 sps:$4 sm:$0xff]   ;;  %v5392_v54 = vld [vmem:[#allocation6 + $0x3ac] ss:$16 sps:$4 sm:$0xff]  }
 0x16c   :  { %1167 = vmatprep.mubr.bf16.mxu0 %v342_v50  ;;  %1253 = vmatprep.mubr.bf16.mxu1 %v342_v50  ;;  %v5386_v50 = vld [vmem:[#allocation6 + $0x38c] ss:$16 sps:$4 sm:$0xff]   ;;  %v5389_v53 = vld [vmem:[#allocation6 + $0x3a4] ss:$16 sps:$4 sm:$0xff]   ;;  %v5393_v59 = vld [vmem:[#allocation6 + $0x3c0] ss:$16 sps:$4 sm:$0xff]  }
 0x16d   :  { %1168 = vmatmul.mubr.bf16.vlgmr.msra.gmra.mrb[4].mxu0 %v341_v47  ;;  %1254 = vmatmul.mubr.bf16.vlgmr.msra.gmra.mrb[4].mxu1 %v341_v47  ;;  %v5375_v47 = vld [vmem:[#allocation6 + $0x360] ss:$16 sps:$4 sm:$0xff]   ;;  %v5395_v57 = vld [vmem:[#allocation6 + $0x3c4] ss:$16 sps:$4 sm:$0xff]   ;;  %v5398_v58 = vld [vmem:[#allocation6 + $0x3cc] ss:$16 sps:$4 sm:$0xff]  }
 0x16e   :  { %1179 = vmatpush1.bf16.msra.mxu0 %v5309_v51  ;;  %1265 = vmatpush1.bf16.msra.mxu1 %v5312_v52  ;;  %v5381_v51 = vld [vmem:[#allocation6 + $0x380] ss:$16 sps:$4 sm:$0xff]   ;;  %v5384_v52 = vld [vmem:[#allocation6 + $0x388] ss:$16 sps:$4 sm:$0xff]   ;;  %v5401_v61 = vld [vmem:[#allocation6 + $0x3e4] ss:$16 sps:$4 sm:$0xff]  }
 0x16f   :  { %1180 = vmatprep.subr.bf16.mxu0 %v5317_v55  ;;  %1266 = vmatprep.subr.bf16.mxu1 %v5320_v56  ;;  %v5387_v55 = vld [vmem:[#allocation6 + $0x3a0] ss:$16 sps:$4 sm:$0xff]   ;;  %v5390_v56 = vld [vmem:[#allocation6 + $0x3a8] ss:$16 sps:$4 sm:$0xff]   ;;  %v5404_v62 = vld [vmem:[#allocation6 + $0x3ec] ss:$16 sps:$4 sm:$0xff]  }
 0x170   :  { %1210 = vmatprep.mubr.bf16.mxu0 %v344_v6  ;;  %1296 = vmatprep.mubr.bf16.mxu1 %v344_v6  ;;  %v5396_v60 = vld [vmem:[#allocation6 + $0x3c8] ss:$16 sps:$4 sm:$0xff]   ;;  %v5407_v2 = vld [vmem:[#allocation6 + $0x404] ss:$16 sps:$4 sm:$0xff]  }
 0x171   :  { %v5408_v6 = vld [vmem:[#allocation6 + $0x408] ss:$16 sps:$4 sm:$0xff]  }
 0x172   :  { %1181 = vmatpush1.bf16.msra.mxu0 %v5315_v63  ;;  %1267 = vmatpush1.bf16.msra.mxu1 %v5318_v1  ;;  %v5399_v63 = vld [vmem:[#allocation6 + $0x3e0] ss:$16 sps:$4 sm:$0xff]   ;;  %v5402_v1 = vld [vmem:[#allocation6 + $0x3e8] ss:$16 sps:$4 sm:$0xff]  }
 0x173   :  { %1182 = vmatprep.subr.bf16.mxu0 %v5323_v3  ;;  %1268 = vmatprep.subr.bf16.mxu1 %v5326_v4  ;;  %v5410_v3 = vld [vmem:[#allocation6 + $0x40c] ss:$16 sps:$4 sm:$0xff]   ;;  %v5405_v4 = vld [vmem:[#allocation6 + $0x400] ss:$16 sps:$4 sm:$0xff]  }
 0x176   :  { %1183 = vmatpush1.bf16.msra.mxu0 %v5321_v7  ;;  %1269 = vmatpush1.bf16.msra.mxu1 %v5324_v8  ;;  %v5413_v7 = vld [vmem:[#allocation6 + $0x424] ss:$16 sps:$4 sm:$0xff]   ;;  %v5416_v8 = vld [vmem:[#allocation6 + $0x42c] ss:$16 sps:$4 sm:$0xff]  }
 0x177   :  { %1184 = vmatprep.subr.bf16.mxu0 %v5329_v9  ;;  %1270 = vmatprep.subr.bf16.mxu1 %v5332_v10  ;;  %v5411_v9 = vld [vmem:[#allocation6 + $0x420] ss:$16 sps:$4 sm:$0xff]   ;;  %v5414_v10 = vld [vmem:[#allocation6 + $0x428] ss:$16 sps:$4 sm:$0xff]  }
 0x17a   :  { %1185 = vmatpush1.bf16.msra.mxu0 %v5327_v11  ;;  %1271 = vmatpush1.bf16.msra.mxu1 %v5330_v12  ;;  %v5419_v11 = vld [vmem:[#allocation6 + $0x444] ss:$16 sps:$4 sm:$0xff]   ;;  %v5422_v12 = vld [vmem:[#allocation6 + $0x44c] ss:$16 sps:$4 sm:$0xff]  }
 0x17b   :  { %1186 = vmatprep.subr.bf16.mxu0 %v5335_v13  ;;  %1272 = vmatprep.subr.bf16.mxu1 %v5338_v14  ;;  %v5417_v13 = vld [vmem:[#allocation6 + $0x440] ss:$16 sps:$4 sm:$0xff]   ;;  %v5420_v14 = vld [vmem:[#allocation6 + $0x448] ss:$16 sps:$4 sm:$0xff]  }
 0x17e   :  { %1187 = vmatpush1.bf16.msra.mxu0 %v5333_v15  ;;  %1273 = vmatpush1.bf16.msra.mxu1 %v5336_v16  ;;  %v5425_v15 = vld [vmem:[#allocation6 + $0x464] ss:$16 sps:$4 sm:$0xff]   ;;  %v5428_v16 = vld [vmem:[#allocation6 + $0x46c] ss:$16 sps:$4 sm:$0xff]  }
 0x17f   :  { %1188 = vmatprep.subr.bf16.mxu0 %v5341_v17  ;;  %1274 = vmatprep.subr.bf16.mxu1 %v5344_v18  ;;  %v5423_v17 = vld [vmem:[#allocation6 + $0x460] ss:$16 sps:$4 sm:$0xff]   ;;  %v5431_v18 = vld [vmem:[#allocation6 + $0x484] ss:$16 sps:$4 sm:$0xff]  }
 0x182   :  { %1189 = vmatpush1.bf16.msra.mxu0 %v5339_v19  ;;  %1275 = vmatpush1.bf16.msra.mxu1 %v5342_v20  ;;  %v5434_v19 = vld [vmem:[#allocation6 + $0x48c] ss:$16 sps:$4 sm:$0xff]   ;;  %v5429_v20 = vld [vmem:[#allocation6 + $0x480] ss:$16 sps:$4 sm:$0xff]  }
 0x183   :  { %1190 = vmatprep.subr.bf16.mxu0 %v5347_v21  ;;  %1276 = vmatprep.subr.bf16.mxu1 %v5350_v22  ;;  %v5432_v21 = vld [vmem:[#allocation6 + $0x488] ss:$16 sps:$4 sm:$0xff]   ;;  %v5437_v22 = vld [vmem:[#allocation6 + $0x4a4] ss:$16 sps:$4 sm:$0xff]  }
 0x186   :  { %1191 = vmatpush1.bf16.msra.mxu0 %v5345_v23  ;;  %1277 = vmatpush1.bf16.msra.mxu1 %v5348_v24  ;;  %v5440_v23 = vld [vmem:[#allocation6 + $0x4ac] ss:$16 sps:$4 sm:$0xff]   ;;  %v5435_v24 = vld [vmem:[#allocation6 + $0x4a0] ss:$16 sps:$4 sm:$0xff]  }
 0x187   :  { %1192 = vmatprep.subr.bf16.mxu0 %v5353_v25  ;;  %1278 = vmatprep.subr.bf16.mxu1 %v5356_v28  ;;  %v5438_v25 = vld [vmem:[#allocation6 + $0x4a8] ss:$16 sps:$4 sm:$0xff]   ;;  %v5443_v28 = vld [vmem:[#allocation6 + $0x4c4] ss:$16 sps:$4 sm:$0xff]  }
 0x18a   :  { %1193 = vmatpush1.bf16.msra.mxu0 %v5351_v30  ;;  %1279 = vmatpush1.bf16.msra.mxu1 %v5354_v31  ;;  %v5446_v30 = vld [vmem:[#allocation6 + $0x4cc] ss:$16 sps:$4 sm:$0xff]   ;;  %v5441_v31 = vld [vmem:[#allocation6 + $0x4c0] ss:$16 sps:$4 sm:$0xff]  }
 0x18b   :  { %1194 = vmatprep.subr.bf16.mxu0 %v5359_v33  ;;  %1280 = vmatprep.subr.bf16.mxu1 %v5362_v34  ;;  %v5444_v33 = vld [vmem:[#allocation6 + $0x4c8] ss:$16 sps:$4 sm:$0xff]   ;;  %v5449_v34 = vld [vmem:[#allocation6 + $0x4e4] ss:$16 sps:$4 sm:$0xff]  }
 0x18e   :  { %1195 = vmatpush1.bf16.msra.mxu0 %v5357_v35  ;;  %1281 = vmatpush1.bf16.msra.mxu1 %v5360_v36  ;;  %v5452_v35 = vld [vmem:[#allocation6 + $0x4ec] ss:$16 sps:$4 sm:$0xff]   ;;  %v5447_v36 = vld [vmem:[#allocation6 + $0x4e0] ss:$16 sps:$4 sm:$0xff]  }
 0x18f   :  { %1196 = vmatprep.subr.bf16.mxu0 %v5365_v37  ;;  %1282 = vmatprep.subr.bf16.mxu1 %v5368_v38  ;;  %v5450_v37 = vld [vmem:[#allocation6 + $0x4e8] ss:$16 sps:$4 sm:$0xff]   ;;  %v5455_v38 = vld [vmem:[#allocation6 + $0x504] ss:$16 sps:$4 sm:$0xff]  }
 0x192   :  { %1197 = vmatpush1.bf16.msra.mxu0 %v5363_v39  ;;  %1283 = vmatpush1.bf16.msra.mxu1 %v5366_v40  ;;  %v5458_v39 = vld [vmem:[#allocation6 + $0x50c] ss:$16 sps:$4 sm:$0xff]   ;;  %v5453_v40 = vld [vmem:[#allocation6 + $0x500] ss:$16 sps:$4 sm:$0xff]  }
 0x193   :  { %1198 = vmatprep.subr.bf16.mxu0 %v5371_v41  ;;  %1284 = vmatprep.subr.bf16.mxu1 %v5374_v42  ;;  %v5456_v41 = vld [vmem:[#allocation6 + $0x508] ss:$16 sps:$4 sm:$0xff]   ;;  %v5461_v42 = vld [vmem:[#allocation6 + $0x524] ss:$16 sps:$4 sm:$0xff]  }
 0x196   :  { %1199 = vmatpush1.bf16.msra.mxu0 %v5369_v43  ;;  %1285 = vmatpush1.bf16.msra.mxu1 %v5372_v44  ;;  %v5464_v43 = vld [vmem:[#allocation6 + $0x52c] ss:$16 sps:$4 sm:$0xff]   ;;  %v5459_v44 = vld [vmem:[#allocation6 + $0x520] ss:$16 sps:$4 sm:$0xff]  }
 0x197   :  { %1200 = vmatprep.subr.bf16.mxu0 %v5377_v45  ;;  %1286 = vmatprep.subr.bf16.mxu1 %v5380_v46  ;;  %v5462_v45 = vld [vmem:[#allocation6 + $0x528] ss:$16 sps:$4 sm:$0xff]   ;;  %v5467_v46 = vld [vmem:[#allocation6 + $0x544] ss:$16 sps:$4 sm:$0xff]  }
 0x19a   :  { %1201 = vmatpush1.bf16.msra.mxu0 %v5375_v47  ;;  %1287 = vmatpush1.bf16.msra.mxu1 %v5378_v48  ;;  %v5470_v47 = vld [vmem:[#allocation6 + $0x54c] ss:$16 sps:$4 sm:$0xff]   ;;  %v5465_v48 = vld [vmem:[#allocation6 + $0x540] ss:$16 sps:$4 sm:$0xff]  }
 0x19b   :  { %1202 = vmatprep.subr.bf16.mxu0 %v5383_v49  ;;  %1288 = vmatprep.subr.bf16.mxu1 %v5386_v50  ;;  %v5468_v49 = vld [vmem:[#allocation6 + $0x548] ss:$16 sps:$4 sm:$0xff]   ;;  %v5473_v50 = vld [vmem:[#allocation6 + $0x564] ss:$16 sps:$4 sm:$0xff]  }
 0x19e   :  { %1203 = vmatpush1.bf16.msra.mxu0 %v5381_v51  ;;  %1289 = vmatpush1.bf16.msra.mxu1 %v5384_v52  ;;  %v5476_v51 = vld [vmem:[#allocation6 + $0x56c] ss:$16 sps:$4 sm:$0xff]   ;;  %v5471_v52 = vld [vmem:[#allocation6 + $0x560] ss:$16 sps:$4 sm:$0xff]  }
 0x19f   :  { %1204 = vmatprep.subr.bf16.mxu0 %v5389_v53  ;;  %1290 = vmatprep.subr.bf16.mxu1 %v5392_v54  ;;  %v5474_v53 = vld [vmem:[#allocation6 + $0x568] ss:$16 sps:$4 sm:$0xff]   ;;  %v5479_v54 = vld [vmem:[#allocation6 + $0x584] ss:$16 sps:$4 sm:$0xff]  }
 0x1a2   :  { %1205 = vmatpush1.bf16.msra.mxu0 %v5387_v55  ;;  %1291 = vmatpush1.bf16.msra.mxu1 %v5390_v56  ;;  %v5482_v55 = vld [vmem:[#allocation6 + $0x58c] ss:$16 sps:$4 sm:$0xff]   ;;  %v5477_v56 = vld [vmem:[#allocation6 + $0x580] ss:$16 sps:$4 sm:$0xff]  }
 0x1a3   :  { %1206 = vmatprep.subr.bf16.mxu0 %v5395_v57  ;;  %1292 = vmatprep.subr.bf16.mxu1 %v5398_v58  ;;  %v5480_v57 = vld [vmem:[#allocation6 + $0x588] ss:$16 sps:$4 sm:$0xff]   ;;  %v5485_v58 = vld [vmem:[#allocation6 + $0x5a4] ss:$16 sps:$4 sm:$0xff]  }
 0x1a6   :  { %1207 = vmatpush1.bf16.msra.mxu0 %v5393_v59  ;;  %1293 = vmatpush1.bf16.msra.mxu1 %v5396_v60  ;;  %v5488_v59 = vld [vmem:[#allocation6 + $0x5ac] ss:$16 sps:$4 sm:$0xff]   ;;  %v5483_v60 = vld [vmem:[#allocation6 + $0x5a0] ss:$16 sps:$4 sm:$0xff]  }
 0x1a7   :  { %1208 = vmatprep.subr.bf16.mxu0 %v5401_v61  ;;  %1294 = vmatprep.subr.bf16.mxu1 %v5404_v62  ;;  %v5486_v61 = vld [vmem:[#allocation6 + $0x5a8] ss:$16 sps:$4 sm:$0xff]   ;;  %v5491_v62 = vld [vmem:[#allocation6 + $0x5c4] ss:$16 sps:$4 sm:$0xff]  }
 0x1aa   :  { %1209 = vmatpush1.bf16.msra.mxu0 %v5399_v63  ;;  %1295 = vmatpush1.bf16.msra.mxu1 %v5402_v1  ;;  %v5494_v63 = vld [vmem:[#allocation6 + $0x5cc] ss:$16 sps:$4 sm:$0xff]   ;;  %v5489_v1 = vld [vmem:[#allocation6 + $0x5c0] ss:$16 sps:$4 sm:$0xff]  }
 0x1ab   :  { %2111 = vmatprep.subr.bf16.mxu0 %v5407_v2  ;;  %2197 = vmatprep.subr.bf16.mxu1 %v5410_v3  ;;  %v5492_v2 = vld [vmem:[#allocation6 + $0x5c8] ss:$16 sps:$4 sm:$0xff]   ;;  %v5497_v3 = vld [vmem:[#allocation6 + $0x5e4] ss:$16 sps:$4 sm:$0xff]  }
 0x1ad   :  { %1211 = vmatmul.mubr.bf16.vlgmr.msra.gmra.mrb[4].mxu0 %v6229_v5  ;;  %1297 = vmatmul.mubr.bf16.vlgmr.msra.gmra.mrb[4].mxu1 %v6229_v5  ;;  %v5426_v5 = vld [vmem:[#allocation6 + $0x468] ss:$16 sps:$4 sm:$0xff]  }
 0x1ae   :  { %2112 = vmatpush1.bf16.msra.mxu0 %v5405_v4  ;;  %2198 = vmatpush1.bf16.msra.mxu1 %v5408_v6  ;;  %v5500_v4 = vld [vmem:[#allocation6 + $0x5ec] ss:$16 sps:$4 sm:$0xff]   ;;  %v5495_v6 = vld [vmem:[#allocation6 + $0x5e0] ss:$16 sps:$4 sm:$0xff]  }
 0x1af   :  { %2113 = vmatprep.subr.bf16.mxu0 %v5413_v7  ;;  %2199 = vmatprep.subr.bf16.mxu1 %v5416_v8  ;;  %v5498_v7 = vld [vmem:[#allocation6 + $0x5e8] ss:$16 sps:$4 sm:$0xff]   ;;  %v5503_v8 = vld [vmem:[#allocation6 + $0x604] ss:$16 sps:$4 sm:$0xff]  }
 0x1b2   :  { %2114 = vmatpush1.bf16.msra.mxu0 %v5411_v9  ;;  %2200 = vmatpush1.bf16.msra.mxu1 %v5414_v10  ;;  %v5506_v9 = vld [vmem:[#allocation6 + $0x60c] ss:$16 sps:$4 sm:$0xff]   ;;  %v473_v10 = vld [vmem:[#allocation7] sm:$0xf] }
 0x1b3   :  { %2115 = vmatprep.subr.bf16.mxu0 %v5419_v11  ;;  %2201 = vmatprep.subr.bf16.mxu1 %v5422_v12  ;;  %v478_v11 = vrot.slane %v473_v10, %v6217_v26  ;;  %v486_v12 = vrot.slane %v473_v10, %v6222_v29 }
 0x1b6   :  { %2116 = vmatpush1.bf16.msra.mxu0 %v5417_v13  ;;  %2202 = vmatpush1.bf16.msra.mxu1 %v5420_v14  ;;  %v482_v13 = vrot.slane %v473_v10, %v6219_v27  ;;  %v490_v14 = vrot.slane %v473_v10, %v6225_v32  ;;  %v5545_v10 = vld [vmem:[#allocation6 + $0x6e4] ss:$16 sps:$4 sm:$0xff]  }
 0x1b7   :  { %2117 = vmatprep.subr.bf16.mxu0 %v5425_v15  ;;  %2203 = vmatprep.subr.bf16.mxu1 %v5428_v16 }
 0x1ba   :  { %2118 = vmatpush1.bf16.msra.mxu0 %v5423_v17  ;;  %2204 = vmatpush1.bf16.msra.mxu1 %v5426_v5 }
 0x1bb   :  { %2119 = vmatprep.subr.bf16.mxu0 %v5431_v18  ;;  %2205 = vmatprep.subr.bf16.mxu1 %v5434_v19 }
 0x1be   :  { %2120 = vmatpush1.bf16.msra.mxu0 %v5429_v20  ;;  %2206 = vmatpush1.bf16.msra.mxu1 %v5432_v21 }
 0x1bf   :  { %2121 = vmatprep.subr.bf16.mxu0 %v5437_v22  ;;  %2207 = vmatprep.subr.bf16.mxu1 %v5440_v23 }
 0x1c2   :  { %2122 = vmatpush1.bf16.msra.mxu0 %v5435_v24  ;;  %2208 = vmatpush1.bf16.msra.mxu1 %v5438_v25 }
 0x1c3   :  { %2123 = vmatprep.subr.bf16.mxu0 %v5443_v28  ;;  %2209 = vmatprep.subr.bf16.mxu1 %v5446_v30 }
 0x1c6   :  { %2124 = vmatpush1.bf16.msra.mxu0 %v5441_v31  ;;  %2210 = vmatpush1.bf16.msra.mxu1 %v5444_v33 }
 0x1c7   :  { %2125 = vmatprep.subr.bf16.mxu0 %v5449_v34  ;;  %2211 = vmatprep.subr.bf16.mxu1 %v5452_v35 }
 0x1ca   :  { %2126 = vmatpush1.bf16.msra.mxu0 %v5447_v36  ;;  %2212 = vmatpush1.bf16.msra.mxu1 %v5450_v37 }
 0x1cb   :  { %2127 = vmatprep.subr.bf16.mxu0 %v5455_v38  ;;  %2213 = vmatprep.subr.bf16.mxu1 %v5458_v39 }
 0x1ce   :  { %2128 = vmatpush1.bf16.msra.mxu0 %v5453_v40  ;;  %2214 = vmatpush1.bf16.msra.mxu1 %v5456_v41 }
 0x1cf   :  { %2129 = vmatprep.subr.bf16.mxu0 %v5461_v42  ;;  %2215 = vmatprep.subr.bf16.mxu1 %v5464_v43 }
 0x1d2   :  { %2130 = vmatpush1.bf16.msra.mxu0 %v5459_v44  ;;  %2216 = vmatpush1.bf16.msra.mxu1 %v5462_v45 }
 0x1d3   :  { %2131 = vmatprep.subr.bf16.mxu0 %v5467_v46  ;;  %2217 = vmatprep.subr.bf16.mxu1 %v5470_v47  ;;  %v5501_v46 = vld [vmem:[#allocation6 + $0x600] ss:$16 sps:$4 sm:$0xff]   ;;  %v5504_v47 = vld [vmem:[#allocation6 + $0x608] ss:$16 sps:$4 sm:$0xff]  }
 0x1d6   :  { %2132 = vmatpush1.bf16.msra.mxu0 %v5465_v48  ;;  %2218 = vmatpush1.bf16.msra.mxu1 %v5468_v49  ;;  %v5509_v48 = vld [vmem:[#allocation6 + $0x624] ss:$16 sps:$4 sm:$0xff]   ;;  %v5512_v49 = vld [vmem:[#allocation6 + $0x62c] ss:$16 sps:$4 sm:$0xff]  }
 0x1d7   :  { %2133 = vmatprep.subr.bf16.mxu0 %v5473_v50  ;;  %2219 = vmatprep.subr.bf16.mxu1 %v5476_v51  ;;  %v5507_v50 = vld [vmem:[#allocation6 + $0x620] ss:$16 sps:$4 sm:$0xff]   ;;  %v5510_v51 = vld [vmem:[#allocation6 + $0x628] ss:$16 sps:$4 sm:$0xff]  }
 0x1da   :  { %2134 = vmatpush1.bf16.msra.mxu0 %v5471_v52  ;;  %2220 = vmatpush1.bf16.msra.mxu1 %v5474_v53  ;;  %v5515_v52 = vld [vmem:[#allocation6 + $0x644] ss:$16 sps:$4 sm:$0xff]   ;;  %v5518_v53 = vld [vmem:[#allocation6 + $0x64c] ss:$16 sps:$4 sm:$0xff]  }
 0x1db   :  { %2135 = vmatprep.subr.bf16.mxu0 %v5479_v54  ;;  %2221 = vmatprep.subr.bf16.mxu1 %v5482_v55  ;;  %v5513_v54 = vld [vmem:[#allocation6 + $0x640] ss:$16 sps:$4 sm:$0xff]   ;;  %v5516_v55 = vld [vmem:[#allocation6 + $0x648] ss:$16 sps:$4 sm:$0xff]  }
 0x1de   :  { %2136 = vmatpush1.bf16.msra.mxu0 %v5477_v56  ;;  %2222 = vmatpush1.bf16.msra.mxu1 %v5480_v57  ;;  %v5521_v56 = vld [vmem:[#allocation6 + $0x664] ss:$16 sps:$4 sm:$0xff]   ;;  %v5524_v57 = vld [vmem:[#allocation6 + $0x66c] ss:$16 sps:$4 sm:$0xff]  }
 0x1df   :  { %2137 = vmatprep.subr.bf16.mxu0 %v5485_v58  ;;  %2223 = vmatprep.subr.bf16.mxu1 %v5488_v59  ;;  %v5519_v58 = vld [vmem:[#allocation6 + $0x660] ss:$16 sps:$4 sm:$0xff]   ;;  %v5522_v59 = vld [vmem:[#allocation6 + $0x668] ss:$16 sps:$4 sm:$0xff]  }
 0x1e2   :  { %2138 = vmatpush1.bf16.msra.mxu0 %v5483_v60  ;;  %2224 = vmatpush1.bf16.msra.mxu1 %v5486_v61  ;;  %v5527_v60 = vld [vmem:[#allocation6 + $0x684] ss:$16 sps:$4 sm:$0xff]   ;;  %v5530_v61 = vld [vmem:[#allocation6 + $0x68c] ss:$16 sps:$4 sm:$0xff]  }
 0x1e3   :  { %2139 = vmatprep.subr.bf16.mxu0 %v5491_v62  ;;  %2225 = vmatprep.subr.bf16.mxu1 %v5494_v63  ;;  %v5525_v62 = vld [vmem:[#allocation6 + $0x680] ss:$16 sps:$4 sm:$0xff]   ;;  %v5528_v63 = vld [vmem:[#allocation6 + $0x688] ss:$16 sps:$4 sm:$0xff]  }
 0x1e6   :  { %2140 = vmatpush1.bf16.msra.mxu0 %v5489_v1  ;;  %2226 = vmatpush1.bf16.msra.mxu1 %v5492_v2  ;;  %v5533_v1 = vld [vmem:[#allocation6 + $0x6a4] ss:$16 sps:$4 sm:$0xff]   ;;  %v5536_v2 = vld [vmem:[#allocation6 + $0x6ac] ss:$16 sps:$4 sm:$0xff]  }
 0x1e7   :  { %2141 = vmatprep.subr.bf16.mxu0 %v5497_v3  ;;  %2227 = vmatprep.subr.bf16.mxu1 %v5500_v4  ;;  %v5531_v3 = vld [vmem:[#allocation6 + $0x6a0] ss:$16 sps:$4 sm:$0xff]   ;;  %v5534_v4 = vld [vmem:[#allocation6 + $0x6a8] ss:$16 sps:$4 sm:$0xff]  }
 0x1ea   :  { %2142 = vmatpush1.bf16.msra.mxu0 %v5495_v6  ;;  %2228 = vmatpush1.bf16.msra.mxu1 %v5498_v7  ;;  %v5539_v6 = vld [vmem:[#allocation6 + $0x6c4] ss:$16 sps:$4 sm:$0xff]   ;;  %v5542_v7 = vld [vmem:[#allocation6 + $0x6cc] ss:$16 sps:$4 sm:$0xff]  }
 0x1eb   :  { %2154 = vmatprep.subr.bf16.mxu0 %v5503_v8  ;;  %2240 = vmatprep.subr.bf16.mxu1 %v5506_v9  ;;  %v5537_v8 = vld [vmem:[#allocation6 + $0x6c0] ss:$16 sps:$4 sm:$0xff]   ;;  %v5540_v9 = vld [vmem:[#allocation6 + $0x6c8] ss:$16 sps:$4 sm:$0xff]  }
 0x280   :  { %v1212_v15 = vpop.f32.mrb[4].mxu0  ;;  %v1298_v16 = vpop.f32.mrb[4].mxu1 }
 0x281   :  { %v5129_v17 = vadd.f32 %v1212_v15, %v478_v11  ;;  %v5133_v5 = vadd.f32 %v1298_v16, %v486_v12  ;;  %v1214_v18 = vpop.f32.mrb[5].mxu0  ;;  %v1300_v19 = vpop.f32.mrb[5].mxu1  ;;  %v5554_v15 = vld [vmem:[#allocation6 + $0x70c] ss:$16 sps:$4 sm:$0xff]   ;;  %v5549_v16 = vld [vmem:[#allocation6 + $0x700] ss:$16 sps:$4 sm:$0xff]  }
 0x282   :  { %v5130_v20 = vadd.f32 %v1214_v18, %v482_v13  ;;  %v5134_v21 = vadd.f32 %v1300_v19, %v490_v14  ;;  %v1216_v22 = vpop.f32.mrb[6].mxu0  ;;  %v1302_v23 = vpop.f32.mrb[6].mxu1  ;;  %v5560_v18 = vld [vmem:[#allocation6 + $0x72c] ss:$16 sps:$4 sm:$0xff]   ;;  %v5555_v19 = vld [vmem:[#allocation6 + $0x720] ss:$16 sps:$4 sm:$0xff]  }
 0x283   :  { %v5131_v24 = vadd.f32 %v1216_v22, %v478_v11  ;;  %v5135_v25 = vadd.f32 %v1302_v23, %v486_v12  ;;  %v1218_v28 = vpop.f32.mrb[7].mxu0  ;;  %v1304_v30 = vpop.f32.mrb[7].mxu1  ;;  %v1307_v34 = vmax.f32 %v5129_v17, 0.0  ;;  %v1309_v35 = vmax.f32 %v5133_v5, 0.0  ;;  %v5548_v11 = vld [vmem:[#allocation6 + $0x6ec] ss:$16 sps:$4 sm:$0xff]  }
 0x284   :  { %v5132_v31 = vadd.f32 %v1218_v28, %v482_v13  ;;  %v5136_v33 = vadd.f32 %v1304_v30, %v490_v14  ;;  %v1308_v38 = vmax.f32 %v5130_v20, 0.0  ;;  %v1310_v39 = vmax.f32 %v5134_v21, 0.0  ;;  %v5543_v12 = vld [vmem:[#allocation6 + $0x6e0] ss:$16 sps:$4 sm:$0xff]   ;;  %v5546_v13 = vld [vmem:[#allocation6 + $0x6e8] ss:$16 sps:$4 sm:$0xff]  }
 0x285   :  { %v1311_v36 = vmax.f32 %v5131_v24, 0.0  ;;  %v1313_v37 = vmax.f32 %v5135_v25, 0.0  ;;  %v5551_v14 = vld [vmem:[#allocation6 + $0x704] ss:$16 sps:$4 sm:$0xff]   ;;  %v5552_v17 = vld [vmem:[#allocation6 + $0x708] ss:$16 sps:$4 sm:$0xff]  }
 0x286   :  { %v1312_v40 = vmax.f32 %v5132_v31, 0.0  ;;  %v1314_v41 = vmax.f32 %v5136_v33, 0.0  ;;  %v5557_v5 = vld [vmem:[#allocation6 + $0x724] ss:$16 sps:$4 sm:$0xff]   ;;  %v5558_v20 = vld [vmem:[#allocation6 + $0x728] ss:$16 sps:$4 sm:$0xff]  }
 0x287   :  { %v1315_v42 = vpack.c.bf16 %v1311_v36, %v1307_v34  ;;  %v6237_v43 = vpack.c.bf16 %v1313_v37, %v1309_v35  ;;  %v5563_v21 = vld [vmem:[#allocation6 + $0x744] ss:$16 sps:$4 sm:$0xff]   ;;  %v5566_v22 = vld [vmem:[#allocation6 + $0x74c] ss:$16 sps:$4 sm:$0xff]   ;;  %v5561_v23 = vld [vmem:[#allocation6 + $0x740] ss:$16 sps:$4 sm:$0xff]  }
 0x288   :  { %v1316_v44 = vpack.c.bf16 %v1312_v40, %v1308_v38  ;;  %v1318_v45 = vpack.c.bf16 %v1314_v41, %v1310_v39  ;;  %v5564_v24 = vld [vmem:[#allocation6 + $0x748] ss:$16 sps:$4 sm:$0xff]   ;;  %v5569_v25 = vld [vmem:[#allocation6 + $0x764] ss:$16 sps:$4 sm:$0xff]   ;;  %v5572_v28 = vld [vmem:[#allocation6 + $0x76c] ss:$16 sps:$4 sm:$0xff]  }
 0x289   :  { %v5567_v30 = vld [vmem:[#allocation6 + $0x760] ss:$16 sps:$4 sm:$0xff]   ;;  %v5570_v31 = vld [vmem:[#allocation6 + $0x768] ss:$16 sps:$4 sm:$0xff]   ;;  %v5575_v33 = vld [vmem:[#allocation6 + $0x784] ss:$16 sps:$4 sm:$0xff]  }
 0x28a   :  { %2143 = vmatprep.mubr.bf16.mxu0 %v1316_v44  ;;  %2229 = vmatprep.mubr.bf16.mxu1 %v1316_v44  ;;  %v5578_v34 = vld [vmem:[#allocation6 + $0x78c] ss:$16 sps:$4 sm:$0xff]   ;;  %v5573_v35 = vld [vmem:[#allocation6 + $0x780] ss:$16 sps:$4 sm:$0xff]   ;;  %v5576_v36 = vld [vmem:[#allocation6 + $0x788] ss:$16 sps:$4 sm:$0xff]  }
 0x28b   :  { %2144 = vmatmul.mubr.bf16.vlgmr.msra.gmra.mrb[8].mxu0 %v1315_v42  ;;  %2230 = vmatmul.mubr.bf16.vlgmr.msra.gmra.mrb[8].mxu1 %v1315_v42  ;;  %v5581_v37 = vld [vmem:[#allocation6 + $0x7a4] ss:$16 sps:$4 sm:$0xff]   ;;  %v5584_v38 = vld [vmem:[#allocation6 + $0x7ac] ss:$16 sps:$4 sm:$0xff]   ;;  %v5579_v39 = vld [vmem:[#allocation6 + $0x7a0] ss:$16 sps:$4 sm:$0xff]  }
 0x28c   :  { %2155 = vmatpush1.bf16.msra.mxu0 %v5501_v46  ;;  %2241 = vmatpush1.bf16.msra.mxu1 %v5504_v47  ;;  %v5582_v40 = vld [vmem:[#allocation6 + $0x7a8] ss:$16 sps:$4 sm:$0xff]   ;;  %v5587_v41 = vld [vmem:[#allocation6 + $0x7c4] ss:$16 sps:$4 sm:$0xff]   ;;  %v5590_v42 = vld [vmem:[#allocation6 + $0x7cc] ss:$16 sps:$4 sm:$0xff]  }
 0x28d   :  { %2186 = vmatprep.mubr.bf16.mxu0 %v1318_v45  ;;  %2272 = vmatprep.mubr.bf16.mxu1 %v1318_v45  ;;  %v5585_v44 = vld [vmem:[#allocation6 + $0x7c0] ss:$16 sps:$4 sm:$0xff]   ;;  %v5588_v45 = vld [vmem:[#allocation6 + $0x7c8] ss:$16 sps:$4 sm:$0xff]   ;;  %v5593_v46 = vld [vmem:[#allocation6 + $0x7e4] ss:$16 sps:$4 sm:$0xff]  }
 0x28e   :  { %2156 = vmatprep.subr.bf16.mxu0 %v5509_v48  ;;  %2242 = vmatprep.subr.bf16.mxu1 %v5512_v49  ;;  %v5596_v47 = vld [vmem:[#allocation6 + $0x7ec] ss:$16 sps:$4 sm:$0xff]   ;;  %v5591_v48 = vld [vmem:[#allocation6 + $0x7e0] ss:$16 sps:$4 sm:$0xff]   ;;  %v5594_v49 = vld [vmem:[#allocation6 + $0x7e8] ss:$16 sps:$4 sm:$0xff]  }
 0x290   :  { %2157 = vmatpush1.bf16.msra.mxu0 %v5507_v50  ;;  %2243 = vmatpush1.bf16.msra.mxu1 %v5510_v51  ;;  %v5599_v50 = vld [vmem:[#allocation6 + $0x804] ss:$16 sps:$4 sm:$0xff]   ;;  %v5602_v51 = vld [vmem:[#allocation6 + $0x80c] ss:$16 sps:$4 sm:$0xff]  }
 0x291   :  { %2158 = vmatprep.subr.bf16.mxu0 %v5515_v52  ;;  %2244 = vmatprep.subr.bf16.mxu1 %v5518_v53  ;;  %v5597_v52 = vld [vmem:[#allocation6 + $0x800] ss:$16 sps:$4 sm:$0xff]   ;;  %v5600_v53 = vld [vmem:[#allocation6 + $0x808] ss:$16 sps:$4 sm:$0xff]  }
 0x294   :  { %2159 = vmatpush1.bf16.msra.mxu0 %v5513_v54  ;;  %2245 = vmatpush1.bf16.msra.mxu1 %v5516_v55  ;;  %v5605_v54 = vld [vmem:[#allocation6 + $0x824] ss:$16 sps:$4 sm:$0xff]   ;;  %v5608_v55 = vld [vmem:[#allocation6 + $0x82c] ss:$16 sps:$4 sm:$0xff]  }
 0x295   :  { %2160 = vmatprep.subr.bf16.mxu0 %v5521_v56  ;;  %2246 = vmatprep.subr.bf16.mxu1 %v5524_v57  ;;  %v5603_v56 = vld [vmem:[#allocation6 + $0x820] ss:$16 sps:$4 sm:$0xff]   ;;  %v5606_v57 = vld [vmem:[#allocation6 + $0x828] ss:$16 sps:$4 sm:$0xff]  }
 0x298   :  { %2161 = vmatpush1.bf16.msra.mxu0 %v5519_v58  ;;  %2247 = vmatpush1.bf16.msra.mxu1 %v5522_v59  ;;  %v5611_v58 = vld [vmem:[#allocation6 + $0x844] ss:$16 sps:$4 sm:$0xff]   ;;  %v5614_v59 = vld [vmem:[#allocation6 + $0x84c] ss:$16 sps:$4 sm:$0xff]  }
 0x299   :  { %2162 = vmatprep.subr.bf16.mxu0 %v5527_v60  ;;  %2248 = vmatprep.subr.bf16.mxu1 %v5530_v61  ;;  %v5609_v60 = vld [vmem:[#allocation6 + $0x840] ss:$16 sps:$4 sm:$0xff]   ;;  %v5612_v61 = vld [vmem:[#allocation6 + $0x848] ss:$16 sps:$4 sm:$0xff]  }
 0x29c   :  { %2163 = vmatpush1.bf16.msra.mxu0 %v5525_v62  ;;  %2249 = vmatpush1.bf16.msra.mxu1 %v5528_v63  ;;  %v5617_v62 = vld [vmem:[#allocation6 + $0x864] ss:$16 sps:$4 sm:$0xff]   ;;  %v5620_v63 = vld [vmem:[#allocation6 + $0x86c] ss:$16 sps:$4 sm:$0xff]  }
 0x29d   :  { %2164 = vmatprep.subr.bf16.mxu0 %v5533_v1  ;;  %2250 = vmatprep.subr.bf16.mxu1 %v5536_v2  ;;  %v5615_v1 = vld [vmem:[#allocation6 + $0x860] ss:$16 sps:$4 sm:$0xff]   ;;  %v5623_v2 = vld [vmem:[#allocation6 + $0x884] ss:$16 sps:$4 sm:$0xff]  }
 0x2a0   :  { %2165 = vmatpush1.bf16.msra.mxu0 %v5531_v3  ;;  %2251 = vmatpush1.bf16.msra.mxu1 %v5534_v4  ;;  %v5626_v3 = vld [vmem:[#allocation6 + $0x88c] ss:$16 sps:$4 sm:$0xff]   ;;  %v5621_v4 = vld [vmem:[#allocation6 + $0x880] ss:$16 sps:$4 sm:$0xff]  }
 0x2a1   :  { %2166 = vmatprep.subr.bf16.mxu0 %v5539_v6  ;;  %2252 = vmatprep.subr.bf16.mxu1 %v5542_v7  ;;  %v5624_v6 = vld [vmem:[#allocation6 + $0x888] ss:$16 sps:$4 sm:$0xff]   ;;  %v5629_v7 = vld [vmem:[#allocation6 + $0x8a4] ss:$16 sps:$4 sm:$0xff]  }
 0x2a4   :  { %2167 = vmatpush1.bf16.msra.mxu0 %v5537_v8  ;;  %2253 = vmatpush1.bf16.msra.mxu1 %v5540_v9  ;;  %v5632_v8 = vld [vmem:[#allocation6 + $0x8ac] ss:$16 sps:$4 sm:$0xff]   ;;  %v5627_v9 = vld [vmem:[#allocation6 + $0x8a0] ss:$16 sps:$4 sm:$0xff]  }
 0x2a5   :  { %2168 = vmatprep.subr.bf16.mxu0 %v5545_v10  ;;  %2254 = vmatprep.subr.bf16.mxu1 %v5548_v11  ;;  %v5630_v10 = vld [vmem:[#allocation6 + $0x8a8] ss:$16 sps:$4 sm:$0xff]   ;;  %v5635_v11 = vld [vmem:[#allocation6 + $0x8c4] ss:$16 sps:$4 sm:$0xff]  }
 0x2a8   :  { %2169 = vmatpush1.bf16.msra.mxu0 %v5543_v12  ;;  %2255 = vmatpush1.bf16.msra.mxu1 %v5546_v13  ;;  %v5638_v12 = vld [vmem:[#allocation6 + $0x8cc] ss:$16 sps:$4 sm:$0xff]   ;;  %v5633_v13 = vld [vmem:[#allocation6 + $0x8c0] ss:$16 sps:$4 sm:$0xff]  }
 0x2a9   :  { %2170 = vmatprep.subr.bf16.mxu0 %v5551_v14  ;;  %2256 = vmatprep.subr.bf16.mxu1 %v5554_v15  ;;  %v5636_v14 = vld [vmem:[#allocation6 + $0x8c8] ss:$16 sps:$4 sm:$0xff]   ;;  %v5641_v15 = vld [vmem:[#allocation6 + $0x8e4] ss:$16 sps:$4 sm:$0xff]  }
 0x2ac   :  { %2171 = vmatpush1.bf16.msra.mxu0 %v5549_v16  ;;  %2257 = vmatpush1.bf16.msra.mxu1 %v5552_v17  ;;  %v5644_v16 = vld [vmem:[#allocation6 + $0x8ec] ss:$16 sps:$4 sm:$0xff]   ;;  %v5639_v17 = vld [vmem:[#allocation6 + $0x8e0] ss:$16 sps:$4 sm:$0xff]  }
 0x2ad   :  { %2172 = vmatprep.subr.bf16.mxu0 %v5557_v5  ;;  %2258 = vmatprep.subr.bf16.mxu1 %v5560_v18  ;;  %v5642_v5 = vld [vmem:[#allocation6 + $0x8e8] ss:$16 sps:$4 sm:$0xff]   ;;  %v5647_v18 = vld [vmem:[#allocation6 + $0x904] ss:$16 sps:$4 sm:$0xff]  }
 0x2b0   :  { %2173 = vmatpush1.bf16.msra.mxu0 %v5555_v19  ;;  %2259 = vmatpush1.bf16.msra.mxu1 %v5558_v20  ;;  %v5650_v19 = vld [vmem:[#allocation6 + $0x90c] ss:$16 sps:$4 sm:$0xff]   ;;  %v5645_v20 = vld [vmem:[#allocation6 + $0x900] ss:$16 sps:$4 sm:$0xff]  }
 0x2b1   :  { %2174 = vmatprep.subr.bf16.mxu0 %v5563_v21  ;;  %2260 = vmatprep.subr.bf16.mxu1 %v5566_v22  ;;  %v5648_v21 = vld [vmem:[#allocation6 + $0x908] ss:$16 sps:$4 sm:$0xff]   ;;  %v5653_v22 = vld [vmem:[#allocation6 + $0x924] ss:$16 sps:$4 sm:$0xff]  }
 0x2b4   :  { %2175 = vmatpush1.bf16.msra.mxu0 %v5561_v23  ;;  %2261 = vmatpush1.bf16.msra.mxu1 %v5564_v24  ;;  %v5656_v23 = vld [vmem:[#allocation6 + $0x92c] ss:$16 sps:$4 sm:$0xff]   ;;  %v5651_v24 = vld [vmem:[#allocation6 + $0x920] ss:$16 sps:$4 sm:$0xff]  }
 0x2b5   :  { %2176 = vmatprep.subr.bf16.mxu0 %v5569_v25  ;;  %2262 = vmatprep.subr.bf16.mxu1 %v5572_v28  ;;  %v5654_v25 = vld [vmem:[#allocation6 + $0x928] ss:$16 sps:$4 sm:$0xff]   ;;  %v5659_v28 = vld [vmem:[#allocation6 + $0x944] ss:$16 sps:$4 sm:$0xff]  }
 0x2b8   :  { %2177 = vmatpush1.bf16.msra.mxu0 %v5567_v30  ;;  %2263 = vmatpush1.bf16.msra.mxu1 %v5570_v31  ;;  %v5662_v30 = vld [vmem:[#allocation6 + $0x94c] ss:$16 sps:$4 sm:$0xff]   ;;  %v5657_v31 = vld [vmem:[#allocation6 + $0x940] ss:$16 sps:$4 sm:$0xff]  }
 0x2b9   :  { %2178 = vmatprep.subr.bf16.mxu0 %v5575_v33  ;;  %2264 = vmatprep.subr.bf16.mxu1 %v5578_v34  ;;  %v5660_v33 = vld [vmem:[#allocation6 + $0x948] ss:$16 sps:$4 sm:$0xff]   ;;  %v5665_v34 = vld [vmem:[#allocation6 + $0x964] ss:$16 sps:$4 sm:$0xff]  }
 0x2bc   :  { %2179 = vmatpush1.bf16.msra.mxu0 %v5573_v35  ;;  %2265 = vmatpush1.bf16.msra.mxu1 %v5576_v36  ;;  %v5668_v35 = vld [vmem:[#allocation6 + $0x96c] ss:$16 sps:$4 sm:$0xff]   ;;  %v5663_v36 = vld [vmem:[#allocation6 + $0x960] ss:$16 sps:$4 sm:$0xff]  }
 0x2bd   :  { %2180 = vmatprep.subr.bf16.mxu0 %v5581_v37  ;;  %2266 = vmatprep.subr.bf16.mxu1 %v5584_v38  ;;  %v5666_v37 = vld [vmem:[#allocation6 + $0x968] ss:$16 sps:$4 sm:$0xff]   ;;  %v5671_v38 = vld [vmem:[#allocation6 + $0x984] ss:$16 sps:$4 sm:$0xff]  }
 0x2c0   :  { %2181 = vmatpush1.bf16.msra.mxu0 %v5579_v39  ;;  %2267 = vmatpush1.bf16.msra.mxu1 %v5582_v40  ;;  %v5674_v39 = vld [vmem:[#allocation6 + $0x98c] ss:$16 sps:$4 sm:$0xff]   ;;  %v5669_v40 = vld [vmem:[#allocation6 + $0x980] ss:$16 sps:$4 sm:$0xff]  }
 0x2c1   :  { %2182 = vmatprep.subr.bf16.mxu0 %v5587_v41  ;;  %2268 = vmatprep.subr.bf16.mxu1 %v5590_v42  ;;  %v5672_v41 = vld [vmem:[#allocation6 + $0x988] ss:$16 sps:$4 sm:$0xff]   ;;  %v5677_v42 = vld [vmem:[#allocation6 + $0x9a4] ss:$16 sps:$4 sm:$0xff]  }
 0x2c4   :  { %2183 = vmatpush1.bf16.msra.mxu0 %v5585_v44  ;;  %2269 = vmatpush1.bf16.msra.mxu1 %v5588_v45  ;;  %v5680_v44 = vld [vmem:[#allocation6 + $0x9ac] ss:$16 sps:$4 sm:$0xff]   ;;  %v5675_v45 = vld [vmem:[#allocation6 + $0x9a0] ss:$16 sps:$4 sm:$0xff]  }
 0x2c5   :  { %2184 = vmatprep.subr.bf16.mxu0 %v5593_v46  ;;  %2270 = vmatprep.subr.bf16.mxu1 %v5596_v47  ;;  %v5678_v46 = vld [vmem:[#allocation6 + $0x9a8] ss:$16 sps:$4 sm:$0xff]   ;;  %v5683_v47 = vld [vmem:[#allocation6 + $0x9c4] ss:$16 sps:$4 sm:$0xff]  }
 0x2c8   :  { %2185 = vmatpush1.bf16.msra.mxu0 %v5591_v48  ;;  %2271 = vmatpush1.bf16.msra.mxu1 %v5594_v49  ;;  %v5686_v48 = vld [vmem:[#allocation6 + $0x9cc] ss:$16 sps:$4 sm:$0xff]   ;;  %v5681_v49 = vld [vmem:[#allocation6 + $0x9c0] ss:$16 sps:$4 sm:$0xff]  }
 0x2c9   :  { %3087 = vmatprep.subr.bf16.mxu0 %v5599_v50  ;;  %3173 = vmatprep.subr.bf16.mxu1 %v5602_v51  ;;  %v5684_v50 = vld [vmem:[#allocation6 + $0x9c8] ss:$16 sps:$4 sm:$0xff]   ;;  %v5689_v51 = vld [vmem:[#allocation6 + $0x9e4] ss:$16 sps:$4 sm:$0xff]  }
 0x2cb   :  { %2187 = vmatmul.mubr.bf16.vlgmr.msra.gmra.mrb[8].mxu0 %v6237_v43  ;;  %2273 = vmatmul.mubr.bf16.vlgmr.msra.gmra.mrb[8].mxu1 %v6237_v43  ;;  %v5618_v43 = vld [vmem:[#allocation6 + $0x868] ss:$16 sps:$4 sm:$0xff]  }
 0x2cc   :  { %3088 = vmatpush1.bf16.msra.mxu0 %v5597_v52  ;;  %3174 = vmatpush1.bf16.msra.mxu1 %v5600_v53  ;;  %v5692_v52 = vld [vmem:[#allocation6 + $0x9ec] ss:$16 sps:$4 sm:$0xff]   ;;  %v5687_v53 = vld [vmem:[#allocation6 + $0x9e0] ss:$16 sps:$4 sm:$0xff]  }
 0x2cd   :  { %3089 = vmatprep.subr.bf16.mxu0 %v5605_v54  ;;  %3175 = vmatprep.subr.bf16.mxu1 %v5608_v55  ;;  %v5690_v54 = vld [vmem:[#allocation6 + $0x9e8] ss:$16 sps:$4 sm:$0xff]   ;;  %v5695_v55 = vld [vmem:[#allocation6 + $0xa04] ss:$16 sps:$4 sm:$0xff]  }
 0x2d0   :  { %3090 = vmatpush1.bf16.msra.mxu0 %v5603_v56  ;;  %3176 = vmatpush1.bf16.msra.mxu1 %v5606_v57  ;;  %v5698_v56 = vld [vmem:[#allocation6 + $0xa0c] ss:$16 sps:$4 sm:$0xff]   ;;  %v1449_v57 = vld [vmem:[#allocation7 + $0x4] sm:$0xf] }
 0x2d1   :  { %3091 = vmatprep.subr.bf16.mxu0 %v5611_v58  ;;  %3177 = vmatprep.subr.bf16.mxu1 %v5614_v59  ;;  %v1454_v58 = vrot.slane %v1449_v57, %v6217_v26  ;;  %v1462_v59 = vrot.slane %v1449_v57, %v6222_v29 }
 0x2d4   :  { %3092 = vmatpush1.bf16.msra.mxu0 %v5609_v60  ;;  %3178 = vmatpush1.bf16.msra.mxu1 %v5612_v61  ;;  %v1458_v60 = vrot.slane %v1449_v57, %v6219_v27  ;;  %v1466_v61 = vrot.slane %v1449_v57, %v6225_v32  ;;  %v5737_v57 = vld [vmem:[#allocation6 + $0xae4] ss:$16 sps:$4 sm:$0xff]  }
 0x2d5   :  { %3093 = vmatprep.subr.bf16.mxu0 %v5617_v62  ;;  %3179 = vmatprep.subr.bf16.mxu1 %v5620_v63 }
 0x2d8   :  { %3094 = vmatpush1.bf16.msra.mxu0 %v5615_v1  ;;  %3180 = vmatpush1.bf16.msra.mxu1 %v5618_v43 }
 0x2d9   :  { %3095 = vmatprep.subr.bf16.mxu0 %v5623_v2  ;;  %3181 = vmatprep.subr.bf16.mxu1 %v5626_v3 }
 0x2dc   :  { %3096 = vmatpush1.bf16.msra.mxu0 %v5621_v4  ;;  %3182 = vmatpush1.bf16.msra.mxu1 %v5624_v6 }
 0x2dd   :  { %3097 = vmatprep.subr.bf16.mxu0 %v5629_v7  ;;  %3183 = vmatprep.subr.bf16.mxu1 %v5632_v8 }
 0x2e0   :  { %3098 = vmatpush1.bf16.msra.mxu0 %v5627_v9  ;;  %3184 = vmatpush1.bf16.msra.mxu1 %v5630_v10 }
 0x2e1   :  { %3099 = vmatprep.subr.bf16.mxu0 %v5635_v11  ;;  %3185 = vmatprep.subr.bf16.mxu1 %v5638_v12 }
 0x2e4   :  { %3100 = vmatpush1.bf16.msra.mxu0 %v5633_v13  ;;  %3186 = vmatpush1.bf16.msra.mxu1 %v5636_v14 }
 0x2e5   :  { %3101 = vmatprep.subr.bf16.mxu0 %v5641_v15  ;;  %3187 = vmatprep.subr.bf16.mxu1 %v5644_v16 }
 0x2e8   :  { %3102 = vmatpush1.bf16.msra.mxu0 %v5639_v17  ;;  %3188 = vmatpush1.bf16.msra.mxu1 %v5642_v5 }
 0x2e9   :  { %3103 = vmatprep.subr.bf16.mxu0 %v5647_v18  ;;  %3189 = vmatprep.subr.bf16.mxu1 %v5650_v19 }
 0x2ec   :  { %3104 = vmatpush1.bf16.msra.mxu0 %v5645_v20  ;;  %3190 = vmatpush1.bf16.msra.mxu1 %v5648_v21 }
 0x2ed   :  { %3105 = vmatprep.subr.bf16.mxu0 %v5653_v22  ;;  %3191 = vmatprep.subr.bf16.mxu1 %v5656_v23 }
 0x2f0   :  { %3106 = vmatpush1.bf16.msra.mxu0 %v5651_v24  ;;  %3192 = vmatpush1.bf16.msra.mxu1 %v5654_v25 }
 0x2f1   :  { %3107 = vmatprep.subr.bf16.mxu0 %v5659_v28  ;;  %3193 = vmatprep.subr.bf16.mxu1 %v5662_v30  ;;  %v5693_v28 = vld [vmem:[#allocation6 + $0xa00] ss:$16 sps:$4 sm:$0xff]   ;;  %v5696_v30 = vld [vmem:[#allocation6 + $0xa08] ss:$16 sps:$4 sm:$0xff]  }
 0x2f4   :  { %3108 = vmatpush1.bf16.msra.mxu0 %v5657_v31  ;;  %3194 = vmatpush1.bf16.msra.mxu1 %v5660_v33  ;;  %v5701_v31 = vld [vmem:[#allocation6 + $0xa24] ss:$16 sps:$4 sm:$0xff]   ;;  %v5704_v33 = vld [vmem:[#allocation6 + $0xa2c] ss:$16 sps:$4 sm:$0xff]  }
 0x2f5   :  { %3109 = vmatprep.subr.bf16.mxu0 %v5665_v34  ;;  %3195 = vmatprep.subr.bf16.mxu1 %v5668_v35  ;;  %v5699_v34 = vld [vmem:[#allocation6 + $0xa20] ss:$16 sps:$4 sm:$0xff]   ;;  %v5702_v35 = vld [vmem:[#allocation6 + $0xa28] ss:$16 sps:$4 sm:$0xff]  }
 0x2f8   :  { %3110 = vmatpush1.bf16.msra.mxu0 %v5663_v36  ;;  %3196 = vmatpush1.bf16.msra.mxu1 %v5666_v37  ;;  %v5707_v36 = vld [vmem:[#allocation6 + $0xa44] ss:$16 sps:$4 sm:$0xff]   ;;  %v5710_v37 = vld [vmem:[#allocation6 + $0xa4c] ss:$16 sps:$4 sm:$0xff]  }
 0x2f9   :  { %3111 = vmatprep.subr.bf16.mxu0 %v5671_v38  ;;  %3197 = vmatprep.subr.bf16.mxu1 %v5674_v39  ;;  %v5705_v38 = vld [vmem:[#allocation6 + $0xa40] ss:$16 sps:$4 sm:$0xff]   ;;  %v5708_v39 = vld [vmem:[#allocation6 + $0xa48] ss:$16 sps:$4 sm:$0xff]  }
 0x2fc   :  { %3112 = vmatpush1.bf16.msra.mxu0 %v5669_v40  ;;  %3198 = vmatpush1.bf16.msra.mxu1 %v5672_v41  ;;  %v5713_v40 = vld [vmem:[#allocation6 + $0xa64] ss:$16 sps:$4 sm:$0xff]   ;;  %v5716_v41 = vld [vmem:[#allocation6 + $0xa6c] ss:$16 sps:$4 sm:$0xff]  }
 0x2fd   :  { %3113 = vmatprep.subr.bf16.mxu0 %v5677_v42  ;;  %3199 = vmatprep.subr.bf16.mxu1 %v5680_v44  ;;  %v5711_v42 = vld [vmem:[#allocation6 + $0xa60] ss:$16 sps:$4 sm:$0xff]   ;;  %v5714_v44 = vld [vmem:[#allocation6 + $0xa68] ss:$16 sps:$4 sm:$0xff]  }
 0x300   :  { %3114 = vmatpush1.bf16.msra.mxu0 %v5675_v45  ;;  %3200 = vmatpush1.bf16.msra.mxu1 %v5678_v46  ;;  %v5719_v45 = vld [vmem:[#allocation6 + $0xa84] ss:$16 sps:$4 sm:$0xff]   ;;  %v5722_v46 = vld [vmem:[#allocation6 + $0xa8c] ss:$16 sps:$4 sm:$0xff]  }
 0x301   :  { %3115 = vmatprep.subr.bf16.mxu0 %v5683_v47  ;;  %3201 = vmatprep.subr.bf16.mxu1 %v5686_v48  ;;  %v5717_v47 = vld [vmem:[#allocation6 + $0xa80] ss:$16 sps:$4 sm:$0xff]   ;;  %v5720_v48 = vld [vmem:[#allocation6 + $0xa88] ss:$16 sps:$4 sm:$0xff]  }
 0x304   :  { %3116 = vmatpush1.bf16.msra.mxu0 %v5681_v49  ;;  %3202 = vmatpush1.bf16.msra.mxu1 %v5684_v50  ;;  %v5725_v49 = vld [vmem:[#allocation6 + $0xaa4] ss:$16 sps:$4 sm:$0xff]   ;;  %v5728_v50 = vld [vmem:[#allocation6 + $0xaac] ss:$16 sps:$4 sm:$0xff]  }
 0x305   :  { %3117 = vmatprep.subr.bf16.mxu0 %v5689_v51  ;;  %3203 = vmatprep.subr.bf16.mxu1 %v5692_v52  ;;  %v5723_v51 = vld [vmem:[#allocation6 + $0xaa0] ss:$16 sps:$4 sm:$0xff]   ;;  %v5726_v52 = vld [vmem:[#allocation6 + $0xaa8] ss:$16 sps:$4 sm:$0xff]  }
 0x308   :  { %3118 = vmatpush1.bf16.msra.mxu0 %v5687_v53  ;;  %3204 = vmatpush1.bf16.msra.mxu1 %v5690_v54  ;;  %v5731_v53 = vld [vmem:[#allocation6 + $0xac4] ss:$16 sps:$4 sm:$0xff]   ;;  %v5734_v54 = vld [vmem:[#allocation6 + $0xacc] ss:$16 sps:$4 sm:$0xff]  }
 0x309   :  { %3130 = vmatprep.subr.bf16.mxu0 %v5695_v55  ;;  %3216 = vmatprep.subr.bf16.mxu1 %v5698_v56  ;;  %v5729_v55 = vld [vmem:[#allocation6 + $0xac0] ss:$16 sps:$4 sm:$0xff]   ;;  %v5732_v56 = vld [vmem:[#allocation6 + $0xac8] ss:$16 sps:$4 sm:$0xff]  }
 0x39e   :  { %v2188_v62 = vpop.f32.mrb[8].mxu0  ;;  %v2274_v63 = vpop.f32.mrb[8].mxu1 }
 0x39f   :  { %v5137_v1 = vadd.f32 %v2188_v62, %v1454_v58  ;;  %v5141_v43 = vadd.f32 %v2274_v63, %v1462_v59  ;;  %v2190_v2 = vpop.f32.mrb[9].mxu0  ;;  %v2276_v3 = vpop.f32.mrb[9].mxu1  ;;  %v5746_v62 = vld [vmem:[#allocation6 + $0xb0c] ss:$16 sps:$4 sm:$0xff]   ;;  %v5741_v63 = vld [vmem:[#allocation6 + $0xb00] ss:$16 sps:$4 sm:$0xff]  }
 0x3a0   :  { %v5138_v4 = vadd.f32 %v2190_v2, %v1458_v60  ;;  %v5142_v6 = vadd.f32 %v2276_v3, %v1466_v61  ;;  %v2192_v7 = vpop.f32.mrb[10].mxu0  ;;  %v2278_v8 = vpop.f32.mrb[10].mxu1  ;;  %v5752_v2 = vld [vmem:[#allocation6 + $0xb2c] ss:$16 sps:$4 sm:$0xff]   ;;  %v5747_v3 = vld [vmem:[#allocation6 + $0xb20] ss:$16 sps:$4 sm:$0xff]  }
 0x3a1   :  { %v5139_v9 = vadd.f32 %v2192_v7, %v1454_v58  ;;  %v5143_v10 = vadd.f32 %v2278_v8, %v1462_v59  ;;  %v2194_v11 = vpop.f32.mrb[11].mxu0  ;;  %v2280_v12 = vpop.f32.mrb[11].mxu1  ;;  %v2283_v15 = vmax.f32 %v5137_v1, 0.0  ;;  %v2285_v16 = vmax.f32 %v5141_v43, 0.0  ;;  %v5740_v58 = vld [vmem:[#allocation6 + $0xaec] ss:$16 sps:$4 sm:$0xff]  }
 0x3a2   :  { %v5140_v13 = vadd.f32 %v2194_v11, %v1458_v60  ;;  %v5144_v14 = vadd.f32 %v2280_v12, %v1466_v61  ;;  %v2284_v18 = vmax.f32 %v5138_v4, 0.0  ;;  %v2286_v19 = vmax.f32 %v5142_v6, 0.0  ;;  %v5735_v59 = vld [vmem:[#allocation6 + $0xae0] ss:$16 sps:$4 sm:$0xff]   ;;  %v5738_v60 = vld [vmem:[#allocation6 + $0xae8] ss:$16 sps:$4 sm:$0xff]  }
 0x3a3   :  { %v2287_v17 = vmax.f32 %v5139_v9, 0.0  ;;  %v2289_v5 = vmax.f32 %v5143_v10, 0.0  ;;  %v5743_v61 = vld [vmem:[#allocation6 + $0xb04] ss:$16 sps:$4 sm:$0xff]   ;;  %v5744_v1 = vld [vmem:[#allocation6 + $0xb08] ss:$16 sps:$4 sm:$0xff]  }
 0x3a4   :  { %v2288_v20 = vmax.f32 %v5140_v13, 0.0  ;;  %v2290_v21 = vmax.f32 %v5144_v14, 0.0  ;;  %v5749_v43 = vld [vmem:[#allocation6 + $0xb24] ss:$16 sps:$4 sm:$0xff]   ;;  %v5750_v4 = vld [vmem:[#allocation6 + $0xb28] ss:$16 sps:$4 sm:$0xff]  }
 0x3a5   :  { %v2291_v22 = vpack.c.bf16 %v2287_v17, %v2283_v15  ;;  %v6245_v23 = vpack.c.bf16 %v2289_v5, %v2285_v16  ;;  %v5755_v6 = vld [vmem:[#allocation6 + $0xb44] ss:$16 sps:$4 sm:$0xff]   ;;  %v5758_v7 = vld [vmem:[#allocation6 + $0xb4c] ss:$16 sps:$4 sm:$0xff]   ;;  %v5753_v8 = vld [vmem:[#allocation6 + $0xb40] ss:$16 sps:$4 sm:$0xff]  }
 0x3a6   :  { %v2292_v24 = vpack.c.bf16 %v2288_v20, %v2284_v18  ;;  %v2294_v25 = vpack.c.bf16 %v2290_v21, %v2286_v19  ;;  %v5756_v9 = vld [vmem:[#allocation6 + $0xb48] ss:$16 sps:$4 sm:$0xff]   ;;  %v5761_v10 = vld [vmem:[#allocation6 + $0xb64] ss:$16 sps:$4 sm:$0xff]   ;;  %v5764_v11 = vld [vmem:[#allocation6 + $0xb6c] ss:$16 sps:$4 sm:$0xff]  }
 0x3a7   :  { %v5759_v12 = vld [vmem:[#allocation6 + $0xb60] ss:$16 sps:$4 sm:$0xff]   ;;  %v5762_v13 = vld [vmem:[#allocation6 + $0xb68] ss:$16 sps:$4 sm:$0xff]   ;;  %v5767_v14 = vld [vmem:[#allocation6 + $0xb84] ss:$16 sps:$4 sm:$0xff]  }
 0x3a8   :  { %3119 = vmatprep.mubr.bf16.mxu0 %v2292_v24  ;;  %3205 = vmatprep.mubr.bf16.mxu1 %v2292_v24  ;;  %v5770_v15 = vld [vmem:[#allocation6 + $0xb8c] ss:$16 sps:$4 sm:$0xff]   ;;  %v5765_v16 = vld [vmem:[#allocation6 + $0xb80] ss:$16 sps:$4 sm:$0xff]   ;;  %v5768_v17 = vld [vmem:[#allocation6 + $0xb88] ss:$16 sps:$4 sm:$0xff]  }
 0x3a9   :  { %3120 = vmatmul.mubr.bf16.vlgmr.msra.gmra.mrb[12].mxu0 %v2291_v22  ;;  %3206 = vmatmul.mubr.bf16.vlgmr.msra.gmra.mrb[12].mxu1 %v2291_v22  ;;  %v5773_v5 = vld [vmem:[#allocation6 + $0xba4] ss:$16 sps:$4 sm:$0xff]   ;;  %v5776_v18 = vld [vmem:[#allocation6 + $0xbac] ss:$16 sps:$4 sm:$0xff]   ;;  %v5771_v19 = vld [vmem:[#allocation6 + $0xba0] ss:$16 sps:$4 sm:$0xff]  }
 0x3aa   :  { %3131 = vmatpush1.bf16.msra.mxu0 %v5693_v28  ;;  %3217 = vmatpush1.bf16.msra.mxu1 %v5696_v30  ;;  %v5774_v20 = vld [vmem:[#allocation6 + $0xba8] ss:$16 sps:$4 sm:$0xff]   ;;  %v5779_v21 = vld [vmem:[#allocation6 + $0xbc4] ss:$16 sps:$4 sm:$0xff]   ;;  %v5782_v22 = vld [vmem:[#allocation6 + $0xbcc] ss:$16 sps:$4 sm:$0xff]  }
 0x3ab   :  { %3162 = vmatprep.mubr.bf16.mxu0 %v2294_v25  ;;  %3248 = vmatprep.mubr.bf16.mxu1 %v2294_v25  ;;  %v5777_v24 = vld [vmem:[#allocation6 + $0xbc0] ss:$16 sps:$4 sm:$0xff]   ;;  %v5780_v25 = vld [vmem:[#allocation6 + $0xbc8] ss:$16 sps:$4 sm:$0xff]   ;;  %v5785_v28 = vld [vmem:[#allocation6 + $0xbe4] ss:$16 sps:$4 sm:$0xff]  }
 0x3ac   :  { %3132 = vmatprep.subr.bf16.mxu0 %v5701_v31  ;;  %3218 = vmatprep.subr.bf16.mxu1 %v5704_v33  ;;  %v5788_v30 = vld [vmem:[#allocation6 + $0xbec] ss:$16 sps:$4 sm:$0xff]   ;;  %v5783_v31 = vld [vmem:[#allocation6 + $0xbe0] ss:$16 sps:$4 sm:$0xff]   ;;  %v5786_v33 = vld [vmem:[#allocation6 + $0xbe8] ss:$16 sps:$4 sm:$0xff]  }
 0x3ae   :  { %3133 = vmatpush1.bf16.msra.mxu0 %v5699_v34  ;;  %3219 = vmatpush1.bf16.msra.mxu1 %v5702_v35  ;;  %v6247_v34 = vld [vmem:[#allocation9 + $0x4] ss:$16 sps:$4 sm:$0xff]   ;;  %v6249_v35 = vld [vmem:[#allocation9 + $0xc] ss:$16 sps:$4 sm:$0xff]  }
 0x3af   :  { %3134 = vmatprep.subr.bf16.mxu0 %v5707_v36  ;;  %3220 = vmatprep.subr.bf16.mxu1 %v5710_v37  ;;  %6912 = vst [vmem:[#allocation17_spill] sm:$0xff] %v6247_v34  ;;  %6913 = vst [vmem:[#allocation18_spill] sm:$0xff] %v6249_v35  ;;  %v6251_v36 = vld [vmem:[#allocation9] ss:$16 sps:$4 sm:$0xff]   ;;  %v6253_v37 = vld [vmem:[#allocation9 + $0x8] ss:$16 sps:$4 sm:$0xff]  }
 0x3b2   :  { %3135 = vmatpush1.bf16.msra.mxu0 %v5705_v38  ;;  %3221 = vmatpush1.bf16.msra.mxu1 %v5708_v39  ;;  %v6257_v38 = vld [vmem:[#allocation9 + $0x24] ss:$16 sps:$4 sm:$0xff]   ;;  %v6259_v39 = vld [vmem:[#allocation9 + $0x2c] ss:$16 sps:$4 sm:$0xff]  }
 0x3b3   :  { %3136 = vmatprep.subr.bf16.mxu0 %v5713_v40  ;;  %3222 = vmatprep.subr.bf16.mxu1 %v5716_v41  ;;  %v6265_v40 = vld [vmem:[#allocation9 + $0x20] ss:$16 sps:$4 sm:$0xff]   ;;  %v6267_v41 = vld [vmem:[#allocation9 + $0x28] ss:$16 sps:$4 sm:$0xff]  }
 0x3b6   :  { %3137 = vmatpush1.bf16.msra.mxu0 %v5711_v42  ;;  %3223 = vmatpush1.bf16.msra.mxu1 %v5714_v44  ;;  %v6271_v42 = vld [vmem:[#allocation9 + $0x44] ss:$16 sps:$4 sm:$0xff]   ;;  %v6273_v44 = vld [vmem:[#allocation9 + $0x4c] ss:$16 sps:$4 sm:$0xff]  }
 0x3b7   :  { %3138 = vmatprep.subr.bf16.mxu0 %v5719_v45  ;;  %3224 = vmatprep.subr.bf16.mxu1 %v5722_v46  ;;  %v6281_v45 = vld [vmem:[#allocation9 + $0x48] ss:$16 sps:$4 sm:$0xff]   ;;  %v6285_v46 = vld [vmem:[#allocation9 + $0x64] ss:$16 sps:$4 sm:$0xff]  }
 0x3ba   :  { %3139 = vmatpush1.bf16.msra.mxu0 %v5717_v47  ;;  %3225 = vmatpush1.bf16.msra.mxu1 %v5720_v48  ;;  %v6287_v47 = vld [vmem:[#allocation9 + $0x6c] ss:$16 sps:$4 sm:$0xff]   ;;  %v6291_v48 = vld [vmem:[#allocation9 + $0x60] ss:$16 sps:$4 sm:$0xff]  }
 0x3bb   :  { %3140 = vmatprep.subr.bf16.mxu0 %v5725_v49  ;;  %3226 = vmatprep.subr.bf16.mxu1 %v5728_v50  ;;  %v6293_v49 = vld [vmem:[#allocation9 + $0x68] ss:$16 sps:$4 sm:$0xff]   ;;  %v6297_v50 = vld [vmem:[#allocation9 + $0x84] ss:$16 sps:$4 sm:$0xff]  }
 0x3be   :  { %3141 = vmatpush1.bf16.msra.mxu0 %v5723_v51  ;;  %3227 = vmatpush1.bf16.msra.mxu1 %v5726_v52  ;;  %v6299_v51 = vld [vmem:[#allocation9 + $0x8c] ss:$16 sps:$4 sm:$0xff]   ;;  %v6303_v52 = vld [vmem:[#allocation9 + $0x80] ss:$16 sps:$4 sm:$0xff]  }
 0x3bf   :  { %3142 = vmatprep.subr.bf16.mxu0 %v5731_v53  ;;  %3228 = vmatprep.subr.bf16.mxu1 %v5734_v54  ;;  %v6305_v53 = vld [vmem:[#allocation9 + $0x88] ss:$16 sps:$4 sm:$0xff]   ;;  %v6309_v54 = vld [vmem:[#allocation9 + $0xa4] ss:$16 sps:$4 sm:$0xff]  }
 0x3c2   :  { %3143 = vmatpush1.bf16.msra.mxu0 %v5729_v55  ;;  %3229 = vmatpush1.bf16.msra.mxu1 %v5732_v56  ;;  %v6311_v55 = vld [vmem:[#allocation9 + $0xac] ss:$16 sps:$4 sm:$0xff]   ;;  %v6315_v56 = vld [vmem:[#allocation9 + $0xa0] ss:$16 sps:$4 sm:$0xff]  }
 0x3c3   :  { %3144 = vmatprep.subr.bf16.mxu0 %v5737_v57  ;;  %3230 = vmatprep.subr.bf16.mxu1 %v5740_v58  ;;  %v6317_v57 = vld [vmem:[#allocation9 + $0xa8] ss:$16 sps:$4 sm:$0xff]   ;;  %v6321_v58 = vld [vmem:[#allocation9 + $0xc4] ss:$16 sps:$4 sm:$0xff]  }
 0x3c6   :  { %3145 = vmatpush1.bf16.msra.mxu0 %v5735_v59  ;;  %3231 = vmatpush1.bf16.msra.mxu1 %v5738_v60  ;;  %v6323_v59 = vld [vmem:[#allocation9 + $0xcc] ss:$16 sps:$4 sm:$0xff]   ;;  %v6329_v60 = vld [vmem:[#allocation9 + $0xc0] ss:$16 sps:$4 sm:$0xff]  }
 0x3c7   :  { %3146 = vmatprep.subr.bf16.mxu0 %v5743_v61  ;;  %3232 = vmatprep.subr.bf16.mxu1 %v5746_v62  ;;  %v6331_v61 = vld [vmem:[#allocation9 + $0xc8] ss:$16 sps:$4 sm:$0xff]   ;;  %v6335_v62 = vld [vmem:[#allocation9 + $0xe4] ss:$16 sps:$4 sm:$0xff]  }
 0x3ca   :  { %3147 = vmatpush1.bf16.msra.mxu0 %v5741_v63  ;;  %3233 = vmatpush1.bf16.msra.mxu1 %v5744_v1  ;;  %v6337_v63 = vld [vmem:[#allocation9 + $0xec] ss:$16 sps:$4 sm:$0xff]   ;;  %v6339_v1 = vld [vmem:[#allocation9 + $0xe0] ss:$16 sps:$4 sm:$0xff]  }
 0x3cb   :  { %3148 = vmatprep.subr.bf16.mxu0 %v5749_v43  ;;  %3234 = vmatprep.subr.bf16.mxu1 %v5752_v2  ;;  %v6341_v43 = vld [vmem:[#allocation9 + $0xe8] ss:$16 sps:$4 sm:$0xff]   ;;  %v6350_v2 = vld [vmem:[%s6846_s7 + $0x40] sm:$0xff]  }
 0x3ce   :  { %3149 = vmatpush1.bf16.msra.mxu0 %v5747_v3  ;;  %3235 = vmatpush1.bf16.msra.mxu1 %v5750_v4  ;;  %v6355_v3 = vld [vmem:[%s6846_s7 + $0xc0] sm:$0xff]   ;;  %v2425_v4 = vld [vmem:[#allocation7 + $0x8] sm:$0xf] }
 0x3cf   :  { %3150 = vmatprep.subr.bf16.mxu0 %v5755_v6  ;;  %3236 = vmatprep.subr.bf16.mxu1 %v5758_v7  ;;  %v2430_v6 = vrot.slane %v2425_v4, %v6217_v26  ;;  %v2438_v7 = vrot.slane %v2425_v4, %v6222_v29 }
 0x3d2   :  { %3151 = vmatpush1.bf16.msra.mxu0 %v5753_v8  ;;  %3237 = vmatpush1.bf16.msra.mxu1 %v5756_v9 }
 0x3d3   :  { %3152 = vmatprep.subr.bf16.mxu0 %v5761_v10  ;;  %3238 = vmatprep.subr.bf16.mxu1 %v5764_v11  ;;  %v2434_v10 = vrot.slane %v2425_v4, %v6219_v27  ;;  %v2442_v11 = vrot.slane %v2425_v4, %v6225_v32  ;;  %v6378_v4 = vld [vmem:[%s6846_s7 + $0x48] sm:$0xff]  }
 0x3d6   :  { %3153 = vmatpush1.bf16.msra.mxu0 %v5759_v12  ;;  %3239 = vmatpush1.bf16.msra.mxu1 %v5762_v13 }
 0x3d7   :  { %3154 = vmatprep.subr.bf16.mxu0 %v5767_v14  ;;  %3240 = vmatprep.subr.bf16.mxu1 %v5770_v15 }
 0x3da   :  { %3155 = vmatpush1.bf16.msra.mxu0 %v5765_v16  ;;  %3241 = vmatpush1.bf16.msra.mxu1 %v5768_v17 }
 0x3db   :  { %3156 = vmatprep.subr.bf16.mxu0 %v5773_v5  ;;  %3242 = vmatprep.subr.bf16.mxu1 %v5776_v18 }
 0x3de   :  { %3157 = vmatpush1.bf16.msra.mxu0 %v5771_v19  ;;  %3243 = vmatpush1.bf16.msra.mxu1 %v5774_v20 }
 0x3df   :  { %3158 = vmatprep.subr.bf16.mxu0 %v5779_v21  ;;  %3244 = vmatprep.subr.bf16.mxu1 %v5782_v22 }
 0x3e2   :  { %3159 = vmatpush1.bf16.msra.mxu0 %v5777_v24  ;;  %3245 = vmatpush1.bf16.msra.mxu1 %v5780_v25 }
 0x3e3   :  { %3160 = vmatprep.subr.bf16.mxu0 %v5785_v28  ;;  %3246 = vmatprep.subr.bf16.mxu1 %v5788_v30  ;;  %v6366_v28 = vld [vmem:[%s6846_s7] sm:$0xff]  }
 0x3e4   :  { %v6371_v30 = vld [vmem:[%s6846_s7 + $0x80] sm:$0xff]  }
 0x3e6   :  { %3161 = vmatpush1.bf16.msra.mxu0 %v5783_v31  ;;  %3247 = vmatpush1.bf16.msra.mxu1 %v5786_v33 }
 0x3e7   :  { %3539 = vmatprep.subr.bf16.mxu0 %v6247_v34  ;;  %3582 = vmatprep.subr.bf16.mxu1 %v6249_v35 }
 0x3e9   :  { %3163 = vmatmul.mubr.bf16.vlgmr.msra.gmra.mrb[12].mxu0 %v6245_v23  ;;  %3249 = vmatmul.mubr.bf16.vlgmr.msra.gmra.mrb[12].mxu1 %v6245_v23  ;;  %v6279_v23 = vld [vmem:[#allocation9 + $0x40] ss:$16 sps:$4 sm:$0xff]  }
 0x3ea   :  { %3540 = vmatpush1.bf16.msra.mxu0 %v6251_v36  ;;  %3583 = vmatpush1.bf16.msra.mxu1 %v6253_v37 }
 0x3eb   :  { %3541 = vmatprep.subr.bf16.mxu0 %v6257_v38  ;;  %3584 = vmatprep.subr.bf16.mxu1 %v6259_v39 }
 0x3ec   :  { %3571 = vmatprep.mubr.bf16.mxu0 %v6849_v0  ;;  %3614 = vmatprep.mubr.bf16.mxu1 %v6849_v0  ;;  %v6504_v0 = vld [vmem:[%s6846_s7 + $0x70] sm:$0xff]  }
 0x3ed   :  { %6934 = vst [vmem:[#allocation39_spill] sm:$0xff] %v6504_v0 }
 0x3ee   :  { %3542 = vmatpush1.bf16.msra.mxu0 %v6265_v40  ;;  %3585 = vmatpush1.bf16.msra.mxu1 %v6267_v41 }
 0x3ef   :  { %3543 = vmatprep.subr.bf16.mxu0 %v6271_v42  ;;  %3586 = vmatprep.subr.bf16.mxu1 %v6273_v44 }
 0x3f2   :  { %3544 = vmatpush1.bf16.msra.mxu0 %v6279_v23  ;;  %3587 = vmatpush1.bf16.msra.mxu1 %v6281_v45 }
 0x3f3   :  { %3545 = vmatprep.subr.bf16.mxu0 %v6285_v46  ;;  %3588 = vmatprep.subr.bf16.mxu1 %v6287_v47 }
 0x3f6   :  { %3546 = vmatpush1.bf16.msra.mxu0 %v6291_v48  ;;  %3589 = vmatpush1.bf16.msra.mxu1 %v6293_v49 }
 0x3f7   :  { %3547 = vmatprep.subr.bf16.mxu0 %v6297_v50  ;;  %3590 = vmatprep.subr.bf16.mxu1 %v6299_v51 }
 0x3fa   :  { %3548 = vmatpush1.bf16.msra.mxu0 %v6303_v52  ;;  %3591 = vmatpush1.bf16.msra.mxu1 %v6305_v53 }
 0x3fb   :  { %3549 = vmatprep.subr.bf16.mxu0 %v6309_v54  ;;  %3592 = vmatprep.subr.bf16.mxu1 %v6311_v55 }
 0x3fe   :  { %3550 = vmatpush1.bf16.msra.mxu0 %v6315_v56  ;;  %3593 = vmatpush1.bf16.msra.mxu1 %v6317_v57 }
 0x3ff   :  { %3551 = vmatprep.subr.bf16.mxu0 %v6321_v58  ;;  %3594 = vmatprep.subr.bf16.mxu1 %v6323_v59 }
 0x402   :  { %3552 = vmatpush1.bf16.msra.mxu0 %v6329_v60  ;;  %3595 = vmatpush1.bf16.msra.mxu1 %v6331_v61 }
 0x403   :  { %3553 = vmatprep.subr.bf16.mxu0 %v6335_v62  ;;  %3596 = vmatprep.subr.bf16.mxu1 %v6337_v63 }
 0x406   :  { %3554 = vmatpush1.bf16.msra.mxu0 %v6339_v1  ;;  %3597 = vmatpush1.bf16.msra.mxu1 %v6341_v43 }
 0x407   :  { %4953 = vmatprep.subr.bf16.mxu0 %v6350_v2  ;;  %4975 = vmatprep.subr.bf16.mxu1 %v6355_v3 }
 0x4bc   :  { %v3164_v8 = vpop.f32.mrb[12].mxu0  ;;  %v3250_v9 = vpop.f32.mrb[12].mxu1 }
 0x4bd   :  { %v3166_v12 = vpop.f32.mrb[13].mxu0  ;;  %v3252_v13 = vpop.f32.mrb[13].mxu1  ;;  %v5145_v16 = vadd.f32 %v3164_v8, %v2430_v6  ;;  %v5149_v17 = vadd.f32 %v3250_v9, %v2438_v7  ;;  %v6394_v9 = vld [vmem:[%s6846_s7 + $0x8] sm:$0xff]  }
 0x4be   :  { %v3168_v14 = vpop.f32.mrb[14].mxu0  ;;  %v3254_v15 = vpop.f32.mrb[14].mxu1  ;;  %v5146_v21 = vadd.f32 %v3166_v12, %v2434_v10  ;;  %v5150_v22 = vadd.f32 %v3252_v13, %v2442_v11  ;;  %6916 = vst [vmem:[#allocation21_spill] sm:$0xff] %v6394_v9  ;;  %v6411_v12 = vld [vmem:[%s6846_s7 + $0xd0] sm:$0xff]  }
 0x4bf   :  { %v5147_v5 = vadd.f32 %v3168_v14, %v2430_v6  ;;  %v5151_v18 = vadd.f32 %v3254_v15, %v2438_v7  ;;  %v3170_v19 = vpop.f32.mrb[15].mxu0  ;;  %v3256_v20 = vpop.f32.mrb[15].mxu1  ;;  %v6383_v6 = vld [vmem:[%s6846_s7 + $0xc8] sm:$0xff]   ;;  %6919 = vst [vmem:[#allocation24_spill] sm:$0xff] %v6411_v12  ;;  %v6418_v13 = vld [vmem:[%s6846_s7 + $0x10] sm:$0xff]   ;;  %v6430_v15 = vld [vmem:[%s6846_s7 + $0x58] sm:$0xff]  }
 0x4c0   :  { %v5148_v24 = vadd.f32 %v3170_v19, %v2434_v10  ;;  %v5152_v25 = vadd.f32 %v3256_v20, %v2442_v11  ;;  %v6399_v10 = vld [vmem:[%s6846_s7 + $0x88] sm:$0xff]   ;;  %v6406_v11 = vld [vmem:[%s6846_s7 + $0x50] sm:$0xff]   ;;  %6920 = vst [vmem:[#allocation25_spill] sm:$0xff] %v6418_v13  ;;  %6922 = vst [vmem:[#allocation27_spill] sm:$0xff] %v6430_v15 }
 0x4c1   :  { %v3357_v31 = vpack.c.bf16 %v5147_v5, %v5145_v16  ;;  %v6373_v33 = vpack.c.bf16 %v5151_v18, %v5149_v17  ;;  %6917 = vst [vmem:[#allocation22_spill] sm:$0xff] %v6399_v10  ;;  %6918 = vst [vmem:[#allocation23_spill] sm:$0xff] %v6406_v11  ;;  %v6423_v14 = vld [vmem:[%s6846_s7 + $0x90] sm:$0xff]   ;;  %v6435_v16 = vld [vmem:[%s6846_s7 + $0xd8] sm:$0xff]  }
 0x4c2   :  { %v6385_v7 = vpack.c.bf16 %v5148_v24, %v5146_v21  ;;  %v6387_v8 = vpack.c.bf16 %v5152_v25, %v5150_v22  ;;  %6921 = vst [vmem:[#allocation26_spill] sm:$0xff] %v6423_v14  ;;  %6923 = vst [vmem:[#allocation28_spill] sm:$0xff] %v6435_v16  ;;  %v6442_v17 = vld [vmem:[%s6846_s7 + $0x18] sm:$0xff]   ;;  %v6454_v18 = vld [vmem:[%s6846_s7 + $0x60] sm:$0xff]  }
 0x4c3   :  { %6914 = vst [vmem:[#allocation19_spill] sm:$0xff] %v6373_v33  ;;  %3572 = vmatmul.mubr.bf16.vlgmr.msra.gmra.mrb[16].mxu0 %v3357_v31  ;;  %3615 = vmatmul.mubr.bf16.vlgmr.msra.gmra.mrb[16].mxu1 %v3357_v31  ;;  %6924 = vst [vmem:[#allocation29_spill] sm:$0xff] %v6442_v17  ;;  %v6447_v5 = vld [vmem:[%s6846_s7 + $0x98] sm:$0xff]   ;;  %v6459_v19 = vld [vmem:[%s6846_s7 + $0xe0] sm:$0xff]  }
 0x4c4   :  { %6915 = vst [vmem:[#allocation20_spill] sm:$0xff] %v6387_v8  ;;  %4954 = vmatpush3.bf16.msra.mxu0 %v6366_v28  ;;  %4976 = vmatpush3.bf16.msra.mxu1 %v6371_v30  ;;  %6925 = vst [vmem:[#allocation30_spill] sm:$0xff] %v6447_v5  ;;  %v6466_v20 = vld [vmem:[%s6846_s7 + $0x20] sm:$0xff]   ;;  %v6478_v22 = vld [vmem:[%s6846_s7 + $0x68] sm:$0xff]  }
 0x4c5   :  { %4955 = vmatprep.subr.bf16.mxu0 %v6378_v4  ;;  %4977 = vmatprep.subr.bf16.mxu1 %v6383_v6  ;;  %6926 = vst [vmem:[#allocation31_spill] sm:$0xff] %v6454_v18  ;;  %6927 = vst [vmem:[#allocation32_spill] sm:$0xff] %v6459_v19  ;;  %v6471_v21 = vld [vmem:[%s6846_s7 + $0xa0] sm:$0xff]   ;;  %v6483_v24 = vld [vmem:[%s6846_s7 + $0xe8] sm:$0xff]  }
 0x4c6   :  { %6928 = vst [vmem:[#allocation33_spill] sm:$0xff] %v6466_v20  ;;  %6929 = vst [vmem:[#allocation34_spill] sm:$0xff] %v6471_v21  ;;  %v6490_v25 = vld [vmem:[%s6846_s7 + $0x28] sm:$0xff]   ;;  %v6509_v8 = vld [vmem:[%s6846_s7 + $0xf0] sm:$0xff]  }
 0x4c7   :  { %6930 = vst [vmem:[#allocation35_spill] sm:$0xff] %v6478_v22  ;;  %6931 = vst [vmem:[#allocation36_spill] sm:$0xff] %v6483_v24  ;;  %v6495_v31 = vld [vmem:[%s6846_s7 + $0xa8] sm:$0xff]   ;;  %v6514_v33 = vld [vmem:[%s6846_s7 + $0x30] sm:$0xff]  }
 0x4c8   :  { %4956 = vmatpush3.bf16.msra.mxu0 %v6394_v9  ;;  %4978 = vmatpush3.bf16.msra.mxu1 %v6399_v10  ;;  %6932 = vst [vmem:[#allocation37_spill] sm:$0xff] %v6490_v25  ;;  %6933 = vst [vmem:[#allocation38_spill] sm:$0xff] %v6495_v31 }
 0x4c9   :  { %4957 = vmatprep.subr.bf16.mxu0 %v6406_v11  ;;  %4979 = vmatprep.subr.bf16.mxu1 %v6411_v12  ;;  %6935 = vst [vmem:[#allocation40_spill] sm:$0xff] %v6509_v8  ;;  %6936 = vst [vmem:[#allocation41_spill] sm:$0xff] %v6514_v33 }
 0x4cc   :  { %4958 = vmatpush3.bf16.msra.mxu0 %v6418_v13  ;;  %4980 = vmatpush3.bf16.msra.mxu1 %v6423_v14 }
 0x4cd   :  { %4959 = vmatprep.subr.bf16.mxu0 %v6430_v15  ;;  %4981 = vmatprep.subr.bf16.mxu1 %v6435_v16 }
 0x4d0   :  { %4960 = vmatpush3.bf16.msra.mxu0 %v6442_v17  ;;  %4982 = vmatpush3.bf16.msra.mxu1 %v6447_v5 }
 0x4d1   :  { %4961 = vmatprep.subr.bf16.mxu0 %v6454_v18  ;;  %4983 = vmatprep.subr.bf16.mxu1 %v6459_v19 }
 0x4d4   :  { %4962 = vmatpush3.bf16.msra.mxu0 %v6466_v20  ;;  %4984 = vmatpush3.bf16.msra.mxu1 %v6471_v21 }
 0x4d5   :  { %4963 = vmatprep.subr.bf16.mxu0 %v6478_v22  ;;  %4985 = vmatprep.subr.bf16.mxu1 %v6483_v24  ;;  %v6533_v24 = vld [vmem:[%s6846_s7 + $0xf8] sm:$0xff]  }
 0x4d6   :  { %6939 = vst [vmem:[#allocation44_spill] sm:$0xff] %v6533_v24 }
 0x4d8   :  { %4964 = vmatpush3.bf16.msra.mxu0 %v6490_v25  ;;  %4986 = vmatpush3.bf16.msra.mxu1 %v6495_v31  ;;  %v6519_v25 = vld [vmem:[%s6846_s7 + $0xb0] sm:$0xff]   ;;  %v6528_v31 = vld [vmem:[%s6846_s7 + $0x78] sm:$0xff]  }
 0x4d9   :  { %6937 = vst [vmem:[#allocation42_spill] sm:$0xff] %v6519_v25  ;;  %4965 = vmatprep.subr.bf16.mxu0 %v6504_v0  ;;  %4987 = vmatprep.subr.bf16.mxu1 %v6509_v8  ;;  %6938 = vst [vmem:[#allocation43_spill] sm:$0xff] %v6528_v31  ;;  %v6538_v0 = vld [vmem:[%s6846_s7 + $0x38] sm:$0xff]  }
 0x4da   :  { %6940 = vst [vmem:[#allocation45_spill] sm:$0xff] %v6538_v0 }
 0x4dc   :  { %4966 = vmatpush3.bf16.msra.mxu0 %v6514_v33  ;;  %4988 = vmatpush3.bf16.msra.mxu1 %v6519_v25  ;;  %v6543_v33 = vld [vmem:[%s6846_s7 + $0xb8] sm:$0xff]   ;;  %v3291_v25 = vld [vmem:[#allocation10] sm:$0xf] }
 0x4dd   :  { %6941 = vst [vmem:[#allocation46_spill] sm:$0xff] %v6543_v33  ;;  %4967 = vmatprep.subr.bf16.mxu0 %v6528_v31  ;;  %4989 = vmatprep.subr.bf16.mxu1 %v6533_v24  ;;  %v6552_v8 = vrot.slane %v3291_v25, %v6217_v26  ;;  %v6555_v22 = vrot.slane %v3291_v25, %v6222_v29 }
 0x4de   :  { %v6558_v21 = vrot.slane %v3291_v25, %v6219_v27  ;;  %v6561_v24 = vrot.slane %v3291_v25, %v6225_v32 }
 0x4e0   :  { %4968 = vmatpush3.bf16.msra.mxu0 %v6538_v0  ;;  %4990 = vmatpush3.bf16.msra.mxu1 %v6543_v33 }
 0x4e1   :  { %3921 = vmatprep.subr.bf16.mxu0 %v6247_v34  ;;  %3964 = vmatprep.subr.bf16.mxu1 %v6249_v35 }
 0x596   :  { %v3573_v0 = vpop.f32.mrb[16].mxu0  ;;  %v3616_v31 = vpop.f32.mrb[16].mxu1 }
 0x597   :  { %v3574_v33 = vadd.f32 %v3573_v0, %v6552_v8  ;;  %v3617_v34 = vadd.f32 %v3616_v31, %v6555_v22  ;;  %v3575_v35 = vpop.f32.mrb[17].mxu0  ;;  %v3618_v20 = vpop.f32.mrb[17].mxu1 }
 0x598   :  { %v3576_v26 = vadd.f32 %v3575_v35, %v6558_v21  ;;  %v3619_v19 = vadd.f32 %v3618_v20, %v6561_v24  ;;  %v3577_v29 = vpop.f32.mrb[18].mxu0  ;;  %v3620_v18 = vpop.f32.mrb[18].mxu1 }
 0x599   :  { %v3578_v27 = vadd.f32 %v3577_v29, %v6552_v8  ;;  %v3621_v5 = vadd.f32 %v3620_v18, %v6555_v22  ;;  %v3579_v32 = vpop.f32.mrb[19].mxu0  ;;  %v3622_v25 = vpop.f32.mrb[19].mxu1  ;;  %v3625_v16 = vmax.f32 %v3574_v33, 0.0  ;;  %v3627_v31 = vmax.f32 %v3617_v34, 0.0  ;;  %v6943_v33 = vld [vmem:[#allocation21_spill] sm:$0xff] }
 0x59a   :  { %v3580_v17 = vadd.f32 %v3579_v32, %v6558_v21  ;;  %v3623_v0 = vadd.f32 %v3622_v25, %v6561_v24  ;;  %v3626_v13 = vmax.f32 %v3576_v26, 0.0  ;;  %v3628_v35 = vmax.f32 %v3619_v19, 0.0  ;;  %v6955_v18 = vld [vmem:[#allocation33_spill] sm:$0xff]  ;;  %v6956_v19 = vld [vmem:[#allocation34_spill] sm:$0xff]  ;;  %v6957_v26 = vld [vmem:[#allocation35_spill] sm:$0xff] }
 0x59b   :  { %v3629_v15 = vmax.f32 %v3578_v27, 0.0  ;;  %v3631_v14 = vmax.f32 %v3621_v5, 0.0  ;;  %v6942_v34 = vmov 0   ;;  %v6954_v5 = vld [vmem:[#allocation32_spill] sm:$0xff]  ;;  %v6959_v32 = vld [vmem:[#allocation37_spill] sm:$0xff]  ;;  %v6960_v25 = vld [vmem:[#allocation38_spill] sm:$0xff] }
 0x59c   :  { %v3630_v12 = vmax.f32 %v3580_v17, 0.0  ;;  %v3632_v20 = vmax.f32 %v3623_v0, 0.0  ;;  %v6953_v17 = vld [vmem:[#allocation31_spill] sm:$0xff]  ;;  %v6958_v27 = vld [vmem:[#allocation36_spill] sm:$0xff] }
 0x59d   :  { %v3633_v11 = vpack.c.bf16 %v3629_v15, %v3625_v16  ;;  %v3635_v10 = vpack.c.bf16 %v3631_v14, %v3627_v31  ;;  %v6950_v14 = vld [vmem:[#allocation28_spill] sm:$0xff]  ;;  %v6951_v15 = vld [vmem:[#allocation29_spill] sm:$0xff]  ;;  %v6952_v16 = vld [vmem:[#allocation30_spill] sm:$0xff] }
 0x59e   :  { %v3634_v9 = vpack.c.bf16 %v3630_v12, %v3626_v13  ;;  %v3636_v29 = vpack.c.bf16 %v3632_v20, %v3628_v35  ;;  %v6947_v12 = vld [vmem:[#allocation25_spill] sm:$0xff]  ;;  %v6948_v13 = vld [vmem:[#allocation26_spill] sm:$0xff]  ;;  %v6961_v0 = vld [vmem:[#allocation39_spill] sm:$0xff] }
 0x59f   :  { %v6962_v31 = vld [vmem:[#allocation40_spill] sm:$0xff]  ;;  %v6963_v35 = vld [vmem:[#allocation41_spill] sm:$0xff]  ;;  %v6964_v20 = vld [vmem:[#allocation42_spill] sm:$0xff] }
 0x5a0   :  { %3867 = vmatprep.mubr.bf16.mxu0 %v3634_v9  ;;  %3908 = vmatprep.mubr.bf16.mxu1 %v3636_v29  ;;  %v6944_v9 = vld [vmem:[#allocation22_spill] sm:$0xff]  ;;  %v6965_v29 = vld [vmem:[#allocation43_spill] sm:$0xff] }
 0x5a1   :  { %3868 = vmatmul.mubr.bf16.vlgmr.msra.gmra.mrb[20].mxu0 %v3633_v11  ;;  %3909 = vmatmul.mubr.bf16.vlgmr.msra.gmra.mrb[20].mxu1 %v3635_v10  ;;  %v6945_v10 = vld [vmem:[#allocation23_spill] sm:$0xff]  ;;  %v6946_v11 = vld [vmem:[#allocation24_spill] sm:$0xff] }
 0x5a2   :  { %3922 = vmatpush1.bf16.msra.mxu0 %v6251_v36  ;;  %3965 = vmatpush1.bf16.msra.mxu1 %v6253_v37 }
 0x5a3   :  { %3923 = vmatprep.subr.bf16.mxu0 %v6257_v38  ;;  %3966 = vmatprep.subr.bf16.mxu1 %v6259_v39 }
 0x5a4   :  { %3953 = vmatprep.mubr.bf16.mxu0 %v6942_v34  ;;  %3996 = vmatprep.mubr.bf16.mxu1 %v6942_v34 }
 0x5a6   :  { %3924 = vmatpush1.bf16.msra.mxu0 %v6265_v40  ;;  %3967 = vmatpush1.bf16.msra.mxu1 %v6267_v41 }
 0x5a7   :  { %3925 = vmatprep.subr.bf16.mxu0 %v6271_v42  ;;  %3968 = vmatprep.subr.bf16.mxu1 %v6273_v44 }
 0x5aa   :  { %3926 = vmatpush1.bf16.msra.mxu0 %v6279_v23  ;;  %3969 = vmatpush1.bf16.msra.mxu1 %v6281_v45 }
 0x5ab   :  { %3927 = vmatprep.subr.bf16.mxu0 %v6285_v46  ;;  %3970 = vmatprep.subr.bf16.mxu1 %v6287_v47 }
 0x5ae   :  { %3928 = vmatpush1.bf16.msra.mxu0 %v6291_v48  ;;  %3971 = vmatpush1.bf16.msra.mxu1 %v6293_v49 }
 0x5af   :  { %3929 = vmatprep.subr.bf16.mxu0 %v6297_v50  ;;  %3972 = vmatprep.subr.bf16.mxu1 %v6299_v51 }
 0x5b2   :  { %3930 = vmatpush1.bf16.msra.mxu0 %v6303_v52  ;;  %3973 = vmatpush1.bf16.msra.mxu1 %v6305_v53 }
 0x5b3   :  { %3931 = vmatprep.subr.bf16.mxu0 %v6309_v54  ;;  %3974 = vmatprep.subr.bf16.mxu1 %v6311_v55 }
 0x5b6   :  { %3932 = vmatpush1.bf16.msra.mxu0 %v6315_v56  ;;  %3975 = vmatpush1.bf16.msra.mxu1 %v6317_v57 }
 0x5b7   :  { %3933 = vmatprep.subr.bf16.mxu0 %v6321_v58  ;;  %3976 = vmatprep.subr.bf16.mxu1 %v6323_v59 }
 0x5ba   :  { %3934 = vmatpush1.bf16.msra.mxu0 %v6329_v60  ;;  %3977 = vmatpush1.bf16.msra.mxu1 %v6331_v61 }
 0x5bb   :  { %3935 = vmatprep.subr.bf16.mxu0 %v6335_v62  ;;  %3978 = vmatprep.subr.bf16.mxu1 %v6337_v63 }
 0x5be   :  { %3936 = vmatpush1.bf16.msra.mxu0 %v6339_v1  ;;  %3979 = vmatpush1.bf16.msra.mxu1 %v6341_v43 }
 0x5bf   :  { %4997 = vmatprep.subr.bf16.mxu0 %v6350_v2  ;;  %5019 = vmatprep.subr.bf16.mxu1 %v6355_v3 }
 0x5c1   :  { %3954 = vmatmul.mubr.bf16.vlgmr.msra.gmra.mrb[24].mxu0 %v6385_v7  ;;  %3997 = vmatmul.mubr.bf16.vlgmr.msra.gmra.mrb[24].mxu1 %v6385_v7  ;;  %v6949_v7 = vld [vmem:[#allocation27_spill] sm:$0xff] }
 0x5c2   :  { %4998 = vmatpush3.bf16.msra.mxu0 %v6366_v28  ;;  %5020 = vmatpush3.bf16.msra.mxu1 %v6371_v30 }
 0x5c3   :  { %4999 = vmatprep.subr.bf16.mxu0 %v6378_v4  ;;  %5021 = vmatprep.subr.bf16.mxu1 %v6383_v6 }
 0x5c6   :  { %5000 = vmatpush3.bf16.msra.mxu0 %v6943_v33  ;;  %5022 = vmatpush3.bf16.msra.mxu1 %v6944_v9 }
 0x5c7   :  { %5001 = vmatprep.subr.bf16.mxu0 %v6945_v10  ;;  %5023 = vmatprep.subr.bf16.mxu1 %v6946_v11 }
 0x5ca   :  { %5002 = vmatpush3.bf16.msra.mxu0 %v6947_v12  ;;  %5024 = vmatpush3.bf16.msra.mxu1 %v6948_v13 }
 0x5cb   :  { %5003 = vmatprep.subr.bf16.mxu0 %v6949_v7  ;;  %5025 = vmatprep.subr.bf16.mxu1 %v6950_v14 }
 0x5ce   :  { %5004 = vmatpush3.bf16.msra.mxu0 %v6951_v15  ;;  %5026 = vmatpush3.bf16.msra.mxu1 %v6952_v16 }
 0x5cf   :  { %5005 = vmatprep.subr.bf16.mxu0 %v6953_v17  ;;  %5027 = vmatprep.subr.bf16.mxu1 %v6954_v5  ;;  %v6639_v5 = vld [vmem:[#allocation12] ss:$0 sm:$0xff] }
 0x5d0   :  { %6971 = vst [vmem:[#allocation47_spill] sm:$0xff] %v6639_v5 }
 0x5d2   :  { %5006 = vmatpush3.bf16.msra.mxu0 %v6955_v18  ;;  %5028 = vmatpush3.bf16.msra.mxu1 %v6956_v19  ;;  %v6966_v18 = vld [vmem:[#allocation44_spill] sm:$0xff]  ;;  %v6967_v19 = vld [vmem:[#allocation45_spill] sm:$0xff] }
 0x5d3   :  { %5007 = vmatprep.subr.bf16.mxu0 %v6957_v26  ;;  %5029 = vmatprep.subr.bf16.mxu1 %v6958_v27  ;;  %v6968_v26 = vld [vmem:[#allocation46_spill] sm:$0xff]  ;;  %v6969_v27 = vld [vmem:[#allocation17_spill] sm:$0xff] }
 0x5d6   :  { %5008 = vmatpush3.bf16.msra.mxu0 %v6959_v32  ;;  %5030 = vmatpush3.bf16.msra.mxu1 %v6960_v25  ;;  %v6970_v32 = vld [vmem:[#allocation18_spill] sm:$0xff] }
 0x5d7   :  { %5009 = vmatprep.subr.bf16.mxu0 %v6961_v0  ;;  %5031 = vmatprep.subr.bf16.mxu1 %v6962_v31 }
 0x5da   :  { %5010 = vmatpush3.bf16.msra.mxu0 %v6963_v35  ;;  %5032 = vmatpush3.bf16.msra.mxu1 %v6964_v20 }
 0x5db   :  { %5011 = vmatprep.subr.bf16.mxu0 %v6965_v29  ;;  %5033 = vmatprep.subr.bf16.mxu1 %v6966_v18 }
 0x5de   :  { %5012 = vmatpush3.bf16.msra.mxu0 %v6967_v19  ;;  %5034 = vmatpush3.bf16.msra.mxu1 %v6968_v26 }
 0x5df   :  { %4105 = vmatprep.subr.bf16.mxu0 %v6969_v27  ;;  %4148 = vmatprep.subr.bf16.mxu1 %v6970_v32 }
 0x674   :  { %v4969_v25 = vpop.f32.mrb[20].mxu0  ;;  %v4991_v0 = vpop.f32.mrb[20].mxu1 }
 0x675   :  { %v4970_v31 = vpop.f32.mrb[21].mxu0  ;;  %v4992_v35 = vpop.f32.mrb[21].mxu1 }
 0x676   :  { %v4971_v17 = vadd.f32 %v4970_v31, %v4969_v25  ;;  %v4993_v20 = vadd.f32 %v4992_v35, %v4991_v0  ;;  %v4972_v16 = vpop.f32.mrb[22].mxu0  ;;  %v4994_v29 = vpop.f32.mrb[22].mxu1 }
 0x677   :  { %v4973_v15 = vpop.f32.mrb[23].mxu0  ;;  %v4995_v18 = vpop.f32.mrb[23].mxu1 }
 0x678   :  { %v3870_v19 = vadd.f32 %v4971_v17, %v6639_v5  ;;  %v4974_v14 = vadd.f32 %v4973_v15, %v4972_v16  ;;  %v4996_v26 = vadd.f32 %v4995_v18, %v4994_v29 }
 0x67a   :  { %v3911_v27 = vadd.f32 %v4993_v20, %v3870_v19  ;;  %v3873_v32 = vadd.f32 %v4974_v14, %v6639_v5 }
 0x67c   :  { %3918 = vst.msk [vmem:[%s6848_s9] sm:$0xff] %vm3917_vm1, %v3911_v27  ;;  %v3914_v7 = vadd.f32 %v4996_v26, %v3873_v32 }
 0x67e   :  { %3919 = vst.msk [vmem:[%s6848_s9 + $0x8] sm:$0xff] %vm3917_vm1, %v3914_v7 }
 0x694   :  { %v3955_v25 = vpop.f32.mrb[24].mxu0  ;;  %v3998_v0 = vpop.f32.mrb[24].mxu1 }
 0x695   :  { %v3956_v15 = vadd.f32 %v3955_v25, %v6552_v8  ;;  %v3999_v16 = vadd.f32 %v3998_v0, %v6555_v22  ;;  %v3957_v17 = vpop.f32.mrb[25].mxu0  ;;  %v4000_v18 = vpop.f32.mrb[25].mxu1 }
 0x696   :  { %v3958_v14 = vadd.f32 %v3957_v17, %v6558_v21  ;;  %v4001_v19 = vadd.f32 %v4000_v18, %v6561_v24  ;;  %v3959_v31 = vpop.f32.mrb[26].mxu0  ;;  %v4002_v27 = vpop.f32.mrb[26].mxu1 }
 0x697   :  { %v3960_v26 = vadd.f32 %v3959_v31, %v6552_v8  ;;  %v4003_v32 = vadd.f32 %v4002_v27, %v6555_v22  ;;  %v3961_v35 = vpop.f32.mrb[27].mxu0  ;;  %v4004_v7 = vpop.f32.mrb[27].mxu1  ;;  %v4007_v25 = vmax.f32 %v3956_v15, 0.0  ;;  %v4009_v0 = vmax.f32 %v3999_v16, 0.0  ;;  %v6979_v15 = vld [vmem:[#allocation27_spill] sm:$0xff]  ;;  %v6980_v16 = vld [vmem:[#allocation28_spill] sm:$0xff] }
 0x698   :  { %v3962_v20 = vadd.f32 %v3961_v35, %v6558_v21  ;;  %v4005_v29 = vadd.f32 %v4004_v7, %v6561_v24  ;;  %v4008_v12 = vmax.f32 %v3958_v14, 0.0  ;;  %v4010_v17 = vmax.f32 %v4001_v19, 0.0  ;;  %v6981_v14 = vld [vmem:[#allocation29_spill] sm:$0xff]  ;;  %v6982_v19 = vld [vmem:[#allocation30_spill] sm:$0xff]  ;;  %v6983_v27 = vld [vmem:[#allocation31_spill] sm:$0xff] }
 0x699   :  { %v4011_v5 = vmax.f32 %v3960_v26, 0.0  ;;  %v4013_v13 = vmax.f32 %v4003_v32, 0.0  ;;  %v6984_v26 = vld [vmem:[#allocation32_spill] sm:$0xff]  ;;  %v6985_v32 = vld [vmem:[#allocation33_spill] sm:$0xff]  ;;  %v6986_v35 = vld [vmem:[#allocation34_spill] sm:$0xff] }
 0x69a   :  { %v4012_v11 = vmax.f32 %v3962_v20, 0.0  ;;  %v4014_v18 = vmax.f32 %v4005_v29, 0.0  ;;  %v6987_v7 = vld [vmem:[#allocation35_spill] sm:$0xff]  ;;  %v6988_v20 = vld [vmem:[#allocation36_spill] sm:$0xff]  ;;  %v6989_v29 = vld [vmem:[#allocation37_spill] sm:$0xff] }
 0x69b   :  { %v4015_v10 = vpack.c.bf16 %v4011_v5, %v4007_v25  ;;  %v4017_v9 = vpack.c.bf16 %v4013_v13, %v4009_v0  ;;  %v6977_v13 = vld [vmem:[#allocation25_spill] sm:$0xff]  ;;  %v6978_v5 = vld [vmem:[#allocation26_spill] sm:$0xff]  ;;  %v6991_v0 = vld [vmem:[#allocation39_spill] sm:$0xff] }
 0x69c   :  { %v4016_v33 = vpack.c.bf16 %v4012_v11, %v4008_v12  ;;  %v4018_v31 = vpack.c.bf16 %v4014_v18, %v4010_v17  ;;  %v6975_v11 = vld [vmem:[#allocation23_spill] sm:$0xff]  ;;  %v6976_v12 = vld [vmem:[#allocation24_spill] sm:$0xff]  ;;  %v6990_v25 = vld [vmem:[#allocation38_spill] sm:$0xff] }
 0x69d   :  { %v6992_v17 = vld [vmem:[#allocation40_spill] sm:$0xff]  ;;  %v6993_v18 = vld [vmem:[#allocation41_spill] sm:$0xff] }
 0x69e   :  { %4051 = vmatprep.mubr.bf16.mxu0 %v4016_v33  ;;  %4092 = vmatprep.mubr.bf16.mxu1 %v4018_v31  ;;  %v6972_v33 = vld [vmem:[#allocation19_spill] sm:$0xff]  ;;  %v6994_v31 = vld [vmem:[#allocation42_spill] sm:$0xff] }
 0x69f   :  { %4052 = vmatmul.mubr.bf16.vlgmr.msra.gmra.mrb[28].mxu0 %v4015_v10  ;;  %4093 = vmatmul.mubr.bf16.vlgmr.msra.gmra.mrb[28].mxu1 %v4017_v9  ;;  %v6973_v9 = vld [vmem:[#allocation21_spill] sm:$0xff]  ;;  %v6974_v10 = vld [vmem:[#allocation22_spill] sm:$0xff] }
 0x6a0   :  { %4106 = vmatpush1.bf16.msra.mxu0 %v6251_v36  ;;  %4149 = vmatpush1.bf16.msra.mxu1 %v6253_v37 }
 0x6a1   :  { %4107 = vmatprep.subr.bf16.mxu0 %v6257_v38  ;;  %4150 = vmatprep.subr.bf16.mxu1 %v6259_v39 }
 0x6a2   :  { %4137 = vmatprep.mubr.bf16.mxu0 %v6942_v34  ;;  %4180 = vmatprep.mubr.bf16.mxu1 %v6942_v34 }
 0x6a4   :  { %4108 = vmatpush1.bf16.msra.mxu0 %v6265_v40  ;;  %4151 = vmatpush1.bf16.msra.mxu1 %v6267_v41 }
 0x6a5   :  { %4109 = vmatprep.subr.bf16.mxu0 %v6271_v42  ;;  %4152 = vmatprep.subr.bf16.mxu1 %v6273_v44 }
 0x6a8   :  { %4110 = vmatpush1.bf16.msra.mxu0 %v6279_v23  ;;  %4153 = vmatpush1.bf16.msra.mxu1 %v6281_v45 }
 0x6a9   :  { %4111 = vmatprep.subr.bf16.mxu0 %v6285_v46  ;;  %4154 = vmatprep.subr.bf16.mxu1 %v6287_v47 }
 0x6ac   :  { %4112 = vmatpush1.bf16.msra.mxu0 %v6291_v48  ;;  %4155 = vmatpush1.bf16.msra.mxu1 %v6293_v49 }
 0x6ad   :  { %4113 = vmatprep.subr.bf16.mxu0 %v6297_v50  ;;  %4156 = vmatprep.subr.bf16.mxu1 %v6299_v51 }
 0x6b0   :  { %4114 = vmatpush1.bf16.msra.mxu0 %v6303_v52  ;;  %4157 = vmatpush1.bf16.msra.mxu1 %v6305_v53 }
 0x6b1   :  { %4115 = vmatprep.subr.bf16.mxu0 %v6309_v54  ;;  %4158 = vmatprep.subr.bf16.mxu1 %v6311_v55 }
 0x6b4   :  { %4116 = vmatpush1.bf16.msra.mxu0 %v6315_v56  ;;  %4159 = vmatpush1.bf16.msra.mxu1 %v6317_v57 }
 0x6b5   :  { %4117 = vmatprep.subr.bf16.mxu0 %v6321_v58  ;;  %4160 = vmatprep.subr.bf16.mxu1 %v6323_v59 }
 0x6b8   :  { %4118 = vmatpush1.bf16.msra.mxu0 %v6329_v60  ;;  %4161 = vmatpush1.bf16.msra.mxu1 %v6331_v61 }
 0x6b9   :  { %4119 = vmatprep.subr.bf16.mxu0 %v6335_v62  ;;  %4162 = vmatprep.subr.bf16.mxu1 %v6337_v63 }
 0x6bc   :  { %4120 = vmatpush1.bf16.msra.mxu0 %v6339_v1  ;;  %4163 = vmatpush1.bf16.msra.mxu1 %v6341_v43 }
 0x6bd   :  { %5041 = vmatprep.subr.bf16.mxu0 %v6350_v2  ;;  %5063 = vmatprep.subr.bf16.mxu1 %v6355_v3 }
 0x6bf   :  { %4138 = vmatmul.mubr.bf16.vlgmr.msra.gmra.mrb[32].mxu0 %v6972_v33  ;;  %4181 = vmatmul.mubr.bf16.vlgmr.msra.gmra.mrb[32].mxu1 %v6972_v33  ;;  %v6995_v33 = vld [vmem:[#allocation43_spill] sm:$0xff] }
 0x6c0   :  { %5042 = vmatpush3.bf16.msra.mxu0 %v6366_v28  ;;  %5064 = vmatpush3.bf16.msra.mxu1 %v6371_v30 }
 0x6c1   :  { %5043 = vmatprep.subr.bf16.mxu0 %v6378_v4  ;;  %5065 = vmatprep.subr.bf16.mxu1 %v6383_v6 }
 0x6c4   :  { %5044 = vmatpush3.bf16.msra.mxu0 %v6973_v9  ;;  %5066 = vmatpush3.bf16.msra.mxu1 %v6974_v10 }
 0x6c5   :  { %5045 = vmatprep.subr.bf16.mxu0 %v6975_v11  ;;  %5067 = vmatprep.subr.bf16.mxu1 %v6976_v12 }
 0x6c8   :  { %5046 = vmatpush3.bf16.msra.mxu0 %v6977_v13  ;;  %5068 = vmatpush3.bf16.msra.mxu1 %v6978_v5 }
 0x6c9   :  { %5047 = vmatprep.subr.bf16.mxu0 %v6979_v15  ;;  %5069 = vmatprep.subr.bf16.mxu1 %v6980_v16  ;;  %v7001_v16 = vld [vmem:[#allocation47_spill] sm:$0xff] }
 0x6cc   :  { %5048 = vmatpush3.bf16.msra.mxu0 %v6981_v14  ;;  %5070 = vmatpush3.bf16.msra.mxu1 %v6982_v19 }
 0x6cd   :  { %5049 = vmatprep.subr.bf16.mxu0 %v6983_v27  ;;  %5071 = vmatprep.subr.bf16.mxu1 %v6984_v26 }
 0x6d0   :  { %5050 = vmatpush3.bf16.msra.mxu0 %v6985_v32  ;;  %5072 = vmatpush3.bf16.msra.mxu1 %v6986_v35  ;;  %v6996_v32 = vld [vmem:[#allocation44_spill] sm:$0xff]  ;;  %v6997_v35 = vld [vmem:[#allocation45_spill] sm:$0xff] }
 0x6d1   :  { %5051 = vmatprep.subr.bf16.mxu0 %v6987_v7  ;;  %5073 = vmatprep.subr.bf16.mxu1 %v6988_v20  ;;  %v6998_v7 = vld [vmem:[#allocation46_spill] sm:$0xff]  ;;  %v6999_v20 = vld [vmem:[#allocation17_spill] sm:$0xff] }
 0x6d4   :  { %5052 = vmatpush3.bf16.msra.mxu0 %v6989_v29  ;;  %5074 = vmatpush3.bf16.msra.mxu1 %v6990_v25  ;;  %v7000_v29 = vld [vmem:[#allocation18_spill] sm:$0xff] }
 0x6d5   :  { %5053 = vmatprep.subr.bf16.mxu0 %v6991_v0  ;;  %5075 = vmatprep.subr.bf16.mxu1 %v6992_v17 }
 0x6d8   :  { %5054 = vmatpush3.bf16.msra.mxu0 %v6993_v18  ;;  %5076 = vmatpush3.bf16.msra.mxu1 %v6994_v31 }
 0x6d9   :  { %5055 = vmatprep.subr.bf16.mxu0 %v6995_v33  ;;  %5077 = vmatprep.subr.bf16.mxu1 %v6996_v32 }
 0x6dc   :  { %5056 = vmatpush3.bf16.msra.mxu0 %v6997_v35  ;;  %5078 = vmatpush3.bf16.msra.mxu1 %v6998_v7 }
 0x6dd   :  { %4289 = vmatprep.subr.bf16.mxu0 %v6999_v20  ;;  %4332 = vmatprep.subr.bf16.mxu1 %v7000_v29 }
 0x772   :  { %v5013_v25 = vpop.f32.mrb[28].mxu0  ;;  %v5035_v0 = vpop.f32.mrb[28].mxu1 }
 0x773   :  { %v5014_v26 = vpop.f32.mrb[29].mxu0  ;;  %v5036_v17 = vpop.f32.mrb[29].mxu1 }
 0x774   :  { %v5015_v27 = vadd.f32 %v5014_v26, %v5013_v25  ;;  %v5037_v18 = vadd.f32 %v5036_v17, %v5035_v0  ;;  %v5016_v19 = vpop.f32.mrb[30].mxu0  ;;  %v5038_v31 = vpop.f32.mrb[30].mxu1 }
 0x775   :  { %v5017_v14 = vpop.f32.mrb[31].mxu0  ;;  %v5039_v33 = vpop.f32.mrb[31].mxu1 }
 0x776   :  { %v4054_v32 = vadd.f32 %v5015_v27, %v7001_v16  ;;  %v5018_v15 = vadd.f32 %v5017_v14, %v5016_v19  ;;  %v5040_v35 = vadd.f32 %v5039_v33, %v5038_v31 }
 0x778   :  { %v4095_v5 = vadd.f32 %v5037_v18, %v4054_v32  ;;  %v4057_v7 = vadd.f32 %v5018_v15, %v7001_v16 }
 0x77a   :  { %4947 = vst.msk [vmem:[%s6848_s9 + $0x10] sm:$0xff] %vm3917_vm1, %v4095_v5  ;;  %v4098_v20 = vadd.f32 %v5040_v35, %v4057_v7 }
 0x77c   :  { %4948 = vst.msk [vmem:[%s6848_s9 + $0x18] sm:$0xff] %vm3917_vm1, %v4098_v20 }
 0x792   :  { %v4139_v26 = vpop.f32.mrb[32].mxu0  ;;  %v4182_v29 = vpop.f32.mrb[32].mxu1 }
 0x793   :  { %v4140_v27 = vadd.f32 %v4139_v26, %v6552_v8  ;;  %v4183_v14 = vadd.f32 %v4182_v29, %v6555_v22  ;;  %v4141_v19 = vpop.f32.mrb[33].mxu0  ;;  %v4184_v32 = vpop.f32.mrb[33].mxu1 }
 0x794   :  { %v4142_v15 = vadd.f32 %v4141_v19, %v6558_v21  ;;  %v4185_v25 = vadd.f32 %v4184_v32, %v6561_v24  ;;  %v4143_v0 = vpop.f32.mrb[34].mxu0  ;;  %v4186_v5 = vpop.f32.mrb[34].mxu1 }
 0x795   :  { %v4144_v35 = vadd.f32 %v4143_v0, %v6552_v8  ;;  %v4187_v7 = vadd.f32 %v4186_v5, %v6555_v22  ;;  %v4145_v17 = vpop.f32.mrb[35].mxu0  ;;  %v4188_v18 = vpop.f32.mrb[35].mxu1  ;;  %v4191_v20 = vmax.f32 %v4140_v27, 0.0  ;;  %v4193_v26 = vmax.f32 %v4183_v14, 0.0 }
 0x796   :  { %v4146_v31 = vadd.f32 %v4145_v17, %v6558_v21  ;;  %v4189_v33 = vadd.f32 %v4188_v18, %v6561_v24  ;;  %v4192_v13 = vmax.f32 %v4142_v15, 0.0  ;;  %v4194_v19 = vmax.f32 %v4185_v25, 0.0 }
 0x797   :  { %v4195_v29 = vmax.f32 %v4144_v35, 0.0  ;;  %v4197_v16 = vmax.f32 %v4187_v7, 0.0 }
 0x798   :  { %v4196_v12 = vmax.f32 %v4146_v31, 0.0  ;;  %v4198_v32 = vmax.f32 %v4189_v33, 0.0 }
 0x799   :  { %v4199_v11 = vpack.c.bf16 %v4195_v29, %v4191_v20  ;;  %v4201_v10 = vpack.c.bf16 %v4197_v16, %v4193_v26 }
 0x79a   :  { %v4200_v9 = vpack.c.bf16 %v4196_v12, %v4192_v13  ;;  %v4202_v0 = vpack.c.bf16 %v4198_v32, %v4194_v19 }
 0x79c   :  { %4235 = vmatprep.mubr.bf16.mxu0 %v4200_v9  ;;  %4276 = vmatprep.mubr.bf16.mxu1 %v4202_v0  ;;  %v7029_v9 = vld [vmem:[#allocation47_spill] sm:$0xff] }
 0x79d   :  { %4236 = vmatmul.mubr.bf16.vlgmr.msra.gmra.mrb[36].mxu0 %v4199_v11  ;;  %4277 = vmatmul.mubr.bf16.vlgmr.msra.gmra.mrb[36].mxu1 %v4201_v10 }
 0x79e   :  { %4290 = vmatpush1.bf16.msra.mxu0 %v6251_v36  ;;  %4333 = vmatpush1.bf16.msra.mxu1 %v6253_v37  ;;  %v7002_v36 = vld [vmem:[#allocation20_spill] sm:$0xff]  ;;  %v7003_v37 = vld [vmem:[#allocation21_spill] sm:$0xff] }
 0x79f   :  { %4291 = vmatprep.subr.bf16.mxu0 %v6257_v38  ;;  %4334 = vmatprep.subr.bf16.mxu1 %v6259_v39  ;;  %v7004_v38 = vld [vmem:[#allocation22_spill] sm:$0xff]  ;;  %v7005_v39 = vld [vmem:[#allocation23_spill] sm:$0xff] }
 0x7a0   :  { %4321 = vmatprep.mubr.bf16.mxu0 %v6942_v34  ;;  %4364 = vmatprep.mubr.bf16.mxu1 %v6942_v34 }
 0x7a2   :  { %4292 = vmatpush1.bf16.msra.mxu0 %v6265_v40  ;;  %4335 = vmatpush1.bf16.msra.mxu1 %v6267_v41  ;;  %v7006_v40 = vld [vmem:[#allocation24_spill] sm:$0xff]  ;;  %v7007_v41 = vld [vmem:[#allocation25_spill] sm:$0xff] }
 0x7a3   :  { %4293 = vmatprep.subr.bf16.mxu0 %v6271_v42  ;;  %4336 = vmatprep.subr.bf16.mxu1 %v6273_v44  ;;  %v7008_v42 = vld [vmem:[#allocation26_spill] sm:$0xff]  ;;  %v7009_v44 = vld [vmem:[#allocation27_spill] sm:$0xff] }
 0x7a6   :  { %4294 = vmatpush1.bf16.msra.mxu0 %v6279_v23  ;;  %4337 = vmatpush1.bf16.msra.mxu1 %v6281_v45  ;;  %v7010_v23 = vld [vmem:[#allocation28_spill] sm:$0xff]  ;;  %v7011_v45 = vld [vmem:[#allocation29_spill] sm:$0xff] }
 0x7a7   :  { %4295 = vmatprep.subr.bf16.mxu0 %v6285_v46  ;;  %4338 = vmatprep.subr.bf16.mxu1 %v6287_v47  ;;  %v7012_v46 = vld [vmem:[#allocation30_spill] sm:$0xff]  ;;  %v7013_v47 = vld [vmem:[#allocation31_spill] sm:$0xff] }
 0x7aa   :  { %4296 = vmatpush1.bf16.msra.mxu0 %v6291_v48  ;;  %4339 = vmatpush1.bf16.msra.mxu1 %v6293_v49  ;;  %v7014_v48 = vld [vmem:[#allocation32_spill] sm:$0xff]  ;;  %v7015_v49 = vld [vmem:[#allocation33_spill] sm:$0xff] }
 0x7ab   :  { %4297 = vmatprep.subr.bf16.mxu0 %v6297_v50  ;;  %4340 = vmatprep.subr.bf16.mxu1 %v6299_v51  ;;  %v7016_v50 = vld [vmem:[#allocation34_spill] sm:$0xff]  ;;  %v7017_v51 = vld [vmem:[#allocation35_spill] sm:$0xff] }
 0x7ae   :  { %4298 = vmatpush1.bf16.msra.mxu0 %v6303_v52  ;;  %4341 = vmatpush1.bf16.msra.mxu1 %v6305_v53  ;;  %v7018_v52 = vld [vmem:[#allocation36_spill] sm:$0xff]  ;;  %v7019_v53 = vld [vmem:[#allocation37_spill] sm:$0xff] }
 0x7af   :  { %4299 = vmatprep.subr.bf16.mxu0 %v6309_v54  ;;  %4342 = vmatprep.subr.bf16.mxu1 %v6311_v55  ;;  %v7020_v54 = vld [vmem:[#allocation38_spill] sm:$0xff]  ;;  %v7021_v55 = vld [vmem:[#allocation39_spill] sm:$0xff] }
 0x7b2   :  { %4300 = vmatpush1.bf16.msra.mxu0 %v6315_v56  ;;  %4343 = vmatpush1.bf16.msra.mxu1 %v6317_v57  ;;  %v7022_v56 = vld [vmem:[#allocation40_spill] sm:$0xff]  ;;  %v7023_v57 = vld [vmem:[#allocation41_spill] sm:$0xff] }
 0x7b3   :  { %4301 = vmatprep.subr.bf16.mxu0 %v6321_v58  ;;  %4344 = vmatprep.subr.bf16.mxu1 %v6323_v59  ;;  %v7024_v58 = vld [vmem:[#allocation42_spill] sm:$0xff]  ;;  %v7025_v59 = vld [vmem:[#allocation43_spill] sm:$0xff] }
 0x7b6   :  { %4302 = vmatpush1.bf16.msra.mxu0 %v6329_v60  ;;  %4345 = vmatpush1.bf16.msra.mxu1 %v6331_v61  ;;  %v7026_v60 = vld [vmem:[#allocation44_spill] sm:$0xff]  ;;  %v7027_v61 = vld [vmem:[#allocation45_spill] sm:$0xff] }
 0x7b7   :  { %4303 = vmatprep.subr.bf16.mxu0 %v6335_v62  ;;  %4346 = vmatprep.subr.bf16.mxu1 %v6337_v63  ;;  %v7028_v62 = vld [vmem:[#allocation46_spill] sm:$0xff] }
 0x7ba   :  { %4304 = vmatpush1.bf16.msra.mxu0 %v6339_v1  ;;  %4347 = vmatpush1.bf16.msra.mxu1 %v6341_v43 }
 0x7bb   :  { %5085 = vmatprep.subr.bf16.mxu0 %v6350_v2  ;;  %5107 = vmatprep.subr.bf16.mxu1 %v6355_v3 }
 0x7bd   :  { %4322 = vmatmul.mubr.bf16.vlgmr.msra.gmra.mrb[40].mxu0 %v7002_v36  ;;  %4365 = vmatmul.mubr.bf16.vlgmr.msra.gmra.mrb[40].mxu1 %v7002_v36 }
 0x7be   :  { %5086 = vmatpush3.bf16.msra.mxu0 %v6366_v28  ;;  %5108 = vmatpush3.bf16.msra.mxu1 %v6371_v30 }
 0x7bf   :  { %5087 = vmatprep.subr.bf16.mxu0 %v6378_v4  ;;  %5109 = vmatprep.subr.bf16.mxu1 %v6383_v6 }
 0x7c2   :  { %5088 = vmatpush3.bf16.msra.mxu0 %v7003_v37  ;;  %5110 = vmatpush3.bf16.msra.mxu1 %v7004_v38 }
 0x7c3   :  { %5089 = vmatprep.subr.bf16.mxu0 %v7005_v39  ;;  %5111 = vmatprep.subr.bf16.mxu1 %v7006_v40 }
 0x7c6   :  { %5090 = vmatpush3.bf16.msra.mxu0 %v7007_v41  ;;  %5112 = vmatpush3.bf16.msra.mxu1 %v7008_v42 }
 0x7c7   :  { %5091 = vmatprep.subr.bf16.mxu0 %v7009_v44  ;;  %5113 = vmatprep.subr.bf16.mxu1 %v7010_v23 }
 0x7ca   :  { %5092 = vmatpush3.bf16.msra.mxu0 %v7011_v45  ;;  %5114 = vmatpush3.bf16.msra.mxu1 %v7012_v46 }
 0x7cb   :  { %5093 = vmatprep.subr.bf16.mxu0 %v7013_v47  ;;  %5115 = vmatprep.subr.bf16.mxu1 %v7014_v48 }
 0x7ce   :  { %5094 = vmatpush3.bf16.msra.mxu0 %v7015_v49  ;;  %5116 = vmatpush3.bf16.msra.mxu1 %v7016_v50 }
 0x7cf   :  { %5095 = vmatprep.subr.bf16.mxu0 %v7017_v51  ;;  %5117 = vmatprep.subr.bf16.mxu1 %v7018_v52 }
 0x7d2   :  { %5096 = vmatpush3.bf16.msra.mxu0 %v7019_v53  ;;  %5118 = vmatpush3.bf16.msra.mxu1 %v7020_v54 }
 0x7d3   :  { %5097 = vmatprep.subr.bf16.mxu0 %v7021_v55  ;;  %5119 = vmatprep.subr.bf16.mxu1 %v7022_v56 }
 0x7d6   :  { %5098 = vmatpush3.bf16.msra.mxu0 %v7023_v57  ;;  %5120 = vmatpush3.bf16.msra.mxu1 %v7024_v58 }
 0x7d7   :  { %5099 = vmatprep.subr.bf16.mxu0 %v7025_v59  ;;  %5121 = vmatprep.subr.bf16.mxu1 %v7026_v60 }
 0x7da   :  { %5100 = vmatpush3.bf16.msra.mxu0 %v7027_v61  ;;  %5122 = vmatpush3.bf16.msra.mxu1 %v7028_v62 }
 0x870   :  { %v5057_v63 = vpop.f32.mrb[36].mxu0  ;;  %v5079_v1 = vpop.f32.mrb[36].mxu1 }
 0x871   :  { %v5058_v43 = vpop.f32.mrb[37].mxu0  ;;  %v5080_v2 = vpop.f32.mrb[37].mxu1 }
 0x872   :  { %v5059_v3 = vadd.f32 %v5058_v43, %v5057_v63  ;;  %v5081_v28 = vadd.f32 %v5080_v2, %v5079_v1  ;;  %v5060_v30 = vpop.f32.mrb[38].mxu0  ;;  %v5082_v4 = vpop.f32.mrb[38].mxu1 }
 0x873   :  { %v5061_v6 = vpop.f32.mrb[39].mxu0  ;;  %v5083_v34 = vpop.f32.mrb[39].mxu1 }
 0x874   :  { %v4238_v10 = vadd.f32 %v5059_v3, %v7029_v9  ;;  %v5062_v11 = vadd.f32 %v5061_v6, %v5060_v30  ;;  %v5084_v12 = vadd.f32 %v5083_v34, %v5082_v4 }
 0x876   :  { %v4279_v13 = vadd.f32 %v5081_v28, %v4238_v10  ;;  %v4241_v16 = vadd.f32 %v5062_v11, %v7029_v9 }
 0x878   :  { %4949 = vst.msk [vmem:[%s6848_s9 + $0x20] sm:$0xff] %vm3917_vm1, %v4279_v13  ;;  %v4282_v27 = vadd.f32 %v5084_v12, %v4241_v16 }
 0x87a   :  { %4950 = vst.msk [vmem:[%s6848_s9 + $0x28] sm:$0xff] %vm3917_vm1, %v4282_v27 }
 0x890   :  { %v4323_v14 = vpop.f32.mrb[40].mxu0  ;;  %v4366_v15 = vpop.f32.mrb[40].mxu1 }
 0x891   :  { %v4324_v25 = vadd.f32 %v4323_v14, %v6552_v8  ;;  %v4367_v5 = vadd.f32 %v4366_v15, %v6555_v22  ;;  %v4325_v35 = vpop.f32.mrb[41].mxu0  ;;  %v4368_v7 = vpop.f32.mrb[41].mxu1 }
 0x892   :  { %v4326_v17 = vadd.f32 %v4325_v35, %v6558_v21  ;;  %v4369_v18 = vadd.f32 %v4368_v7, %v6561_v24  ;;  %v4327_v31 = vpop.f32.mrb[42].mxu0  ;;  %v4370_v33 = vpop.f32.mrb[42].mxu1 }
 0x893   :  { %v4328_v20 = vadd.f32 %v4327_v31, %v6552_v8  ;;  %v4371_v26 = vadd.f32 %v4370_v33, %v6555_v22  ;;  %v4329_v29 = vpop.f32.mrb[43].mxu0  ;;  %v4372_v19 = vpop.f32.mrb[43].mxu1  ;;  %v4375_v36 = vmax.f32 %v4324_v25, 0.0  ;;  %v4377_v37 = vmax.f32 %v4367_v5, 0.0 }
 0x894   :  { %v4330_v32 = vadd.f32 %v4329_v29, %v6558_v21  ;;  %v4373_v0 = vadd.f32 %v4372_v19, %v6561_v24  ;;  %v4376_v40 = vmax.f32 %v4326_v17, 0.0  ;;  %v4378_v41 = vmax.f32 %v4369_v18, 0.0 }
 0x895   :  { %v4379_v38 = vmax.f32 %v4328_v20, 0.0  ;;  %v4381_v39 = vmax.f32 %v4371_v26, 0.0 }
 0x896   :  { %v4380_v42 = vmax.f32 %v4330_v32, 0.0  ;;  %v4382_v44 = vmax.f32 %v4373_v0, 0.0 }
 0x897   :  { %v4383_v23 = vpack.c.bf16 %v4379_v38, %v4375_v36  ;;  %v4385_v45 = vpack.c.bf16 %v4381_v39, %v4377_v37 }
 0x898   :  { %v4384_v46 = vpack.c.bf16 %v4380_v42, %v4376_v40  ;;  %v4386_v8 = vpack.c.bf16 %v4382_v44, %v4378_v41 }
 0x89a   :  { %4419 = vmatprep.mubr.bf16.mxu0 %v4384_v46  ;;  %4460 = vmatprep.mubr.bf16.mxu1 %v4386_v8 }
 0x89b   :  { %4420 = vmatmul.mubr.bf16.vlgmr.msra.gmra.mrb[44].mxu0 %v4383_v23  ;;  %4461 = vmatmul.mubr.bf16.vlgmr.msra.gmra.mrb[44].mxu1 %v4385_v45 }
 0x96e   :  { %v5101_v22 = vpop.f32.mrb[44].mxu0  ;;  %v5123_v21 = vpop.f32.mrb[44].mxu1 }
 0x96f   :  { %v5102_v47 = vpop.f32.mrb[45].mxu0  ;;  %v5124_v24 = vpop.f32.mrb[45].mxu1 }
 0x970   :  { %v5103_v48 = vadd.f32 %v5102_v47, %v5101_v22  ;;  %v5125_v49 = vadd.f32 %v5124_v24, %v5123_v21  ;;  %v5104_v50 = vpop.f32.mrb[46].mxu0  ;;  %v5126_v51 = vpop.f32.mrb[46].mxu1 }
 0x971   :  { %v5105_v52 = vpop.f32.mrb[47].mxu0  ;;  %v5127_v53 = vpop.f32.mrb[47].mxu1 }
 0x972   :  { %v4422_v54 = vadd.f32 %v5103_v48, %v7029_v9  ;;  %v5106_v55 = vadd.f32 %v5105_v52, %v5104_v50  ;;  %v5128_v56 = vadd.f32 %v5127_v53, %v5126_v51 }
 0x974   :  { %v4463_v57 = vadd.f32 %v5125_v49, %v4422_v54  ;;  %v4425_v58 = vadd.f32 %v5106_v55, %v7029_v9 }
 0x976   :  { %4951 = vst.msk [vmem:[%s6848_s9 + $0x30] sm:$0xff] %vm3917_vm1, %v4463_v57  ;;  %v4466_v59 = vadd.f32 %v5128_v56, %v4425_v58 }
 0x978   :  { %4952 = vst.msk [vmem:[%s6848_s9 + $0x38] sm:$0xff] %vm3917_vm1, %v4466_v59 }
 0x979   :  { %4476 = vsyncpa [#allocation3], 1 }
 0x97a   :  { %4477 = vsyncpa [#allocation5], 1 }
 0x97b   :  { %4478 = vsyncpa [#allocation8], 1 }
 0x97c   :  { %4479 = vsyncpa [#allocation11], 1 }

</bundles_post_ra>
